<compile_context>
chip_gen: v5e
topology: v5e:2x2
jax: 0.10.0
libtpu: 0.0.40
codegen_flags: <defaults>
</compile_context>

<pallas_src>
import functools

import numpy as np

import jax
import jax.numpy as jnp
from jax import lax
from jax.experimental import pallas as pl
from jax.experimental.pallas import tpu as pltpu

C1, C2 = 8, 16             # conv1 / conv2 output channels
HW1, HW2, HW3 = 28, 14, 7  # spatial sizes after conv1, pool1, pool2
FC1, FC2 = 128, 10         # fc1 hidden width, fc2 (logit) width
B_TILE = 16                # images per grid step (tunable; mult. of 16)

L1 = HW1 * C1              # 224  y1 / pool1-row lane width
L2 = HW2 * C1              # 112  p1 lane width
L3 = HW2 * C2              # 224  y2 / pool2-row lane width
L4 = HW3 * C2              # 112  p2 lane width
LFC = HW3 * HW3 * C2       # 784  fc1 input width


# ------------------------------ fused kernel -------------------------------

def _cnn_fused_kernel(x_ref, r1_ref, b1_ref, pw1_ref, r2_ref, b2_ref,
                      pw2_ref, w1_ref, fb1_ref, w2_ref, fb2_ref,
                      o_ref, t1s_ref, p1pad_ref, t2s_ref, slab_ref):
    B = B_TILE
    dot = functools.partial(jnp.dot, preferred_element_type=jnp.float32)

    # ---- conv1 + bias + ReLU ------------------------------------------
    # x_ref is H-padded and h-major stacked: row h_pad*B + b.  Each height
    # tap is a contiguous slice; width taps are folded into R1.
    x0 = x_ref[0 * B:(HW1 + 0) * B, :].astype(jnp.bfloat16)
    x1 = x_ref[1 * B:(HW1 + 1) * B, :].astype(jnp.bfloat16)
    x2 = x_ref[2 * B:(HW1 + 2) * B, :].astype(jnp.bfloat16)
    y1 = dot(x0, r1_ref[0]) + dot(x1, r1_ref[1]) + dot(x2, r1_ref[2])
    y1 = jnp.maximum(y1 + b1_ref[...], 0.0)            # (28B, 224) f32

    # ---- pool1: rows = contiguous block max, cols = 0/1 matmul ----------
    for h in range(HW2):
        t1s_ref[h * B:(h + 1) * B, :] = jnp.maximum(
            y1[(2 * h) * B:(2 * h + 1) * B, :],
            y1[(2 * h + 1) * B:(2 * h + 2) * B, :]).astype(jnp.bfloat16)
    t1 = t1s_ref[...]                                   # (14B, 224) bf16
    p1 = jnp.maximum(dot(t1, pw1_ref[0]), dot(t1, pw1_ref[1]))  # (14B,112)

    # ---- conv2 + bias + ReLU (H-padded p1 in scratch; taps = slices) ----
    zpad = jnp.zeros((B, L2), jnp.bfloat16)
    p1pad_ref[0:B, :] = zpad
    p1pad_ref[(HW2 + 1) * B:(HW2 + 2) * B, :] = zpad
    p1pad_ref[B:(HW2 + 1) * B, :] = p1.astype(jnp.bfloat16)
    y2 = (dot(p1pad_ref[0 * B:(HW2 + 0) * B, :], r2_ref[0])
          + dot(p1pad_ref[1 * B:(HW2 + 1) * B, :], r2_ref[1])
          + dot(p1pad_ref[2 * B:(HW2 + 2) * B, :], r2_ref[2]))
    y2 = jnp.maximum(y2 + b2_ref[...], 0.0)             # (14B, 224) f32

    # ---- pool2 ----------------------------------------------------------
    for h in range(HW3):
        t2s_ref[h * B:(h + 1) * B, :] = jnp.maximum(
            y2[(2 * h) * B:(2 * h + 1) * B, :],
            y2[(2 * h + 1) * B:(2 * h + 2) * B, :]).astype(jnp.bfloat16)
    t2 = t2s_ref[...]                                   # (7B, 224) bf16
    p2 = jnp.maximum(dot(t2, pw2_ref[0]), dot(t2, pw2_ref[1]))  # (7B, 112)

    # ---- fc1 as ONE (B, 784) @ (784, 128) GEMM --------------------------
    for h in range(HW3):
        slab_ref[:, h * L4:(h + 1) * L4] = (
            p2[h * B:(h + 1) * B, :].astype(jnp.bfloat16))
    h1 = jnp.maximum(dot(slab_ref[...], w1_ref[...]) + fb1_ref[...], 0.0)

    # ---- fc2 (10 outputs lane-padded to 128 for dense stores) -----------
    o_ref[...] = dot(h1.astype(jnp.bfloat16), w2_ref[...]) + fb2_ref[...]


# ------------------------ host-side constant packing -----------------------

def init_params(key):
    """Deterministic synthetic parameters (shapes follow CNN.__init__)."""
    ks = jax.random.split(key, 8)
    p = {}
    # conv weights stored in HWIO; fc weights stored PyTorch-style (out, in)
    p["conv1_w"] = 0.1 * jax.random.normal(ks[0], (3, 3, 1, C1), jnp.float32)
    p["conv1_b"] = 0.1 * jax.random.normal(ks[1], (C1,), jnp.float32)
    p["conv2_w"] = 0.1 * jax.random.normal(ks[2], (3, 3, C1, C2), jnp.float32)
    p["conv2_b"] = 0.1 * jax.random.normal(ks[3], (C2,), jnp.float32)
    p["fc1_w"] = 0.05 * jax.random.normal(ks[4], (FC1, C2 * HW3 * HW3),
                                          jnp.float32)
    p["fc1_b"] = 0.05 * jax.random.normal(ks[5], (FC1,), jnp.float32)
    p["fc2_w"] = 0.05 * jax.random.normal(ks[6], (FC2, FC1), jnp.float32)
    p["fc2_b"] = 0.05 * jax.random.normal(ks[7], (FC2,), jnp.float32)
    return p


def prepare_constants(params):
    """One-time repacking of the CNN parameters into kernel constants."""
    w1 = np.asarray(params["conv1_w"], np.float32)    # (3,3,1,8)  HWIO
    b1 = np.asarray(params["conv1_b"], np.float32)
    w2 = np.asarray(params["conv2_w"], np.float32)    # (3,3,8,16) HWIO
    b2 = np.asarray(params["conv2_b"], np.float32)
    fw1 = np.asarray(params["fc1_w"], np.float32)     # (128, 784) (out, in)
    fb1 = np.asarray(params["fc1_b"], np.float32)
    fw2 = np.asarray(params["fc2_w"], np.float32)     # (10, 128)  (out, in)
    fb2 = np.asarray(params["fc2_b"], np.float32)

    # conv1 tap matrices; width 'same' padding folded in (out-of-range kw
    # entries dropped): R1[kh, wu, w*C1+co] = w1[kh, kw, 0, co], wu = w+kw-1.
    R1 = np.zeros((3, HW1, L1), np.float32)
    for kh in range(3):
        for kw in range(3):
            for w in range(HW1):
                wu = w + kw - 1
                if 0 <= wu < HW1:
                    R1[kh, wu, w * C1:(w + 1) * C1] += w1[kh, kw, 0, :]
    b1row = np.tile(b1, HW1)[None, :]                           # (1, 224)

    # pool1 width-selection (batch invariant 0/1 matmuls)
    PW1 = np.zeros((2, L1, L2), np.float32)
    for j in range(HW2):
        for c in range(C1):
            PW1[0, (2 * j) * C1 + c, j * C1 + c] = 1.0
            PW1[1, (2 * j + 1) * C1 + c, j * C1 + c] = 1.0

    # conv2 tap matrices: R2[kh, wu*C1+ci, w*C2+co] = w2[kh,kw,ci,co]
    R2 = np.zeros((3, L2, L3), np.float32)
    for kh in range(3):
        for kw in range(3):
            for w in range(HW2):
                wu = w + kw - 1
                if 0 <= wu < HW2:
                    R2[kh, wu * C1:(wu + 1) * C1,
                       w * C2:(w + 1) * C2] += w2[kh, kw]
    b2row = np.tile(b2, HW2)[None, :]                           # (1, 224)

    # pool2 width-selection
    PW2 = np.zeros((2, L3, L4), np.float32)
    for j in range(HW3):
        for c in range(C2):
            PW2[0, (2 * j) * C2 + c, j * C2 + c] = 1.0
            PW2[1, (2 * j + 1) * C2 + c, j * C2 + c] = 1.0

    # fc1: fold torch NCHW flatten + (out,in)->(in,out) transpose into one
    # (784, 128) matrix matching the kernel's slab layout (h, then w, c).
    W1slab = np.zeros((LFC, FC1), np.float32)
    for h in range(HW3):
        for w in range(HW3):
            for c in range(C2):
                W1slab[h * L4 + w * C2 + c, :] = \
                    fw1[:, c * HW3 * HW3 + h * HW3 + w]
    fb1row = fb1[None, :]                                       # (1, 128)

    # fc2: pre-transpose and lane-pad 10 -> 128.
    W2p = np.zeros((FC1, 128), np.float32)
    W2p[:, :FC2] = fw2.T
    fb2row = np.zeros((1, 128), np.float32)
    fb2row[0, :FC2] = fb2

    bf = jnp.bfloat16
    return dict(
        R1=jnp.asarray(R1, bf), b1row=jnp.asarray(b1row),
        PW1=jnp.asarray(PW1, bf),
        R2=jnp.asarray(R2, bf), b2row=jnp.asarray(b2row),
        PW2=jnp.asarray(PW2, bf),
        W1slab=jnp.asarray(W1slab, bf), fb1row=jnp.asarray(fb1row),
        W2p=jnp.asarray(W2p, bf), fb2row=jnp.asarray(fb2row),
    )


_CONST_ORDER = ("R1", "b1row", "PW1", "R2", "b2row", "PW2",
                "W1slab", "fb1row", "W2p", "fb2row")


def _const_spec(shape):
    zero = (0,) * len(shape)
    return pl.BlockSpec(tuple(shape), lambda b, _z=zero: _z)


# ------------------------------ forward pass --------------------------------

@jax.jit
def cnn_forward(consts, x_nchw):
    """x_nchw: (N, 1, 28, 28) float32  ->  (N, 10) logits."""
    n = x_nchw.shape[0]
    n_pad = ((n + B_TILE - 1) // B_TILE) * B_TILE
    t_steps = n_pad // B_TILE

    x = x_nchw.reshape(n, HW1, HW1)
    if n_pad != n:
        x = jnp.pad(x, ((0, n_pad - n), (0, 0), (0, 0)))
    # H-only zero pad (28 -> 30); width padding lives in R1.  Per batch tile
    # images are stacked h-major on the sublane axis: row = h_pad*B_TILE + b.
    x = jnp.pad(x, ((0, 0), (1, 1), (0, 0)))
    x = x.reshape(t_steps, B_TILE, HW1 + 2, HW1).transpose(0, 2, 1, 3)
    x2d = x.reshape(t_steps * (HW1 + 2) * B_TILE, HW1)

    cvals = [consts[k] for k in _CONST_ORDER]
    in_specs = [pl.BlockSpec(((HW1 + 2) * B_TILE, HW1), lambda b: (b, 0))]
    in_specs += [_const_spec(c.shape) for c in cvals]

    out = pl.pallas_call(
        _cnn_fused_kernel,
        out_shape=jax.ShapeDtypeStruct((n_pad, 128), jnp.float32),
        grid=(t_steps,),
        in_specs=in_specs,
        out_specs=pl.BlockSpec((B_TILE, 128), lambda b: (b, 0)),
        scratch_shapes=[
            pltpu.VMEM((HW2 * B_TILE, L1), jnp.bfloat16),        # pool1 rows
            pltpu.VMEM(((HW2 + 2) * B_TILE, L2), jnp.bfloat16),  # padded p1
            pltpu.VMEM((HW3 * B_TILE, L3), jnp.bfloat16),        # pool2 rows
            pltpu.VMEM((B_TILE, LFC), jnp.bfloat16),             # fc1 slab
        ],
        compiler_params=pltpu.CompilerParams(
            dimension_semantics=("parallel",)),
    )(x2d, *cvals)
    return out[:n, :FC2]


def cnn_reference(params, x_nchw):
    """Pure-JAX reference of the same forward pass (correctness check only)."""
    x = jnp.transpose(x_nchw, (0, 2, 3, 1))

    def conv(x, w, b):
        y = lax.conv_general_dilated(
            x, w, window_strides=(1, 1), padding="SAME",
            dimension_numbers=("NHWC", "HWIO", "NHWC"))
        return jnp.maximum(y + b, 0.0)

    def pool(x):
        return lax.reduce_window(
            x, -jnp.inf, lax.max, (1, 2, 2, 1), (1, 2, 2, 1), "VALID")

    x = pool(conv(x, params["conv1_w"], params["conv1_b"]))
    x = pool(conv(x, params["conv2_w"], params["conv2_b"]))
    n = x.shape[0]
    feat = jnp.transpose(x, (0, 3, 1, 2)).reshape(n, C2 * HW3 * HW3)
    h = jnp.maximum(feat @ params["fc1_w"].T + params["fc1_b"], 0.0)
    return h @ params["fc2_w"].T + params["fc2_b"]


if __name__ == "__main__":
    key = jax.random.PRNGKey(0)
    pkey, xkey = jax.random.split(key)
    params = init_params(pkey)
    consts = prepare_constants(params)

    # input spatial size implied by fc1 (16*7*7): 1x28x28.
    # batch=2 (padded up to one tile) and batch=37 (ragged, 3 grid steps).
    for batch in (2, 37):
        x = jax.random.normal(jax.random.fold_in(xkey, batch),
                              (batch, 1, 28, 28), jnp.float32)
        out = jax.block_until_ready(cnn_forward(consts, x))
        ref = jax.block_until_ready(cnn_reference(params, x))
        assert out.shape == (batch, FC2), out.shape
        err = float(jnp.max(jnp.abs(out - ref)))
        # bf16 inputs with f32 accumulation -> loosened tolerance vs f32 ref.
        assert jnp.allclose(out, ref, rtol=4e-2, atol=4e-2), err
    print("KERNEL_OK")
</pallas_src>

<mosaic_0001>
module attributes {stable_mosaic.version = 11 : i64} {
  func.func @_cnn_fused_kernel(%arg0: i32, %arg1: memref<480x28xf32, #tpu.memory_space<vmem>>, %arg2: memref<3x28x224xbf16, #tpu.memory_space<vmem>>, %arg3: memref<1x224xf32, #tpu.memory_space<vmem>>, %arg4: memref<2x224x112xbf16, #tpu.memory_space<vmem>>, %arg5: memref<3x112x224xbf16, #tpu.memory_space<vmem>>, %arg6: memref<1x224xf32, #tpu.memory_space<vmem>>, %arg7: memref<2x224x112xbf16, #tpu.memory_space<vmem>>, %arg8: memref<784x128xbf16, #tpu.memory_space<vmem>>, %arg9: memref<1x128xf32, #tpu.memory_space<vmem>>, %arg10: memref<128x128xbf16, #tpu.memory_space<vmem>>, %arg11: memref<1x128xf32, #tpu.memory_space<vmem>>, %arg12: memref<16x128xf32, #tpu.memory_space<vmem>>, %arg13: memref<224x224xbf16, #tpu.memory_space<vmem>>, %arg14: memref<256x112xbf16, #tpu.memory_space<vmem>>, %arg15: memref<112x224xbf16, #tpu.memory_space<vmem>>, %arg16: memref<16x784xbf16, #tpu.memory_space<vmem>>) attributes {dimension_semantics = [#tpu.dimension_semantics<parallel>], iteration_bounds = array<i64: 1>, scalar_prefetch = 0 : i64, scratch_operands = 4 : i64, tpu.core_type = #tpu.core_type<tc>, window_params = [{transform_indices = @transform_0, window_bounds = array<i64: 480, 28>}, {pipeline_mode = #tpu.pipeline_mode<synchronous>, transform_indices = @transform_1, window_bounds = array<i64: 3, 28, 224>}, {pipeline_mode = #tpu.pipeline_mode<synchronous>, transform_indices = @transform_2, window_bounds = array<i64: 1, 224>}, {pipeline_mode = #tpu.pipeline_mode<synchronous>, transform_indices = @transform_3, window_bounds = array<i64: 2, 224, 112>}, {pipeline_mode = #tpu.pipeline_mode<synchronous>, transform_indices = @transform_4, window_bounds = array<i64: 3, 112, 224>}, {pipeline_mode = #tpu.pipeline_mode<synchronous>, transform_indices = @transform_5, window_bounds = array<i64: 1, 224>}, {pipeline_mode = #tpu.pipeline_mode<synchronous>, transform_indices = @transform_6, window_bounds = array<i64: 2, 224, 112>}, {pipeline_mode = #tpu.pipeline_mode<synchronous>, transform_indices = @transform_7, window_bounds = array<i64: 784, 128>}, {pipeline_mode = #tpu.pipeline_mode<synchronous>, transform_indices = @transform_8, window_bounds = array<i64: 1, 128>}, {pipeline_mode = #tpu.pipeline_mode<synchronous>, transform_indices = @transform_9, window_bounds = array<i64: 128, 128>}, {pipeline_mode = #tpu.pipeline_mode<synchronous>, transform_indices = @transform_10, window_bounds = array<i64: 1, 128>}, {transform_indices = @transform_11, window_bounds = array<i64: 16, 128>}]} {
    %c0 = arith.constant 0 : index
    %c0_0 = arith.constant 0 : index
    %0 = vector.load %arg1[%c0, %c0_0] : memref<480x28xf32, #tpu.memory_space<vmem>>, vector<448x28xf32>
    %1 = arith.truncf %0 : vector<448x28xf32> to vector<448x28xbf16>
    %c16 = arith.constant 16 : index
    %c0_1 = arith.constant 0 : index
    %2 = vector.load %arg1[%c16, %c0_1] : memref<480x28xf32, #tpu.memory_space<vmem>>, vector<448x28xf32>
    %3 = arith.truncf %2 : vector<448x28xf32> to vector<448x28xbf16>
    %c32 = arith.constant 32 : index
    %c0_2 = arith.constant 0 : index
    %4 = vector.load %arg1[%c32, %c0_2] : memref<480x28xf32, #tpu.memory_space<vmem>>, vector<448x28xf32>
    %5 = arith.truncf %4 : vector<448x28xf32> to vector<448x28xbf16>
    %c0_3 = arith.constant 0 : index
    %c0_4 = arith.constant 0 : index
    %c0_5 = arith.constant 0 : index
    %6 = vector.load %arg2[%c0_3, %c0_4, %c0_5] : memref<3x28x224xbf16, #tpu.memory_space<vmem>>, vector<1x28x224xbf16>
    %7 = vector.shape_cast %6 : vector<1x28x224xbf16> to vector<28x224xbf16>
    %cst = arith.constant dense<0.000000e+00> : vector<448x224xf32>
    %8 = tpu.matmul %1, %7, %cst {dimension_numbers = #tpu.dot_dimension_numbers<[1], [0], [0], [1], [0, 0, 1, 1], [], []>} : vector<448x28xbf16>, vector<28x224xbf16>, vector<448x224xf32> -> vector<448x224xf32>
    %c1 = arith.constant 1 : index
    %c0_6 = arith.constant 0 : index
    %c0_7 = arith.constant 0 : index
    %9 = vector.load %arg2[%c1, %c0_6, %c0_7] : memref<3x28x224xbf16, #tpu.memory_space<vmem>>, vector<1x28x224xbf16>
    %10 = vector.shape_cast %9 : vector<1x28x224xbf16> to vector<28x224xbf16>
    %cst_8 = arith.constant dense<0.000000e+00> : vector<448x224xf32>
    %11 = tpu.matmul %3, %10, %cst_8 {dimension_numbers = #tpu.dot_dimension_numbers<[1], [0], [0], [1], [0, 0, 1, 1], [], []>} : vector<448x28xbf16>, vector<28x224xbf16>, vector<448x224xf32> -> vector<448x224xf32>
    %12 = arith.addf %8, %11 : vector<448x224xf32>
    %c2 = arith.constant 2 : index
    %c0_9 = arith.constant 0 : index
    %c0_10 = arith.constant 0 : index
    %13 = vector.load %arg2[%c2, %c0_9, %c0_10] : memref<3x28x224xbf16, #tpu.memory_space<vmem>>, vector<1x28x224xbf16>
    %14 = vector.shape_cast %13 : vector<1x28x224xbf16> to vector<28x224xbf16>
    %cst_11 = arith.constant dense<0.000000e+00> : vector<448x224xf32>
    %15 = tpu.matmul %5, %14, %cst_11 {dimension_numbers = #tpu.dot_dimension_numbers<[1], [0], [0], [1], [0, 0, 1, 1], [], []>} : vector<448x28xbf16>, vector<28x224xbf16>, vector<448x224xf32> -> vector<448x224xf32>
    %16 = arith.addf %12, %15 : vector<448x224xf32>
    %c0_12 = arith.constant 0 : index
    %c0_13 = arith.constant 0 : index
    %17 = vector.load %arg3[%c0_12, %c0_13] : memref<1x224xf32, #tpu.memory_space<vmem>>, vector<1x224xf32>
    %18 = vector.broadcast %17 : vector<1x224xf32> to vector<448x224xf32>
    %19 = arith.addf %16, %18 : vector<448x224xf32>
    %cst_14 = arith.constant 0.000000e+00 : f32
    %20 = vector.broadcast %cst_14 : f32 to vector<448x224xf32>
    %21 = arith.maximumf %19, %20 : vector<448x224xf32>
    %22 = vector.extract_strided_slice %21 {offsets = [0, 0], sizes = [16, 224], strides = [1, 1]} : vector<448x224xf32> to vector<16x224xf32>
    %23 = vector.extract_strided_slice %21 {offsets = [16, 0], sizes = [16, 224], strides = [1, 1]} : vector<448x224xf32> to vector<16x224xf32>
    %24 = arith.maximumf %22, %23 : vector<16x224xf32>
    %25 = arith.truncf %24 : vector<16x224xf32> to vector<16x224xbf16>
    %c0_15 = arith.constant 0 : index
    %c0_16 = arith.constant 0 : index
    %26 = vector.load %arg13[%c0_15, %c0_16] : memref<224x224xbf16, #tpu.memory_space<vmem>>, vector<16x224xbf16>
    tpu.vector_store %arg13[%c0_15, %c0_16], %25 {strides = array<i32>} : memref<224x224xbf16, #tpu.memory_space<vmem>>, vector<16x224xbf16>,
    %27 = vector.extract_strided_slice %21 {offsets = [32, 0], sizes = [16, 224], strides = [1, 1]} : vector<448x224xf32> to vector<16x224xf32>
    %28 = vector.extract_strided_slice %21 {offsets = [48, 0], sizes = [16, 224], strides = [1, 1]} : vector<448x224xf32> to vector<16x224xf32>
    %29 = arith.maximumf %27, %28 : vector<16x224xf32>
    %30 = arith.truncf %29 : vector<16x224xf32> to vector<16x224xbf16>
    %c16_17 = arith.constant 16 : index
    %c0_18 = arith.constant 0 : index
    %31 = vector.load %arg13[%c16_17, %c0_18] : memref<224x224xbf16, #tpu.memory_space<vmem>>, vector<16x224xbf16>
    tpu.vector_store %arg13[%c16_17, %c0_18], %30 {strides = array<i32>} : memref<224x224xbf16, #tpu.memory_space<vmem>>, vector<16x224xbf16>,
    %32 = vector.extract_strided_slice %21 {offsets = [64, 0], sizes = [16, 224], strides = [1, 1]} : vector<448x224xf32> to vector<16x224xf32>
    %33 = vector.extract_strided_slice %21 {offsets = [80, 0], sizes = [16, 224], strides = [1, 1]} : vector<448x224xf32> to vector<16x224xf32>
    %34 = arith.maximumf %32, %33 : vector<16x224xf32>
    %35 = arith.truncf %34 : vector<16x224xf32> to vector<16x224xbf16>
    %c32_19 = arith.constant 32 : index
    %c0_20 = arith.constant 0 : index
    %36 = vector.load %arg13[%c32_19, %c0_20] : memref<224x224xbf16, #tpu.memory_space<vmem>>, vector<16x224xbf16>
    tpu.vector_store %arg13[%c32_19, %c0_20], %35 {strides = array<i32>} : memref<224x224xbf16, #tpu.memory_space<vmem>>, vector<16x224xbf16>,
    %37 = vector.extract_strided_slice %21 {offsets = [96, 0], sizes = [16, 224], strides = [1, 1]} : vector<448x224xf32> to vector<16x224xf32>
    %38 = vector.extract_strided_slice %21 {offsets = [112, 0], sizes = [16, 224], strides = [1, 1]} : vector<448x224xf32> to vector<16x224xf32>
    %39 = arith.maximumf %37, %38 : vector<16x224xf32>
    %40 = arith.truncf %39 : vector<16x224xf32> to vector<16x224xbf16>
    %c48 = arith.constant 48 : index
    %c0_21 = arith.constant 0 : index
    %41 = vector.load %arg13[%c48, %c0_21] : memref<224x224xbf16, #tpu.memory_space<vmem>>, vector<16x224xbf16>
    tpu.vector_store %arg13[%c48, %c0_21], %40 {strides = array<i32>} : memref<224x224xbf16, #tpu.memory_space<vmem>>, vector<16x224xbf16>,
    %42 = vector.extract_strided_slice %21 {offsets = [128, 0], sizes = [16, 224], strides = [1, 1]} : vector<448x224xf32> to vector<16x224xf32>
    %43 = vector.extract_strided_slice %21 {offsets = [144, 0], sizes = [16, 224], strides = [1, 1]} : vector<448x224xf32> to vector<16x224xf32>
    %44 = arith.maximumf %42, %43 : vector<16x224xf32>
    %45 = arith.truncf %44 : vector<16x224xf32> to vector<16x224xbf16>
    %c64 = arith.constant 64 : index
    %c0_22 = arith.constant 0 : index
    %46 = vector.load %arg13[%c64, %c0_22] : memref<224x224xbf16, #tpu.memory_space<vmem>>, vector<16x224xbf16>
    tpu.vector_store %arg13[%c64, %c0_22], %45 {strides = array<i32>} : memref<224x224xbf16, #tpu.memory_space<vmem>>, vector<16x224xbf16>,
    %47 = vector.extract_strided_slice %21 {offsets = [160, 0], sizes = [16, 224], strides = [1, 1]} : vector<448x224xf32> to vector<16x224xf32>
    %48 = vector.extract_strided_slice %21 {offsets = [176, 0], sizes = [16, 224], strides = [1, 1]} : vector<448x224xf32> to vector<16x224xf32>
    %49 = arith.maximumf %47, %48 : vector<16x224xf32>
    %50 = arith.truncf %49 : vector<16x224xf32> to vector<16x224xbf16>
    %c80 = arith.constant 80 : index
    %c0_23 = arith.constant 0 : index
    %51 = vector.load %arg13[%c80, %c0_23] : memref<224x224xbf16, #tpu.memory_space<vmem>>, vector<16x224xbf16>
    tpu.vector_store %arg13[%c80, %c0_23], %50 {strides = array<i32>} : memref<224x224xbf16, #tpu.memory_space<vmem>>, vector<16x224xbf16>,
    %52 = vector.extract_strided_slice %21 {offsets = [192, 0], sizes = [16, 224], strides = [1, 1]} : vector<448x224xf32> to vector<16x224xf32>
    %53 = vector.extract_strided_slice %21 {offsets = [208, 0], sizes = [16, 224], strides = [1, 1]} : vector<448x224xf32> to vector<16x224xf32>
    %54 = arith.maximumf %52, %53 : vector<16x224xf32>
    %55 = arith.truncf %54 : vector<16x224xf32> to vector<16x224xbf16>
    %c96 = arith.constant 96 : index
    %c0_24 = arith.constant 0 : index
    %56 = vector.load %arg13[%c96, %c0_24] : memref<224x224xbf16, #tpu.memory_space<vmem>>, vector<16x224xbf16>
    tpu.vector_store %arg13[%c96, %c0_24], %55 {strides = array<i32>} : memref<224x224xbf16, #tpu.memory_space<vmem>>, vector<16x224xbf16>,
    %57 = vector.extract_strided_slice %21 {offsets = [224, 0], sizes = [16, 224], strides = [1, 1]} : vector<448x224xf32> to vector<16x224xf32>
    %58 = vector.extract_strided_slice %21 {offsets = [240, 0], sizes = [16, 224], strides = [1, 1]} : vector<448x224xf32> to vector<16x224xf32>
    %59 = arith.maximumf %57, %58 : vector<16x224xf32>
    %60 = arith.truncf %59 : vector<16x224xf32> to vector<16x224xbf16>
    %c112 = arith.constant 112 : index
    %c0_25 = arith.constant 0 : index
    %61 = vector.load %arg13[%c112, %c0_25] : memref<224x224xbf16, #tpu.memory_space<vmem>>, vector<16x224xbf16>
    tpu.vector_store %arg13[%c112, %c0_25], %60 {strides = array<i32>} : memref<224x224xbf16, #tpu.memory_space<vmem>>, vector<16x224xbf16>,
    %62 = vector.extract_strided_slice %21 {offsets = [256, 0], sizes = [16, 224], strides = [1, 1]} : vector<448x224xf32> to vector<16x224xf32>
    %63 = vector.extract_strided_slice %21 {offsets = [272, 0], sizes = [16, 224], strides = [1, 1]} : vector<448x224xf32> to vector<16x224xf32>
    %64 = arith.maximumf %62, %63 : vector<16x224xf32>
    %65 = arith.truncf %64 : vector<16x224xf32> to vector<16x224xbf16>
    %c128 = arith.constant 128 : index
    %c0_26 = arith.constant 0 : index
    %66 = vector.load %arg13[%c128, %c0_26] : memref<224x224xbf16, #tpu.memory_space<vmem>>, vector<16x224xbf16>
    tpu.vector_store %arg13[%c128, %c0_26], %65 {strides = array<i32>} : memref<224x224xbf16, #tpu.memory_space<vmem>>, vector<16x224xbf16>,
    %67 = vector.extract_strided_slice %21 {offsets = [288, 0], sizes = [16, 224], strides = [1, 1]} : vector<448x224xf32> to vector<16x224xf32>
    %68 = vector.extract_strided_slice %21 {offsets = [304, 0], sizes = [16, 224], strides = [1, 1]} : vector<448x224xf32> to vector<16x224xf32>
    %69 = arith.maximumf %67, %68 : vector<16x224xf32>
    %70 = arith.truncf %69 : vector<16x224xf32> to vector<16x224xbf16>
    %c144 = arith.constant 144 : index
    %c0_27 = arith.constant 0 : index
    %71 = vector.load %arg13[%c144, %c0_27] : memref<224x224xbf16, #tpu.memory_space<vmem>>, vector<16x224xbf16>
    tpu.vector_store %arg13[%c144, %c0_27], %70 {strides = array<i32>} : memref<224x224xbf16, #tpu.memory_space<vmem>>, vector<16x224xbf16>,
    %72 = vector.extract_strided_slice %21 {offsets = [320, 0], sizes = [16, 224], strides = [1, 1]} : vector<448x224xf32> to vector<16x224xf32>
    %73 = vector.extract_strided_slice %21 {offsets = [336, 0], sizes = [16, 224], strides = [1, 1]} : vector<448x224xf32> to vector<16x224xf32>
    %74 = arith.maximumf %72, %73 : vector<16x224xf32>
    %75 = arith.truncf %74 : vector<16x224xf32> to vector<16x224xbf16>
    %c160 = arith.constant 160 : index
    %c0_28 = arith.constant 0 : index
    %76 = vector.load %arg13[%c160, %c0_28] : memref<224x224xbf16, #tpu.memory_space<vmem>>, vector<16x224xbf16>
    tpu.vector_store %arg13[%c160, %c0_28], %75 {strides = array<i32>} : memref<224x224xbf16, #tpu.memory_space<vmem>>, vector<16x224xbf16>,
    %77 = vector.extract_strided_slice %21 {offsets = [352, 0], sizes = [16, 224], strides = [1, 1]} : vector<448x224xf32> to vector<16x224xf32>
    %78 = vector.extract_strided_slice %21 {offsets = [368, 0], sizes = [16, 224], strides = [1, 1]} : vector<448x224xf32> to vector<16x224xf32>
    %79 = arith.maximumf %77, %78 : vector<16x224xf32>
    %80 = arith.truncf %79 : vector<16x224xf32> to vector<16x224xbf16>
    %c176 = arith.constant 176 : index
    %c0_29 = arith.constant 0 : index
    %81 = vector.load %arg13[%c176, %c0_29] : memref<224x224xbf16, #tpu.memory_space<vmem>>, vector<16x224xbf16>
    tpu.vector_store %arg13[%c176, %c0_29], %80 {strides = array<i32>} : memref<224x224xbf16, #tpu.memory_space<vmem>>, vector<16x224xbf16>,
    %82 = vector.extract_strided_slice %21 {offsets = [384, 0], sizes = [16, 224], strides = [1, 1]} : vector<448x224xf32> to vector<16x224xf32>
    %83 = vector.extract_strided_slice %21 {offsets = [400, 0], sizes = [16, 224], strides = [1, 1]} : vector<448x224xf32> to vector<16x224xf32>
    %84 = arith.maximumf %82, %83 : vector<16x224xf32>
    %85 = arith.truncf %84 : vector<16x224xf32> to vector<16x224xbf16>
    %c192 = arith.constant 192 : index
    %c0_30 = arith.constant 0 : index
    %86 = vector.load %arg13[%c192, %c0_30] : memref<224x224xbf16, #tpu.memory_space<vmem>>, vector<16x224xbf16>
    tpu.vector_store %arg13[%c192, %c0_30], %85 {strides = array<i32>} : memref<224x224xbf16, #tpu.memory_space<vmem>>, vector<16x224xbf16>,
    %87 = vector.extract_strided_slice %21 {offsets = [416, 0], sizes = [16, 224], strides = [1, 1]} : vector<448x224xf32> to vector<16x224xf32>
    %88 = vector.extract_strided_slice %21 {offsets = [432, 0], sizes = [16, 224], strides = [1, 1]} : vector<448x224xf32> to vector<16x224xf32>
    %89 = arith.maximumf %87, %88 : vector<16x224xf32>
    %90 = arith.truncf %89 : vector<16x224xf32> to vector<16x224xbf16>
    %c208 = arith.constant 208 : index
    %c0_31 = arith.constant 0 : index
    %91 = vector.load %arg13[%c208, %c0_31] : memref<224x224xbf16, #tpu.memory_space<vmem>>, vector<16x224xbf16>
    tpu.vector_store %arg13[%c208, %c0_31], %90 {strides = array<i32>} : memref<224x224xbf16, #tpu.memory_space<vmem>>, vector<16x224xbf16>,
    %c0_32 = arith.constant 0 : index
    %c0_33 = arith.constant 0 : index
    %92 = vector.load %arg13[%c0_32, %c0_33] : memref<224x224xbf16, #tpu.memory_space<vmem>>, vector<224x224xbf16>
    %c0_34 = arith.constant 0 : index
    %c0_35 = arith.constant 0 : index
    %c0_36 = arith.constant 0 : index
    %93 = vector.load %arg4[%c0_34, %c0_35, %c0_36] : memref<2x224x112xbf16, #tpu.memory_space<vmem>>, vector<1x224x112xbf16>
    %94 = vector.shape_cast %93 : vector<1x224x112xbf16> to vector<224x112xbf16>
    %cst_37 = arith.constant dense<0.000000e+00> : vector<224x112xf32>
    %95 = tpu.matmul %92, %94, %cst_37 {dimension_numbers = #tpu.dot_dimension_numbers<[1], [0], [0], [1], [0, 0, 1, 1], [], []>} : vector<224x224xbf16>, vector<224x112xbf16>, vector<224x112xf32> -> vector<224x112xf32>
    %c1_38 = arith.constant 1 : index
    %c0_39 = arith.constant 0 : index
    %c0_40 = arith.constant 0 : index
    %96 = vector.load %arg4[%c1_38, %c0_39, %c0_40] : memref<2x224x112xbf16, #tpu.memory_space<vmem>>, vector<1x224x112xbf16>
    %97 = vector.shape_cast %96 : vector<1x224x112xbf16> to vector<224x112xbf16>
    %cst_41 = arith.constant dense<0.000000e+00> : vector<224x112xf32>
    %98 = tpu.matmul %92, %97, %cst_41 {dimension_numbers = #tpu.dot_dimension_numbers<[1], [0], [0], [1], [0, 0, 1, 1], [], []>} : vector<224x224xbf16>, vector<224x112xbf16>, vector<224x112xf32> -> vector<224x112xf32>
    %99 = arith.maximumf %95, %98 : vector<224x112xf32>
    %cst_42 = arith.constant 0.000000e+00 : bf16
    %100 = vector.broadcast %cst_42 : bf16 to vector<16x112xbf16>
    %c0_43 = arith.constant 0 : index
    %c0_44 = arith.constant 0 : index
    %101 = vector.load %arg14[%c0_43, %c0_44] : memref<256x112xbf16, #tpu.memory_space<vmem>>, vector<16x112xbf16>
    tpu.vector_store %arg14[%c0_43, %c0_44], %100 {strides = array<i32>} : memref<256x112xbf16, #tpu.memory_space<vmem>>, vector<16x112xbf16>,
    %c240 = arith.constant 240 : index
    %c0_45 = arith.constant 0 : index
    %102 = vector.load %arg14[%c240, %c0_45] : memref<256x112xbf16, #tpu.memory_space<vmem>>, vector<16x112xbf16>
    tpu.vector_store %arg14[%c240, %c0_45], %100 {strides = array<i32>} : memref<256x112xbf16, #tpu.memory_space<vmem>>, vector<16x112xbf16>,
    %103 = arith.truncf %99 : vector<224x112xf32> to vector<224x112xbf16>
    %c16_46 = arith.constant 16 : index
    %c0_47 = arith.constant 0 : index
    %104 = vector.load %arg14[%c16_46, %c0_47] : memref<256x112xbf16, #tpu.memory_space<vmem>>, vector<224x112xbf16>
    tpu.vector_store %arg14[%c16_46, %c0_47], %103 {strides = array<i32>} : memref<256x112xbf16, #tpu.memory_space<vmem>>, vector<224x112xbf16>,
    %c0_48 = arith.constant 0 : index
    %c0_49 = arith.constant 0 : index
    %105 = vector.load %arg14[%c0_48, %c0_49] : memref<256x112xbf16, #tpu.memory_space<vmem>>, vector<224x112xbf16>
    %c0_50 = arith.constant 0 : index
    %c0_51 = arith.constant 0 : index
    %c0_52 = arith.constant 0 : index
    %106 = vector.load %arg5[%c0_50, %c0_51, %c0_52] : memref<3x112x224xbf16, #tpu.memory_space<vmem>>, vector<1x112x224xbf16>
    %107 = vector.shape_cast %106 : vector<1x112x224xbf16> to vector<112x224xbf16>
    %cst_53 = arith.constant dense<0.000000e+00> : vector<224x224xf32>
    %108 = tpu.matmul %105, %107, %cst_53 {dimension_numbers = #tpu.dot_dimension_numbers<[1], [0], [0], [1], [0, 0, 1, 1], [], []>} : vector<224x112xbf16>, vector<112x224xbf16>, vector<224x224xf32> -> vector<224x224xf32>
    %c16_54 = arith.constant 16 : index
    %c0_55 = arith.constant 0 : index
    %109 = vector.load %arg14[%c16_54, %c0_55] : memref<256x112xbf16, #tpu.memory_space<vmem>>, vector<224x112xbf16>
    %c1_56 = arith.constant 1 : index
    %c0_57 = arith.constant 0 : index
    %c0_58 = arith.constant 0 : index
    %110 = vector.load %arg5[%c1_56, %c0_57, %c0_58] : memref<3x112x224xbf16, #tpu.memory_space<vmem>>, vector<1x112x224xbf16>
    %111 = vector.shape_cast %110 : vector<1x112x224xbf16> to vector<112x224xbf16>
    %cst_59 = arith.constant dense<0.000000e+00> : vector<224x224xf32>
    %112 = tpu.matmul %109, %111, %cst_59 {dimension_numbers = #tpu.dot_dimension_numbers<[1], [0], [0], [1], [0, 0, 1, 1], [], []>} : vector<224x112xbf16>, vector<112x224xbf16>, vector<224x224xf32> -> vector<224x224xf32>
    %113 = arith.addf %108, %112 : vector<224x224xf32>
    %c32_60 = arith.constant 32 : index
    %c0_61 = arith.constant 0 : index
    %114 = vector.load %arg14[%c32_60, %c0_61] : memref<256x112xbf16, #tpu.memory_space<vmem>>, vector<224x112xbf16>
    %c2_62 = arith.constant 2 : index
    %c0_63 = arith.constant 0 : index
    %c0_64 = arith.constant 0 : index
    %115 = vector.load %arg5[%c2_62, %c0_63, %c0_64] : memref<3x112x224xbf16, #tpu.memory_space<vmem>>, vector<1x112x224xbf16>
    %116 = vector.shape_cast %115 : vector<1x112x224xbf16> to vector<112x224xbf16>
    %cst_65 = arith.constant dense<0.000000e+00> : vector<224x224xf32>
    %117 = tpu.matmul %114, %116, %cst_65 {dimension_numbers = #tpu.dot_dimension_numbers<[1], [0], [0], [1], [0, 0, 1, 1], [], []>} : vector<224x112xbf16>, vector<112x224xbf16>, vector<224x224xf32> -> vector<224x224xf32>
    %118 = arith.addf %113, %117 : vector<224x224xf32>
    %c0_66 = arith.constant 0 : index
    %c0_67 = arith.constant 0 : index
    %119 = vector.load %arg6[%c0_66, %c0_67] : memref<1x224xf32, #tpu.memory_space<vmem>>, vector<1x224xf32>
    %120 = vector.broadcast %119 : vector<1x224xf32> to vector<224x224xf32>
    %121 = arith.addf %118, %120 : vector<224x224xf32>
    %cst_68 = arith.constant 0.000000e+00 : f32
    %122 = vector.broadcast %cst_68 : f32 to vector<224x224xf32>
    %123 = arith.maximumf %121, %122 : vector<224x224xf32>
    %124 = vector.extract_strided_slice %123 {offsets = [0, 0], sizes = [16, 224], strides = [1, 1]} : vector<224x224xf32> to vector<16x224xf32>
    %125 = vector.extract_strided_slice %123 {offsets = [16, 0], sizes = [16, 224], strides = [1, 1]} : vector<224x224xf32> to vector<16x224xf32>
    %126 = arith.maximumf %124, %125 : vector<16x224xf32>
    %127 = arith.truncf %126 : vector<16x224xf32> to vector<16x224xbf16>
    %c0_69 = arith.constant 0 : index
    %c0_70 = arith.constant 0 : index
    %128 = vector.load %arg15[%c0_69, %c0_70] : memref<112x224xbf16, #tpu.memory_space<vmem>>, vector<16x224xbf16>
    tpu.vector_store %arg15[%c0_69, %c0_70], %127 {strides = array<i32>} : memref<112x224xbf16, #tpu.memory_space<vmem>>, vector<16x224xbf16>,
    %129 = vector.extract_strided_slice %123 {offsets = [32, 0], sizes = [16, 224], strides = [1, 1]} : vector<224x224xf32> to vector<16x224xf32>
    %130 = vector.extract_strided_slice %123 {offsets = [48, 0], sizes = [16, 224], strides = [1, 1]} : vector<224x224xf32> to vector<16x224xf32>
    %131 = arith.maximumf %129, %130 : vector<16x224xf32>
    %132 = arith.truncf %131 : vector<16x224xf32> to vector<16x224xbf16>
    %c16_71 = arith.constant 16 : index
    %c0_72 = arith.constant 0 : index
    %133 = vector.load %arg15[%c16_71, %c0_72] : memref<112x224xbf16, #tpu.memory_space<vmem>>, vector<16x224xbf16>
    tpu.vector_store %arg15[%c16_71, %c0_72], %132 {strides = array<i32>} : memref<112x224xbf16, #tpu.memory_space<vmem>>, vector<16x224xbf16>,
    %134 = vector.extract_strided_slice %123 {offsets = [64, 0], sizes = [16, 224], strides = [1, 1]} : vector<224x224xf32> to vector<16x224xf32>
    %135 = vector.extract_strided_slice %123 {offsets = [80, 0], sizes = [16, 224], strides = [1, 1]} : vector<224x224xf32> to vector<16x224xf32>
    %136 = arith.maximumf %134, %135 : vector<16x224xf32>
    %137 = arith.truncf %136 : vector<16x224xf32> to vector<16x224xbf16>
    %c32_73 = arith.constant 32 : index
    %c0_74 = arith.constant 0 : index
    %138 = vector.load %arg15[%c32_73, %c0_74] : memref<112x224xbf16, #tpu.memory_space<vmem>>, vector<16x224xbf16>
    tpu.vector_store %arg15[%c32_73, %c0_74], %137 {strides = array<i32>} : memref<112x224xbf16, #tpu.memory_space<vmem>>, vector<16x224xbf16>,
    %139 = vector.extract_strided_slice %123 {offsets = [96, 0], sizes = [16, 224], strides = [1, 1]} : vector<224x224xf32> to vector<16x224xf32>
    %140 = vector.extract_strided_slice %123 {offsets = [112, 0], sizes = [16, 224], strides = [1, 1]} : vector<224x224xf32> to vector<16x224xf32>
    %141 = arith.maximumf %139, %140 : vector<16x224xf32>
    %142 = arith.truncf %141 : vector<16x224xf32> to vector<16x224xbf16>
    %c48_75 = arith.constant 48 : index
    %c0_76 = arith.constant 0 : index
    %143 = vector.load %arg15[%c48_75, %c0_76] : memref<112x224xbf16, #tpu.memory_space<vmem>>, vector<16x224xbf16>
    tpu.vector_store %arg15[%c48_75, %c0_76], %142 {strides = array<i32>} : memref<112x224xbf16, #tpu.memory_space<vmem>>, vector<16x224xbf16>,
    %144 = vector.extract_strided_slice %123 {offsets = [128, 0], sizes = [16, 224], strides = [1, 1]} : vector<224x224xf32> to vector<16x224xf32>
    %145 = vector.extract_strided_slice %123 {offsets = [144, 0], sizes = [16, 224], strides = [1, 1]} : vector<224x224xf32> to vector<16x224xf32>
    %146 = arith.maximumf %144, %145 : vector<16x224xf32>
    %147 = arith.truncf %146 : vector<16x224xf32> to vector<16x224xbf16>
    %c64_77 = arith.constant 64 : index
    %c0_78 = arith.constant 0 : index
    %148 = vector.load %arg15[%c64_77, %c0_78] : memref<112x224xbf16, #tpu.memory_space<vmem>>, vector<16x224xbf16>
    tpu.vector_store %arg15[%c64_77, %c0_78], %147 {strides = array<i32>} : memref<112x224xbf16, #tpu.memory_space<vmem>>, vector<16x224xbf16>,
    %149 = vector.extract_strided_slice %123 {offsets = [160, 0], sizes = [16, 224], strides = [1, 1]} : vector<224x224xf32> to vector<16x224xf32>
    %150 = vector.extract_strided_slice %123 {offsets = [176, 0], sizes = [16, 224], strides = [1, 1]} : vector<224x224xf32> to vector<16x224xf32>
    %151 = arith.maximumf %149, %150 : vector<16x224xf32>
    %152 = arith.truncf %151 : vector<16x224xf32> to vector<16x224xbf16>
    %c80_79 = arith.constant 80 : index
    %c0_80 = arith.constant 0 : index
    %153 = vector.load %arg15[%c80_79, %c0_80] : memref<112x224xbf16, #tpu.memory_space<vmem>>, vector<16x224xbf16>
    tpu.vector_store %arg15[%c80_79, %c0_80], %152 {strides = array<i32>} : memref<112x224xbf16, #tpu.memory_space<vmem>>, vector<16x224xbf16>,
    %154 = vector.extract_strided_slice %123 {offsets = [192, 0], sizes = [16, 224], strides = [1, 1]} : vector<224x224xf32> to vector<16x224xf32>
    %155 = vector.extract_strided_slice %123 {offsets = [208, 0], sizes = [16, 224], strides = [1, 1]} : vector<224x224xf32> to vector<16x224xf32>
    %156 = arith.maximumf %154, %155 : vector<16x224xf32>
    %157 = arith.truncf %156 : vector<16x224xf32> to vector<16x224xbf16>
    %c96_81 = arith.constant 96 : index
    %c0_82 = arith.constant 0 : index
    %158 = vector.load %arg15[%c96_81, %c0_82] : memref<112x224xbf16, #tpu.memory_space<vmem>>, vector<16x224xbf16>
    tpu.vector_store %arg15[%c96_81, %c0_82], %157 {strides = array<i32>} : memref<112x224xbf16, #tpu.memory_space<vmem>>, vector<16x224xbf16>,
    %c0_83 = arith.constant 0 : index
    %c0_84 = arith.constant 0 : index
    %159 = vector.load %arg15[%c0_83, %c0_84] : memref<112x224xbf16, #tpu.memory_space<vmem>>, vector<112x224xbf16>
    %c0_85 = arith.constant 0 : index
    %c0_86 = arith.constant 0 : index
    %c0_87 = arith.constant 0 : index
    %160 = vector.load %arg7[%c0_85, %c0_86, %c0_87] : memref<2x224x112xbf16, #tpu.memory_space<vmem>>, vector<1x224x112xbf16>
    %161 = vector.shape_cast %160 : vector<1x224x112xbf16> to vector<224x112xbf16>
    %cst_88 = arith.constant dense<0.000000e+00> : vector<112x112xf32>
    %162 = tpu.matmul %159, %161, %cst_88 {dimension_numbers = #tpu.dot_dimension_numbers<[1], [0], [0], [1], [0, 0, 1, 1], [], []>} : vector<112x224xbf16>, vector<224x112xbf16>, vector<112x112xf32> -> vector<112x112xf32>
    %c1_89 = arith.constant 1 : index
    %c0_90 = arith.constant 0 : index
    %c0_91 = arith.constant 0 : index
    %163 = vector.load %arg7[%c1_89, %c0_90, %c0_91] : memref<2x224x112xbf16, #tpu.memory_space<vmem>>, vector<1x224x112xbf16>
    %164 = vector.shape_cast %163 : vector<1x224x112xbf16> to vector<224x112xbf16>
    %cst_92 = arith.constant dense<0.000000e+00> : vector<112x112xf32>
    %165 = tpu.matmul %159, %164, %cst_92 {dimension_numbers = #tpu.dot_dimension_numbers<[1], [0], [0], [1], [0, 0, 1, 1], [], []>} : vector<112x224xbf16>, vector<224x112xbf16>, vector<112x112xf32> -> vector<112x112xf32>
    %166 = arith.maximumf %162, %165 : vector<112x112xf32>
    %167 = vector.extract_strided_slice %166 {offsets = [0, 0], sizes = [16, 112], strides = [1, 1]} : vector<112x112xf32> to vector<16x112xf32>
    %168 = arith.truncf %167 : vector<16x112xf32> to vector<16x112xbf16>
    %c0_93 = arith.constant 0 : index
    %c0_94 = arith.constant 0 : index
    %169 = vector.load %arg16[%c0_93, %c0_94] : memref<16x784xbf16, #tpu.memory_space<vmem>>, vector<16x112xbf16>
    tpu.vector_store %arg16[%c0_93, %c0_94], %168 {strides = array<i32>} : memref<16x784xbf16, #tpu.memory_space<vmem>>, vector<16x112xbf16>,
    %170 = vector.extract_strided_slice %166 {offsets = [16, 0], sizes = [16, 112], strides = [1, 1]} : vector<112x112xf32> to vector<16x112xf32>
    %171 = arith.truncf %170 : vector<16x112xf32> to vector<16x112xbf16>
    %c0_95 = arith.constant 0 : index
    %c112_96 = arith.constant 112 : index
    %172 = vector.load %arg16[%c0_95, %c112_96] : memref<16x784xbf16, #tpu.memory_space<vmem>>, vector<16x112xbf16>
    tpu.vector_store %arg16[%c0_95, %c112_96], %171 {strides = array<i32>} : memref<16x784xbf16, #tpu.memory_space<vmem>>, vector<16x112xbf16>,
    %173 = vector.extract_strided_slice %166 {offsets = [32, 0], sizes = [16, 112], strides = [1, 1]} : vector<112x112xf32> to vector<16x112xf32>
    %174 = arith.truncf %173 : vector<16x112xf32> to vector<16x112xbf16>
    %c0_97 = arith.constant 0 : index
    %c224 = arith.constant 224 : index
    %175 = vector.load %arg16[%c0_97, %c224] : memref<16x784xbf16, #tpu.memory_space<vmem>>, vector<16x112xbf16>
    tpu.vector_store %arg16[%c0_97, %c224], %174 {strides = array<i32>} : memref<16x784xbf16, #tpu.memory_space<vmem>>, vector<16x112xbf16>,
    %176 = vector.extract_strided_slice %166 {offsets = [48, 0], sizes = [16, 112], strides = [1, 1]} : vector<112x112xf32> to vector<16x112xf32>
    %177 = arith.truncf %176 : vector<16x112xf32> to vector<16x112xbf16>
    %c0_98 = arith.constant 0 : index
    %c336 = arith.constant 336 : index
    %178 = vector.load %arg16[%c0_98, %c336] : memref<16x784xbf16, #tpu.memory_space<vmem>>, vector<16x112xbf16>
    tpu.vector_store %arg16[%c0_98, %c336], %177 {strides = array<i32>} : memref<16x784xbf16, #tpu.memory_space<vmem>>, vector<16x112xbf16>,
    %179 = vector.extract_strided_slice %166 {offsets = [64, 0], sizes = [16, 112], strides = [1, 1]} : vector<112x112xf32> to vector<16x112xf32>
    %180 = arith.truncf %179 : vector<16x112xf32> to vector<16x112xbf16>
    %c0_99 = arith.constant 0 : index
    %c448 = arith.constant 448 : index
    %181 = vector.load %arg16[%c0_99, %c448] : memref<16x784xbf16, #tpu.memory_space<vmem>>, vector<16x112xbf16>
    tpu.vector_store %arg16[%c0_99, %c448], %180 {strides = array<i32>} : memref<16x784xbf16, #tpu.memory_space<vmem>>, vector<16x112xbf16>,
    %182 = vector.extract_strided_slice %166 {offsets = [80, 0], sizes = [16, 112], strides = [1, 1]} : vector<112x112xf32> to vector<16x112xf32>
    %183 = arith.truncf %182 : vector<16x112xf32> to vector<16x112xbf16>
    %c0_100 = arith.constant 0 : index
    %c560 = arith.constant 560 : index
    %184 = vector.load %arg16[%c0_100, %c560] : memref<16x784xbf16, #tpu.memory_space<vmem>>, vector<16x112xbf16>
    tpu.vector_store %arg16[%c0_100, %c560], %183 {strides = array<i32>} : memref<16x784xbf16, #tpu.memory_space<vmem>>, vector<16x112xbf16>,
    %185 = vector.extract_strided_slice %166 {offsets = [96, 0], sizes = [16, 112], strides = [1, 1]} : vector<112x112xf32> to vector<16x112xf32>
    %186 = arith.truncf %185 : vector<16x112xf32> to vector<16x112xbf16>
    %c0_101 = arith.constant 0 : index
    %c672 = arith.constant 672 : index
    %187 = vector.load %arg16[%c0_101, %c672] : memref<16x784xbf16, #tpu.memory_space<vmem>>, vector<16x112xbf16>
    tpu.vector_store %arg16[%c0_101, %c672], %186 {strides = array<i32>} : memref<16x784xbf16, #tpu.memory_space<vmem>>, vector<16x112xbf16>,
    %c0_102 = arith.constant 0 : index
    %c0_103 = arith.constant 0 : index
    %188 = vector.load %arg16[%c0_102, %c0_103] : memref<16x784xbf16, #tpu.memory_space<vmem>>, vector<16x784xbf16>
    %c0_104 = arith.constant 0 : index
    %c0_105 = arith.constant 0 : index
    %189 = vector.load %arg8[%c0_104, %c0_105] : memref<784x128xbf16, #tpu.memory_space<vmem>>, vector<784x128xbf16>
    %cst_106 = arith.constant dense<0.000000e+00> : vector<16x128xf32>
    %190 = tpu.matmul %188, %189, %cst_106 {dimension_numbers = #tpu.dot_dimension_numbers<[1], [0], [0], [1], [0, 0, 1, 1], [], []>} : vector<16x784xbf16>, vector<784x128xbf16>, vector<16x128xf32> -> vector<16x128xf32>
    %c0_107 = arith.constant 0 : index
    %c0_108 = arith.constant 0 : index
    %191 = vector.load %arg9[%c0_107, %c0_108] : memref<1x128xf32, #tpu.memory_space<vmem>>, vector<1x128xf32>
    %192 = vector.broadcast %191 : vector<1x128xf32> to vector<16x128xf32>
    %193 = arith.addf %190, %192 : vector<16x128xf32>
    %cst_109 = arith.constant 0.000000e+00 : f32
    %194 = vector.broadcast %cst_109 : f32 to vector<16x128xf32>
    %195 = arith.maximumf %193, %194 : vector<16x128xf32>
    %196 = arith.truncf %195 : vector<16x128xf32> to vector<16x128xbf16>
    %c0_110 = arith.constant 0 : index
    %c0_111 = arith.constant 0 : index
    %197 = vector.load %arg10[%c0_110, %c0_111] : memref<128x128xbf16, #tpu.memory_space<vmem>>, vector<128x128xbf16>
    %cst_112 = arith.constant dense<0.000000e+00> : vector<16x128xf32>
    %198 = tpu.matmul %196, %197, %cst_112 {dimension_numbers = #tpu.dot_dimension_numbers<[1], [0], [0], [1], [0, 0, 1, 1], [], []>} : vector<16x128xbf16>, vector<128x128xbf16>, vector<16x128xf32> -> vector<16x128xf32>
    %c0_113 = arith.constant 0 : index
    %c0_114 = arith.constant 0 : index
    %199 = vector.load %arg11[%c0_113, %c0_114] : memref<1x128xf32, #tpu.memory_space<vmem>>, vector<1x128xf32>
    %200 = vector.broadcast %199 : vector<1x128xf32> to vector<16x128xf32>
    %201 = arith.addf %198, %200 : vector<16x128xf32>
    %c0_115 = arith.constant 0 : index
    %c0_116 = arith.constant 0 : index
    %202 = vector.load %arg12[%c0_115, %c0_116] : memref<16x128xf32, #tpu.memory_space<vmem>>, vector<16x128xf32>
    tpu.vector_store %arg12[%c0_115, %c0_116], %201 {strides = array<i32>} : memref<16x128xf32, #tpu.memory_space<vmem>>, vector<16x128xf32>,
    return
  }
  func.func @transform_0(%arg0: i32) -> (i32, i32) {
    %c0_i32 = arith.constant 0 : i32
    %c0_i32_0 = arith.constant 0 : i32
    return %arg0, %c0_i32 : i32, i32
  }
  func.func @transform_1(%arg0: i32) -> (i32, i32, i32) {
    %c0_i32 = arith.constant 0 : i32
    %c0_i32_0 = arith.constant 0 : i32
    %c0_i32_1 = arith.constant 0 : i32
    %c0_i32_2 = arith.constant 0 : i32
    return %c0_i32, %c0_i32_0, %c0_i32_1 : i32, i32, i32
  }
  func.func @transform_2(%arg0: i32) -> (i32, i32) {
    %c0_i32 = arith.constant 0 : i32
    %c0_i32_0 = arith.constant 0 : i32
    %c0_i32_1 = arith.constant 0 : i32
    return %c0_i32, %c0_i32_0 : i32, i32
  }
  func.func @transform_3(%arg0: i32) -> (i32, i32, i32) {
    %c0_i32 = arith.constant 0 : i32
    %c0_i32_0 = arith.constant 0 : i32
    %c0_i32_1 = arith.constant 0 : i32
    %c0_i32_2 = arith.constant 0 : i32
    return %c0_i32, %c0_i32_0, %c0_i32_1 : i32, i32, i32
  }
  func.func @transform_4(%arg0: i32) -> (i32, i32, i32) {
    %c0_i32 = arith.constant 0 : i32
    %c0_i32_0 = arith.constant 0 : i32
    %c0_i32_1 = arith.constant 0 : i32
    %c0_i32_2 = arith.constant 0 : i32
    return %c0_i32, %c0_i32_0, %c0_i32_1 : i32, i32, i32
  }
  func.func @transform_5(%arg0: i32) -> (i32, i32) {
    %c0_i32 = arith.constant 0 : i32
    %c0_i32_0 = arith.constant 0 : i32
    %c0_i32_1 = arith.constant 0 : i32
    return %c0_i32, %c0_i32_0 : i32, i32
  }
  func.func @transform_6(%arg0: i32) -> (i32, i32, i32) {
    %c0_i32 = arith.constant 0 : i32
    %c0_i32_0 = arith.constant 0 : i32
    %c0_i32_1 = arith.constant 0 : i32
    %c0_i32_2 = arith.constant 0 : i32
    return %c0_i32, %c0_i32_0, %c0_i32_1 : i32, i32, i32
  }
  func.func @transform_7(%arg0: i32) -> (i32, i32) {
    %c0_i32 = arith.constant 0 : i32
    %c0_i32_0 = arith.constant 0 : i32
    %c0_i32_1 = arith.constant 0 : i32
    return %c0_i32, %c0_i32_0 : i32, i32
  }
  func.func @transform_8(%arg0: i32) -> (i32, i32) {
    %c0_i32 = arith.constant 0 : i32
    %c0_i32_0 = arith.constant 0 : i32
    %c0_i32_1 = arith.constant 0 : i32
    return %c0_i32, %c0_i32_0 : i32, i32
  }
  func.func @transform_9(%arg0: i32) -> (i32, i32) {
    %c0_i32 = arith.constant 0 : i32
    %c0_i32_0 = arith.constant 0 : i32
    %c0_i32_1 = arith.constant 0 : i32
    return %c0_i32, %c0_i32_0 : i32, i32
  }
  func.func @transform_10(%arg0: i32) -> (i32, i32) {
    %c0_i32 = arith.constant 0 : i32
    %c0_i32_0 = arith.constant 0 : i32
    %c0_i32_1 = arith.constant 0 : i32
    return %c0_i32, %c0_i32_0 : i32, i32
  }
  func.func @transform_11(%arg0: i32) -> (i32, i32) {
    %c0_i32 = arith.constant 0 : i32
    %c0_i32_0 = arith.constant 0 : i32
    return %arg0, %c0_i32 : i32, i32
  }
}

</mosaic_0001>

<bundles_post_ra>
// kernel: cnn_forward.1
= control target key start
LH: loop header
LB: loop body
LE: loop exit
PB: predicated region body
PF: predicated region fallthrough
CT: control target
= control target key end

     0   :  { %16 = vsyncpa [#allocation7], 0  ;;  %s9276_s0 = inlined_call_operand.vmem [shape: f32[480,28], index: 0, kind: input, shape index: {}]   ;;  %s9277_s1 = inlined_call_operand.hbm [shape: bf16[3,28,224], index: 1, kind: input, shape index: {}]   ;;  %s9278_s2 = inlined_call_operand.vmem [shape: f32[1,224], index: 2, kind: input, shape index: {}]   ;;  %s9279_s3 = inlined_call_operand.vmem [shape: bf16[2,224,112], index: 3, kind: input, shape index: {}]   ;;  %s9280_s4 = inlined_call_operand.hbm [shape: bf16[3,112,224], index: 4, kind: input, shape index: {}]   ;;  %s9281_s5 = inlined_call_operand.vmem [shape: f32[1,224], index: 5, kind: input, shape index: {}]   ;;  %s9282_s6 = inlined_call_operand.hbm [shape: bf16[2,224,112], index: 6, kind: input, shape index: {}]   ;;  %s9283_s7 = inlined_call_operand.vmem [shape: bf16[784,128], index: 7, kind: input, shape index: {}]   ;;  %s9284_s8 = inlined_call_operand.vmem [shape: f32[1,128], index: 8, kind: input, shape index: {}]   ;;  %s9285_s9 = inlined_call_operand.hbm [shape: bf16[128,128], index: 9, kind: input, shape index: {}]   ;;  %s9286_s10 = inlined_call_operand.vmem [shape: f32[1,128], index: 10, kind: input, shape index: {}]   ;;  %s9287_s11 = inlined_call_operand.vmem [shape: f32[16,128], index: 11, kind: output, shape index: {}]  }
   0x1   :  { %17 = vsyncpa [#allocation9], 0 }
   0x2   :  { %18 = vsyncpa [#allocation12], 0  ;;  %s42_s19 = sshll.u32 %s9280_s4, 4  ;;  %s6734_s20 = smov [#allocation8]   ;;  %s43_s19 = int_to_ptr.hbm [resolvable:$true] %s42_s19 }
   0x3   :  { %s44_s21 = sshll.u32 %s6734_s20, 4  ;;  %s25_s24 = sshll.u32 %s9277_s1, 4  ;;  %s45_s21 = int_to_ptr.vmem [resolvable:$true] %s44_s21  ;;  %s26_s24 = int_to_ptr.hbm [resolvable:$true] %s25_s24 }
   0x4   :  { %s6735_s25 = smov 128   ;;  %s6736_s26 = smov 8  }
   0x5   :  { %50 = dma.hbm_to_vmem [thread:$0]  %s43_s19, 5376, %s45_s21, [#allocation9], %s6735_s25, %s6735_s25, %s6736_s26  }
   0x6   :  { %s6737_s27 = smov [#allocation6]   ;;  %s57_s12 = sshll.u32 %s9282_s6, 4  ;;  %s58_s12 = int_to_ptr.hbm [resolvable:$true] %s57_s12 }
   0x7   :  { %s27_s28 = sshll.u32 %s6737_s27, 4  ;;  %s6738_s4 = smov [#allocation10]   ;;  %s28_s28 = int_to_ptr.vmem [resolvable:$true] %s27_s28 }
   0x8   :  { %33 = dma.hbm_to_vmem [thread:$0]  %s26_s24, 1536, %s28_s28, [#allocation7], %s6735_s25, %s6735_s25, %s6736_s26  }
   0x9   :  { %s59_s13 = sshll.u32 %s6738_s4, 4  ;;  %s74_s1 = sshll.u32 %s9285_s9, 4  ;;  %s60_s13 = int_to_ptr.vmem [resolvable:$true] %s59_s13  ;;  %s75_s1 = int_to_ptr.hbm [resolvable:$true] %s74_s1 }
   0xa   :  { %s6739_s16 = smov 64   ;;  %s6740_s17 = smov 4  }
   0xb   :  { %65 = dma.hbm_to_vmem [thread:$0]  %s58_s12, 3584, %s60_s13, [#allocation9], %s6739_s16, %s6739_s16, %s6740_s17  }
   0xc   :  { %s6741_s18 = smov [#allocation11]  }
   0xd   :  { %s76_s19 = sshll.u32 %s6741_s18, 4  ;;  %s77_s19 = int_to_ptr.vmem [resolvable:$true] %s76_s19 }
   0xe   :  { %82 = dma.hbm_to_vmem [thread:$0]  %s75_s1, 1024, %s77_s19, [#allocation12], %s6739_s16, %s6739_s16, %s6740_s17  }
   0xf   :  { %6728 = dma.done.wait [#allocation7], 1536  }
  0x10   :  { %6729 = vsyncadd [#allocation7], 4294965760 }
  0x11   :  { %6730 = dma.done.wait [#allocation9], 8960  }
  0x12   :  { %6731 = vsyncadd [#allocation9], 4294958336 }
  0x13   :  { %6732 = dma.done.wait [#allocation12], 1024  }
  0x14   :  { %6733 = vsyncadd [#allocation12], 4294966272  ;;  %vm304_vm0 = vcmask 1045504   ;;  %v5078_v0 = vld [vmem:[#allocation6 + $0x30] sm:$0xf]  ;;  %v104_v16 = vld [vmem:[%s9276_s0 + $0x10] sm:$0xff] }
  0x15   :  { %v6378_v1 = vld [vmem:[#allocation6 + $0x34] sm:$0x30]  ;;  %v6377_v2 = vld [vmem:[#allocation6 + $0x34] sm:$0xf]  ;;  %v5080_v4 = vld [vmem:[#allocation6 + $0x38] sm:$0x30] }
  0x16   :  { %v5079_v3 = vor.u32 %v6378_v1, %v5078_v0  ;;  %v5150_v5 = vld [vmem:[#allocation6 + $0x10] sm:$0xf]  ;;  %v6374_v6 = vld [vmem:[#allocation6 + $0x14] sm:$0x30]  ;;  %v5083_v7 = vor.u32 %v6377_v2, %v5080_v4  ;;  %v6373_v9 = vld [vmem:[#allocation6 + $0x14] sm:$0xf] }
  0x17   :  { %v5151_v8 = vor.u32 %v6374_v6, %v5150_v5  ;;  %v5152_v10 = vld [vmem:[#allocation6 + $0x18] sm:$0x30]  ;;  %v5070_v11 = vld [vmem:[#allocation6 + $0x20] sm:$0xf]  ;;  %v6376_v14 = vld [vmem:[#allocation6 + $0x24] sm:$0xf0] }
  0x18   :  { %v306_v12 = vsel %vm304_vm0, %v5079_v3, 0  ;;  %v5155_v13 = vor.u32 %v6373_v9, %v5152_v10  ;;  %v6375_v15 = vld [vmem:[#allocation6 + $0x24] sm:$0xf]  ;;  %v309_v17 = vsel %vm304_vm0, %v5083_v7, 0  ;;  %v5071_v19 = vor.u32 %v6376_v14, %v5070_v11  ;;  %v5072_v20 = vld [vmem:[#allocation6 + $0x28] sm:$0xf0] }
  0x19   :  { %317 = vmatpush.bf16.msra.mxu0 %v306_v12  ;;  %v631_v18 = vsel %vm304_vm0, %v5151_v8, 0  ;;  %v5142_v21 = vld [vmem:[#allocation6] sm:$0xf]  ;;  %466 = vmatpush.bf16.msra.mxu1 %v309_v17  ;;  %v5075_v23 = vor.u32 %v6375_v15, %v5072_v20  ;;  %v6372_v24 = vld [vmem:[#allocation6 + $0x4] sm:$0xf0]  ;;  %v105_v26 = vld [vmem:[%s9276_s0 + $0x18] sm:$0xff] }
  0x1a   :  { %642 = vmatpush.bf16.msra.mxu2 %v631_v18  ;;  %v634_v22 = vsel %vm304_vm0, %v5155_v13, 0  ;;  %v6371_v25 = vld [vmem:[#allocation6 + $0x4] sm:$0xf]  ;;  %v5143_v27 = vor.u32 %v6372_v24, %v5142_v21  ;;  %v5144_v28 = vld [vmem:[#allocation6 + $0x8] sm:$0xf0]  ;;  %v102_v29 = vld [vmem:[%s9276_s0] sm:$0xff]  ;;  %v159_v32 = vpack.c.bf16 %v105_v26, %v104_v16 }
  0x1b   :  { %791 = vmatpush.bf16.msra.mxu3 %v634_v22  ;;  %v103_v30 = vld [vmem:[%s9276_s0 + $0x8] sm:$0xff]  ;;  %v5147_v31 = vor.u32 %v6371_v25, %v5144_v28  ;;  %v5222_v33 = vld [vmem:[#allocation6 + $0x50] sm:$0xf]  ;;  %v6382_v34 = vld [vmem:[#allocation6 + $0x54] sm:$0x30]  ;;  %vm219_vm1 = vcmask 228352  }
  0x1c   :  { %v6381_v35 = vld [vmem:[#allocation6 + $0x54] sm:$0xf]  ;;  %v158_v36 = vpack.c.bf16 %v103_v30, %v102_v29  ;;  %v5223_v37 = vor.u32 %v6382_v34, %v5222_v33  ;;  %v5224_v38 = vld [vmem:[#allocation6 + $0x58] sm:$0x30]  ;;  %v107_v43 = vld [vmem:[%s9276_s0 + $0x28] sm:$0xff]  ;;  %vm1612_vm2 = vcmask 1043456  }
  0x1d   :  { %318 = vmatpush.bf16.msra.mxu0 %v5071_v19  ;;  %467 = vmatpush.bf16.msra.mxu1 %v5075_v23  ;;  %v5227_v39 = vor.u32 %v6381_v35, %v5224_v38  ;;  %v106_v42 = vld [vmem:[%s9276_s0 + $0x20] sm:$0xff]  ;;  %v108_v45 = vld [vmem:[%s9276_s0 + $0x30] sm:$0xff]  ;;  %v109_v46 = vld [vmem:[%s9276_s0 + $0x38] sm:$0xff]  ;;  %vm1613_vm3 = vcmask 785412   ;;  %vm1987_vm5 = vcmask 785408   ;;  %vm2487_vm6 = vcmask 912384  }
  0x1e   :  { %643 = vmatpush.bf16.msra.mxu2 %v5143_v27  ;;  %v961_v40 = vsel %vm304_vm0, %v5223_v37, 0  ;;  %v6852_v44 = vpack.c.bf16 %v107_v43, %v106_v42  ;;  %v6866_v47 = vpack.c.bf16 %v109_v46, %v108_v45  ;;  %v110_v48 = vld [vmem:[%s9276_s0 + $0x40] sm:$0xff]  ;;  %v111_v49 = vld [vmem:[%s9276_s0 + $0x48] sm:$0xff]  ;;  %v112_v51 = vld [vmem:[%s9276_s0 + $0x50] sm:$0xff]  ;;  %vm2747_vm7 = vcmask 916480   ;;  %s6743_s28 = smov 112  }
  0x1f   :  { %792 = vmatpush.bf16.msra.mxu3 %v5147_v31  ;;  %v964_v41 = vsel %vm304_vm0, %v5227_v39, 0  ;;  %v6882_v50 = vpack.c.bf16 %v111_v49, %v110_v48  ;;  %v113_v52 = vld [vmem:[%s9276_s0 + $0x58] sm:$0xff]  ;;  %v114_v54 = vld [vmem:[%s9276_s0 + $0x60] sm:$0xff]  ;;  %v115_v55 = vld [vmem:[%s9276_s0 + $0x68] sm:$0xff]  ;;  %s6744_s29 = smov 96   ;;  %s6745_s13 = smov 80  }
  0x20   :  { %5084 = vmatmul.msk.bf16.vlgmr.msra.gmra.mxu0 %vm219_vm1, %v159_v32  ;;  %5112 = vmatmul.msk.bf16.vlgmr.msra.gmra.mxu1 %vm219_vm1, %v159_v32  ;;  %v6898_v53 = vpack.c.bf16 %v113_v52, %v112_v51  ;;  %v6914_v56 = vpack.c.bf16 %v115_v55, %v114_v54  ;;  %v116_v57 = vld [vmem:[%s9276_s0 + $0x70] sm:$0xff]  ;;  %v117_v58 = vld [vmem:[%s9276_s0 + $0x78] sm:$0xff]  ;;  %v118_v60 = vld [vmem:[%s9276_s0 + $0x80] sm:$0xff]  ;;  %s6746_s26 = smov 48   ;;  %s6747_s27 = smov 32   ;;  %vm4329_vm8 = vcmask 1044352  }
  0x21   :  { %5156 = vmatmul.msk.bf16.vlgmr.msra.gmra.mxu2 %vm219_vm1, %v158_v36  ;;  %972 = vmatpush.bf16.msrb.mxu0 %v961_v40  ;;  %v6930_v59 = vpack.c.bf16 %v117_v58, %v116_v57  ;;  %v119_v61 = vld [vmem:[%s9276_s0 + $0x88] sm:$0xff]  ;;  %v120_v63 = vld [vmem:[%s9276_s0 + $0x90] sm:$0xff]  ;;  %v121_v0 = vld [vmem:[%s9276_s0 + $0x98] sm:$0xff]  ;;  %vm4348_vm10 = vcmask 1044224   ;;  %vm4349_vm11 = vcmask 654340   ;;  %vm4368_vm12 = vcmask 1044096  }
  0x22   :  { %5184 = vmatmul.msk.bf16.vlgmr.msra.gmra.mxu3 %vm219_vm1, %v158_v36  ;;  %1121 = vmatpush.bf16.msrb.mxu1 %v964_v41  ;;  %v6946_v62 = vpack.c.bf16 %v119_v61, %v118_v60  ;;  %v6962_v1 = vpack.c.bf16 %v121_v0, %v120_v63  ;;  %v122_v10 = vld [vmem:[%s9276_s0 + $0xa0] sm:$0xff]  ;;  %v123_v11 = vld [vmem:[%s9276_s0 + $0xa8] sm:$0xff]  ;;  %v124_v25 = vld [vmem:[%s9276_s0 + $0xb0] sm:$0xff]  ;;  %vm4369_vm13 = vcmask 523268   ;;  %vm4363_vm14 = vcmask 654336  }
  0x23   :  { %v6982_v13 = vpack.c.bf16 %v123_v11, %v122_v10  ;;  %v125_v26 = vld [vmem:[%s9276_s0 + $0xb8] sm:$0xff]  ;;  %v126_v40 = vld [vmem:[%s9276_s0 + $0xc0] sm:$0xff]  ;;  %v127_v41 = vld [vmem:[%s9276_s0 + $0xc8] sm:$0xff] }
  0x24   :  { %v7006_v28 = vpack.c.bf16 %v125_v26, %v124_v25  ;;  %v7030_v43 = vpack.c.bf16 %v127_v41, %v126_v40  ;;  %v128_v61 = vld [vmem:[%s9276_s0 + $0xd0] sm:$0xff]  ;;  %v129_v63 = vld [vmem:[%s9276_s0 + $0xd8] sm:$0xff]  ;;  %v5214_v10 = vld [vmem:[#allocation6 + $0x40] sm:$0xf] }
  0x25   :  { %v6380_v11 = vld [vmem:[#allocation6 + $0x44] sm:$0xf0]  ;;  %vm7641_vm4 = vmor %vm1613_vm3, %vm1612_vm2  ;;  %vm4389_vm2 = vcmask 392196  }
  0x26   :  { %vm4330_vm9 = vmor %vm1613_vm3, %vm4329_vm8  ;;  %vm4408_vm3 = vcmask 1043840  }
  0x27   :  { %vm9167_vm15 = vmor %vm4349_vm11, %vm4348_vm10  ;;  %vm4429_vm10 = vcmask 130052   ;;  %vm4423_vm11 = vcmask 261120  }
  0x28   :  { %vm9171_vm0 = vmor %vm4369_vm13, %vm4368_vm12  ;;  %vm4872_vm13 = vcmask 130048  }
  0x30   :  { %5085 = vmatmul.msk.bf16.gmra.mxu0 %vm219_vm1, %v6852_v44  ;;  %5113 = vmatmul.msk.bf16.gmra.mxu1 %vm219_vm1, %v6852_v44 }
  0x31   :  { %5157 = vmatmul.msk.bf16.gmra.mxu2 %vm219_vm1, %v159_v32 }
  0x32   :  { %5185 = vmatmul.msk.bf16.gmra.mxu3 %vm219_vm1, %v159_v32 }
  0x40   :  { %5086 = vmatmul.msk.bf16.gmra.mxu0 %vm219_vm1, %v6866_v47  ;;  %5114 = vmatmul.msk.bf16.gmra.mxu1 %vm219_vm1, %v6866_v47 }
  0x41   :  { %5158 = vmatmul.msk.bf16.gmra.mxu2 %vm219_vm1, %v6852_v44 }
  0x42   :  { %5186 = vmatmul.msk.bf16.gmra.mxu3 %vm219_vm1, %v6852_v44 }
  0x50   :  { %5087 = vmatmul.msk.bf16.gmra.mxu0 %vm219_vm1, %v6882_v50  ;;  %5115 = vmatmul.msk.bf16.gmra.mxu1 %vm219_vm1, %v6882_v50 }
  0x51   :  { %5159 = vmatmul.msk.bf16.gmra.mxu2 %vm219_vm1, %v6866_v47 }
  0x52   :  { %5187 = vmatmul.msk.bf16.gmra.mxu3 %vm219_vm1, %v6866_v47 }
  0x60   :  { %5088 = vmatmul.msk.bf16.gmra.mxu0 %vm219_vm1, %v6898_v53  ;;  %5116 = vmatmul.msk.bf16.gmra.mxu1 %vm219_vm1, %v6898_v53 }
  0x61   :  { %5160 = vmatmul.msk.bf16.gmra.mxu2 %vm219_vm1, %v6882_v50 }
  0x62   :  { %5188 = vmatmul.msk.bf16.gmra.mxu3 %vm219_vm1, %v6882_v50 }
  0x70   :  { %5089 = vmatmul.msk.bf16.gmra.mxu0 %vm219_vm1, %v6914_v56  ;;  %5117 = vmatmul.msk.bf16.gmra.mxu1 %vm219_vm1, %v6914_v56 }
  0x71   :  { %5161 = vmatmul.msk.bf16.gmra.mxu2 %vm219_vm1, %v6898_v53 }
  0x72   :  { %5189 = vmatmul.msk.bf16.gmra.mxu3 %vm219_vm1, %v6898_v53 }
  0x80   :  { %5090 = vmatmul.msk.bf16.gmra.mxu0 %vm219_vm1, %v6930_v59  ;;  %5118 = vmatmul.msk.bf16.gmra.mxu1 %vm219_vm1, %v6930_v59 }
  0x81   :  { %5162 = vmatmul.msk.bf16.gmra.mxu2 %vm219_vm1, %v6914_v56 }
  0x82   :  { %5190 = vmatmul.msk.bf16.gmra.mxu3 %vm219_vm1, %v6914_v56 }
  0x90   :  { %5091 = vmatmul.msk.bf16.gmra.mxu0 %vm219_vm1, %v6946_v62  ;;  %5119 = vmatmul.msk.bf16.gmra.mxu1 %vm219_vm1, %v6946_v62 }
  0x91   :  { %5163 = vmatmul.msk.bf16.gmra.mxu2 %vm219_vm1, %v6930_v59 }
  0x92   :  { %5191 = vmatmul.msk.bf16.gmra.mxu3 %vm219_vm1, %v6930_v59 }
  0x9d   :  { %v320_v2 = vpop.f32.mrf.mxu0  ;;  %v469_v3 = vpop.f32.mrf.mxu1 }
  0xa0   :  { %5092 = vmatmul.msk.bf16.gmra.mxu0 %vm219_vm1, %v6962_v1  ;;  %5120 = vmatmul.msk.bf16.gmra.mxu1 %vm219_vm1, %v6962_v1 }
  0xa1   :  { %5164 = vmatmul.msk.bf16.gmra.mxu2 %vm219_vm1, %v6946_v62 }
  0xa2   :  { %5192 = vmatmul.msk.bf16.gmra.mxu3 %vm219_vm1, %v6946_v62 }
  0xa4   :  { %v645_v4 = vpop.f32.mrf.mxu2 }
  0xa5   :  { %v6972_v5 = vadd.f32 %v645_v4, %v320_v2  ;;  %v794_v6 = vpop.f32.mrf.mxu3  ;;  %v322_v7 = vpop.f32.mrf.mxu0  ;;  %v7054_v2 = vpack.c.bf16 %v129_v63, %v128_v61 }
  0xa6   :  { %v6974_v8 = vadd.f32 %v794_v6, %v469_v3  ;;  %v471_v9 = vpop.f32.mrf.mxu1 }
  0xac   :  { %v647_v12 = vpop.f32.mrf.mxu2 }
  0xad   :  { %v6984_v14 = vadd.f32 %v647_v12, %v322_v7  ;;  %v796_v15 = vpop.f32.mrf.mxu3  ;;  %v325_v16 = vpop.f32.mrf.mxu0  ;;  %v6379_v12 = vld [vmem:[#allocation6 + $0x44] sm:$0xf] }
  0xae   :  { %v6986_v17 = vadd.f32 %v796_v15, %v471_v9  ;;  %v474_v18 = vpop.f32.mrf.mxu1  ;;  %v5215_v15 = vor.u32 %v6380_v11, %v5214_v10 }
  0xb0   :  { %5093 = vmatmul.msk.bf16.gmra.mxu0 %vm219_vm1, %v6982_v13  ;;  %5121 = vmatmul.msk.bf16.gmra.mxu1 %vm219_vm1, %v6982_v13 }
  0xb1   :  { %5165 = vmatmul.msk.bf16.gmra.mxu2 %vm219_vm1, %v6962_v1  ;;  %973 = vmatpush.bf16.msrb.mxu0 %v5215_v15 }
  0xb2   :  { %5193 = vmatmul.msk.bf16.gmra.mxu3 %vm219_vm1, %v6962_v1 }
  0xb4   :  { %v650_v19 = vpop.f32.mrf.mxu2 }
  0xb5   :  { %v6996_v20 = vadd.f32 %v650_v19, %v325_v16  ;;  %v799_v21 = vpop.f32.mrf.mxu3  ;;  %v327_v22 = vpop.f32.mrf.mxu0  ;;  %v5216_v16 = vld [vmem:[#allocation6 + $0x48] sm:$0xf0] }
  0xb6   :  { %v6998_v23 = vadd.f32 %v799_v21, %v474_v18  ;;  %v476_v24 = vpop.f32.mrf.mxu1  ;;  %v5219_v19 = vor.u32 %v6379_v12, %v5216_v16 }
  0xb8   :  { %1122 = vmatpush.bf16.msrb.mxu1 %v5219_v19  ;;  %v134_v19 = vld [vmem:[%s9276_s0 + $0x100] sm:$0xff] }
  0xbc   :  { %v652_v27 = vpop.f32.mrf.mxu2 }
  0xbd   :  { %v7008_v29 = vadd.f32 %v652_v27, %v327_v22  ;;  %v801_v30 = vpop.f32.mrf.mxu3  ;;  %v330_v31 = vpop.f32.mrf.mxu0  ;;  %v130_v27 = vld [vmem:[%s9276_s0 + $0xe0] sm:$0xff] }
  0xbe   :  { %v7010_v32 = vadd.f32 %v801_v30, %v476_v24  ;;  %v479_v33 = vpop.f32.mrf.mxu1  ;;  %v131_v30 = vld [vmem:[%s9276_s0 + $0xe8] sm:$0xff] }
  0xc0   :  { %5094 = vmatmul.msk.bf16.gmra.mxu0 %vm219_vm1, %v7006_v28  ;;  %5122 = vmatmul.msk.bf16.gmra.mxu1 %vm219_vm1, %v7006_v28 }
  0xc1   :  { %5166 = vmatmul.msk.bf16.gmra.mxu2 %vm219_vm1, %v6982_v13 }
  0xc2   :  { %5194 = vmatmul.msk.bf16.gmra.mxu3 %vm219_vm1, %v6982_v13 }
  0xc4   :  { %v655_v34 = vpop.f32.mrf.mxu2 }
  0xc5   :  { %v7020_v35 = vadd.f32 %v655_v34, %v330_v31  ;;  %v804_v36 = vpop.f32.mrf.mxu3  ;;  %v332_v37 = vpop.f32.mrf.mxu0 }
  0xc6   :  { %v7022_v38 = vadd.f32 %v804_v36, %v479_v33  ;;  %v481_v39 = vpop.f32.mrf.mxu1  ;;  %v7078_v33 = vpack.c.bf16 %v131_v30, %v130_v27 }
  0xcc   :  { %v657_v42 = vpop.f32.mrf.mxu2 }
  0xcd   :  { %v7032_v45 = vadd.f32 %v657_v42, %v332_v37  ;;  %v806_v46 = vpop.f32.mrf.mxu3  ;;  %v335_v48 = vpop.f32.mrf.mxu0 }
  0xce   :  { %v7034_v49 = vadd.f32 %v806_v46, %v481_v39  ;;  %v484_v51 = vpop.f32.mrf.mxu1 }
  0xd0   :  { %5095 = vmatmul.msk.bf16.gmra.mxu0 %vm219_vm1, %v7030_v43  ;;  %5123 = vmatmul.msk.bf16.gmra.mxu1 %vm219_vm1, %v7030_v43 }
  0xd1   :  { %5167 = vmatmul.msk.bf16.gmra.mxu2 %vm219_vm1, %v7006_v28 }
  0xd2   :  { %5195 = vmatmul.msk.bf16.gmra.mxu3 %vm219_vm1, %v7006_v28 }
  0xd4   :  { %v660_v52 = vpop.f32.mrf.mxu2 }
  0xd5   :  { %v7044_v54 = vadd.f32 %v660_v52, %v335_v48  ;;  %v809_v55 = vpop.f32.mrf.mxu3  ;;  %v337_v57 = vpop.f32.mrf.mxu0 }
  0xd6   :  { %v7046_v58 = vadd.f32 %v809_v55, %v484_v51  ;;  %v486_v60 = vpop.f32.mrf.mxu1  ;;  %v132_v55 = vld [vmem:[%s9276_s0 + $0xf0] sm:$0xff] }
  0xdc   :  { %v662_v0 = vpop.f32.mrf.mxu2 }
  0xdd   :  { %v7056_v3 = vadd.f32 %v662_v0, %v337_v57  ;;  %v811_v4 = vpop.f32.mrf.mxu3  ;;  %v340_v6 = vpop.f32.mrf.mxu0  ;;  %v133_v57 = vld [vmem:[%s9276_s0 + $0xf8] sm:$0xff] }
  0xde   :  { %v7058_v7 = vadd.f32 %v811_v4, %v486_v60  ;;  %v489_v9 = vpop.f32.mrf.mxu1  ;;  %v7102_v61 = vpack.c.bf16 %v133_v57, %v132_v55  ;;  %v136_v57 = vld [vmem:[%s9276_s0 + $0x110] sm:$0xff] }
  0xe0   :  { %5096 = vmatmul.msk.bf16.gmra.mxu0 %vm219_vm1, %v7054_v2  ;;  %5124 = vmatmul.msk.bf16.gmra.mxu1 %vm219_vm1, %v7054_v2 }
  0xe1   :  { %5168 = vmatmul.msk.bf16.gmra.mxu2 %vm219_vm1, %v7030_v43 }
  0xe2   :  { %5196 = vmatmul.msk.bf16.gmra.mxu3 %vm219_vm1, %v7030_v43 }
  0xe4   :  { %v665_v18 = vpop.f32.mrf.mxu2 }
  0xe5   :  { %v7068_v21 = vadd.f32 %v665_v18, %v340_v6  ;;  %v814_v22 = vpop.f32.mrf.mxu3  ;;  %v342_v24 = vpop.f32.mrf.mxu0 }
  0xe6   :  { %v7070_v25 = vadd.f32 %v814_v22, %v489_v9  ;;  %v491_v26 = vpop.f32.mrf.mxu1  ;;  %v135_v22 = vld [vmem:[%s9276_s0 + $0x108] sm:$0xff] }
  0xec   :  { %v667_v31 = vpop.f32.mrf.mxu2 }
  0xed   :  { %v7080_v34 = vadd.f32 %v667_v31, %v342_v24  ;;  %v816_v36 = vpop.f32.mrf.mxu3  ;;  %v345_v37 = vpop.f32.mrf.mxu0 }
  0xee   :  { %v7082_v39 = vadd.f32 %v816_v36, %v491_v26  ;;  %v494_v40 = vpop.f32.mrf.mxu1  ;;  %v7126_v26 = vpack.c.bf16 %v135_v22, %v134_v19 }
  0xf0   :  { %5097 = vmatmul.msk.bf16.gmra.mxu0 %vm219_vm1, %v7078_v33  ;;  %5125 = vmatmul.msk.bf16.gmra.mxu1 %vm219_vm1, %v7078_v33 }
  0xf1   :  { %5169 = vmatmul.msk.bf16.gmra.mxu2 %vm219_vm1, %v7054_v2 }
  0xf2   :  { %5197 = vmatmul.msk.bf16.gmra.mxu3 %vm219_vm1, %v7054_v2 }
  0xf4   :  { %v670_v41 = vpop.f32.mrf.mxu2 }
  0xf5   :  { %v7092_v42 = vadd.f32 %v670_v41, %v345_v37  ;;  %v819_v46 = vpop.f32.mrf.mxu3  ;;  %v347_v48 = vpop.f32.mrf.mxu0 }
  0xf6   :  { %v7094_v51 = vadd.f32 %v819_v46, %v494_v40  ;;  %v496_v52 = vpop.f32.mrf.mxu1 }
  0xfc   :  { %v672_v60 = vpop.f32.mrf.mxu2 }
  0xfd   :  { %v7104_v63 = vadd.f32 %v672_v60, %v347_v48  ;;  %v821_v0 = vpop.f32.mrf.mxu3  ;;  %v350_v4 = vpop.f32.mrf.mxu0  ;;  %v137_v60 = vld [vmem:[%s9276_s0 + $0x118] sm:$0xff] }
  0xfe   :  { %v7106_v6 = vadd.f32 %v821_v0, %v496_v52  ;;  %v499_v9 = vpop.f32.mrf.mxu1 }
 0x100   :  { %5098 = vmatmul.msk.bf16.gmra.mxu0 %vm219_vm1, %v7102_v61  ;;  %5126 = vmatmul.msk.bf16.gmra.mxu1 %vm219_vm1, %v7102_v61 }
 0x101   :  { %5170 = vmatmul.msk.bf16.gmra.mxu2 %vm219_vm1, %v7078_v33 }
 0x102   :  { %5198 = vmatmul.msk.bf16.gmra.mxu3 %vm219_vm1, %v7078_v33 }
 0x104   :  { %v675_v10 = vpop.f32.mrf.mxu2 }
 0x105   :  { %v7116_v11 = vadd.f32 %v675_v10, %v350_v4  ;;  %v824_v12 = vpop.f32.mrf.mxu3  ;;  %v352_v15 = vpop.f32.mrf.mxu0  ;;  %v7150_v4 = vpack.c.bf16 %v137_v60, %v136_v57 }
 0x106   :  { %v7118_v16 = vadd.f32 %v824_v12, %v499_v9  ;;  %v501_v18 = vpop.f32.mrf.mxu1 }
 0x10c   :  { %v677_v24 = vpop.f32.mrf.mxu2 }
 0x10d   :  { %v7128_v27 = vadd.f32 %v677_v24, %v352_v15  ;;  %v826_v30 = vpop.f32.mrf.mxu3  ;;  %v355_v31 = vpop.f32.mrf.mxu0 }
 0x10e   :  { %v7130_v36 = vadd.f32 %v826_v30, %v501_v18  ;;  %v504_v37 = vpop.f32.mrf.mxu1 }
 0x110   :  { %5099 = vmatmul.msk.bf16.gmra.mxu0 %vm219_vm1, %v7126_v26  ;;  %5127 = vmatmul.msk.bf16.gmra.mxu1 %vm219_vm1, %v7126_v26 }
 0x111   :  { %5171 = vmatmul.msk.bf16.gmra.mxu2 %vm219_vm1, %v7102_v61 }
 0x112   :  { %5199 = vmatmul.msk.bf16.gmra.mxu3 %vm219_vm1, %v7102_v61 }
 0x114   :  { %v680_v40 = vpop.f32.mrf.mxu2 }
 0x115   :  { %v7140_v41 = vadd.f32 %v680_v40, %v355_v31  ;;  %v829_v46 = vpop.f32.mrf.mxu3  ;;  %v357_v48 = vpop.f32.mrf.mxu0  ;;  %v138_v40 = vld [vmem:[%s9276_s0 + $0x120] sm:$0xff] }
 0x116   :  { %v7142_v52 = vadd.f32 %v829_v46, %v504_v37  ;;  %v506_v55 = vpop.f32.mrf.mxu1  ;;  %v139_v46 = vld [vmem:[%s9276_s0 + $0x128] sm:$0xff] }
 0x11c   :  { %v682_v0 = vpop.f32.mrf.mxu2 }
 0x11d   :  { %v7152_v9 = vadd.f32 %v682_v0, %v357_v48  ;;  %v831_v10 = vpop.f32.mrf.mxu3  ;;  %v360_v12 = vpop.f32.mrf.mxu0 }
 0x11e   :  { %v7154_v15 = vadd.f32 %v831_v10, %v506_v55  ;;  %v509_v18 = vpop.f32.mrf.mxu1  ;;  %v7174_v55 = vpack.c.bf16 %v139_v46, %v138_v40  ;;  %v140_v46 = vld [vmem:[%s9276_s0 + $0x130] sm:$0xff] }
 0x120   :  { %5100 = vmatmul.msk.bf16.gmra.mxu0 %vm219_vm1, %v7150_v4  ;;  %5128 = vmatmul.msk.bf16.gmra.mxu1 %vm219_vm1, %v7150_v4 }
 0x121   :  { %5172 = vmatmul.msk.bf16.gmra.mxu2 %vm219_vm1, %v7126_v26 }
 0x122   :  { %5200 = vmatmul.msk.bf16.gmra.mxu3 %vm219_vm1, %v7126_v26 }
 0x124   :  { %v685_v19 = vpop.f32.mrf.mxu2 }
 0x125   :  { %v7164_v22 = vadd.f32 %v685_v19, %v360_v12  ;;  %v834_v24 = vpop.f32.mrf.mxu3  ;;  %v362_v30 = vpop.f32.mrf.mxu0 }
 0x126   :  { %v7166_v31 = vadd.f32 %v834_v24, %v509_v18  ;;  %v511_v37 = vpop.f32.mrf.mxu1 }
 0x128   :  { %9306 = vst [vmem:[#allocation16_spill] sm:$0xff] %v7166_v31 }
 0x12c   :  { %v687_v48 = vpop.f32.mrf.mxu2 }
 0x12d   :  { %v7176_v57 = vadd.f32 %v687_v48, %v362_v30  ;;  %v836_v60 = vpop.f32.mrf.mxu3  ;;  %v365_v0 = vpop.f32.mrf.mxu0  ;;  %v141_v48 = vld [vmem:[%s9276_s0 + $0x138] sm:$0xff] }
 0x12e   :  { %v7178_v10 = vadd.f32 %v836_v60, %v511_v37  ;;  %v514_v12 = vpop.f32.mrf.mxu1 }
 0x12f   :  { %9307 = vst [vmem:[#allocation17_spill] sm:$0xff] %v7176_v57 }
 0x130   :  { %9308 = vst [vmem:[#allocation18_spill] sm:$0xff] %v7178_v10  ;;  %5101 = vmatmul.msk.bf16.gmra.mxu0 %vm219_vm1, %v7174_v55  ;;  %5129 = vmatmul.msk.bf16.gmra.mxu1 %vm219_vm1, %v7174_v55  ;;  %v7198_v10 = vpack.c.bf16 %v141_v48, %v140_v46 }
 0x131   :  { %5173 = vmatmul.msk.bf16.gmra.mxu2 %vm219_vm1, %v7150_v4 }
 0x132   :  { %5201 = vmatmul.msk.bf16.gmra.mxu3 %vm219_vm1, %v7150_v4  ;;  %9311 = vst [vmem:[#allocation21_spill] sm:$0xff] %v7198_v10 }
 0x134   :  { %v690_v18 = vpop.f32.mrf.mxu2 }
 0x135   :  { %v7188_v19 = vadd.f32 %v690_v18, %v365_v0  ;;  %v839_v24 = vpop.f32.mrf.mxu3  ;;  %v367_v30 = vpop.f32.mrf.mxu0 }
 0x136   :  { %v7190_v37 = vadd.f32 %v839_v24, %v514_v12  ;;  %v516_v40 = vpop.f32.mrf.mxu1 }
 0x137   :  { %9309 = vst [vmem:[#allocation19_spill] sm:$0xff] %v7188_v19 }
 0x138   :  { %9310 = vst [vmem:[#allocation20_spill] sm:$0xff] %v7190_v37 }
 0x13c   :  { %v692_v60 = vpop.f32.mrf.mxu2 }
 0x13d   :  { %v7200_v57 = vadd.f32 %v692_v60, %v367_v30  ;;  %v841_v0 = vpop.f32.mrf.mxu3  ;;  %v370_v18 = vpop.f32.mrf.mxu0 }
 0x13e   :  { %v7202_v19 = vadd.f32 %v841_v0, %v516_v40  ;;  %v519_v12 = vpop.f32.mrf.mxu1  ;;  %v142_v0 = vld [vmem:[%s9276_s0 + $0x140] sm:$0xff] }
 0x13f   :  { %9312 = vst [vmem:[#allocation22_spill] sm:$0xff] %v7200_v57 }
 0x140   :  { %9313 = vst [vmem:[#allocation23_spill] sm:$0xff] %v7202_v19  ;;  %5102 = vmatmul.msk.bf16.gmra.mxu0 %vm219_vm1, %v7198_v10  ;;  %5130 = vmatmul.msk.bf16.gmra.mxu1 %vm219_vm1, %v7198_v10  ;;  %v143_v19 = vld [vmem:[%s9276_s0 + $0x148] sm:$0xff] }
 0x141   :  { %5174 = vmatmul.msk.bf16.gmra.mxu2 %vm219_vm1, %v7174_v55  ;;  %v7222_v37 = vpack.c.bf16 %v143_v19, %v142_v0 }
 0x142   :  { %5202 = vmatmul.msk.bf16.gmra.mxu3 %vm219_vm1, %v7174_v55 }
 0x143   :  { %9316 = vst [vmem:[#allocation26_spill] sm:$0xff] %v7222_v37 }
 0x144   :  { %v695_v24 = vpop.f32.mrf.mxu2 }
 0x145   :  { %v7212_v30 = vadd.f32 %v695_v24, %v370_v18  ;;  %v844_v46 = vpop.f32.mrf.mxu3  ;;  %v372_v48 = vpop.f32.mrf.mxu0 }
 0x146   :  { %v7214_v40 = vadd.f32 %v844_v46, %v519_v12  ;;  %v521_v60 = vpop.f32.mrf.mxu1 }
 0x147   :  { %9314 = vst [vmem:[#allocation24_spill] sm:$0xff] %v7212_v30 }
 0x148   :  { %9315 = vst [vmem:[#allocation25_spill] sm:$0xff] %v7214_v40 }
 0x14c   :  { %v697_v57 = vpop.f32.mrf.mxu2 }
 0x14d   :  { %v7224_v31 = vadd.f32 %v697_v57, %v372_v48  ;;  %v846_v18 = vpop.f32.mrf.mxu3  ;;  %v375_v24 = vpop.f32.mrf.mxu0 }
 0x14e   :  { %v7226_v30 = vadd.f32 %v846_v18, %v521_v60  ;;  %v524_v12 = vpop.f32.mrf.mxu1  ;;  %v144_v18 = vld [vmem:[%s9276_s0 + $0x150] sm:$0xff] }
 0x14f   :  { %9317 = vst [vmem:[#allocation27_spill] sm:$0xff] %v7224_v31 }
 0x150   :  { %9318 = vst [vmem:[#allocation28_spill] sm:$0xff] %v7226_v30  ;;  %5103 = vmatmul.msk.bf16.gmra.mxu0 %vm219_vm1, %v7222_v37  ;;  %5131 = vmatmul.msk.bf16.gmra.mxu1 %vm219_vm1, %v7222_v37  ;;  %v145_v30 = vld [vmem:[%s9276_s0 + $0x158] sm:$0xff] }
 0x151   :  { %5175 = vmatmul.msk.bf16.gmra.mxu2 %vm219_vm1, %v7198_v10  ;;  %v7246_v40 = vpack.c.bf16 %v145_v30, %v144_v18 }
 0x152   :  { %5203 = vmatmul.msk.bf16.gmra.mxu3 %vm219_vm1, %v7198_v10 }
 0x153   :  { %9321 = vst [vmem:[#allocation31_spill] sm:$0xff] %v7246_v40 }
 0x154   :  { %v700_v19 = vpop.f32.mrf.mxu2 }
 0x155   :  { %v7236_v57 = vadd.f32 %v700_v19, %v375_v24  ;;  %v849_v46 = vpop.f32.mrf.mxu3  ;;  %v377_v48 = vpop.f32.mrf.mxu0 }
 0x156   :  { %v7238_v60 = vadd.f32 %v849_v46, %v524_v12  ;;  %v526_v0 = vpop.f32.mrf.mxu1 }
 0x157   :  { %9319 = vst [vmem:[#allocation29_spill] sm:$0xff] %v7236_v57 }
 0x158   :  { %9320 = vst [vmem:[#allocation30_spill] sm:$0xff] %v7238_v60 }
 0x15c   :  { %v702_v31 = vpop.f32.mrf.mxu2 }
 0x15d   :  { %v7248_v10 = vadd.f32 %v702_v31, %v377_v48  ;;  %v851_v24 = vpop.f32.mrf.mxu3  ;;  %v380_v19 = vpop.f32.mrf.mxu0 }
 0x15e   :  { %v7250_v57 = vadd.f32 %v851_v24, %v526_v0  ;;  %v529_v12 = vpop.f32.mrf.mxu1  ;;  %v146_v24 = vld [vmem:[%s9276_s0 + $0x160] sm:$0xff] }
 0x15f   :  { %9322 = vst [vmem:[#allocation32_spill] sm:$0xff] %v7248_v10 }
 0x160   :  { %9323 = vst [vmem:[#allocation33_spill] sm:$0xff] %v7250_v57  ;;  %5104 = vmatmul.msk.bf16.gmra.mxu0 %vm219_vm1, %v7246_v40  ;;  %5132 = vmatmul.msk.bf16.gmra.mxu1 %vm219_vm1, %v7246_v40  ;;  %v147_v57 = vld [vmem:[%s9276_s0 + $0x168] sm:$0xff] }
 0x161   :  { %5176 = vmatmul.msk.bf16.gmra.mxu2 %vm219_vm1, %v7222_v37  ;;  %v7270_v60 = vpack.c.bf16 %v147_v57, %v146_v24 }
 0x162   :  { %5204 = vmatmul.msk.bf16.gmra.mxu3 %vm219_vm1, %v7222_v37 }
 0x163   :  { %9326 = vst [vmem:[#allocation36_spill] sm:$0xff] %v7270_v60 }
 0x164   :  { %v705_v30 = vpop.f32.mrf.mxu2 }
 0x165   :  { %v7260_v31 = vadd.f32 %v705_v30, %v380_v19  ;;  %v854_v46 = vpop.f32.mrf.mxu3  ;;  %v382_v48 = vpop.f32.mrf.mxu0 }
 0x166   :  { %v7262_v0 = vadd.f32 %v854_v46, %v529_v12  ;;  %v531_v18 = vpop.f32.mrf.mxu1 }
 0x167   :  { %9324 = vst [vmem:[#allocation34_spill] sm:$0xff] %v7260_v31 }
 0x168   :  { %9325 = vst [vmem:[#allocation35_spill] sm:$0xff] %v7262_v0 }
 0x16c   :  { %v707_v10 = vpop.f32.mrf.mxu2 }
 0x16d   :  { %v7272_v37 = vadd.f32 %v707_v10, %v382_v48  ;;  %v856_v19 = vpop.f32.mrf.mxu3  ;;  %v385_v30 = vpop.f32.mrf.mxu0 }
 0x16e   :  { %v7274_v31 = vadd.f32 %v856_v19, %v531_v18  ;;  %v534_v12 = vpop.f32.mrf.mxu1  ;;  %v6418_v19 = vld [vmem:[%s9279_s3 + $0x38] sm:$0xff] }
 0x16f   :  { %9327 = vst [vmem:[#allocation37_spill] sm:$0xff] %v7272_v37  ;;  %2030 = vmatpush.bf16.msrb.mxu2 %v6418_v19 }
 0x170   :  { %9328 = vst [vmem:[#allocation38_spill] sm:$0xff] %v7274_v31  ;;  %5105 = vmatmul.msk.bf16.gmra.mxu0 %vm219_vm1, %v7270_v60  ;;  %5133 = vmatmul.msk.bf16.gmra.mxu1 %vm219_vm1, %v7270_v60  ;;  %v6424_v31 = vld [vmem:[%s9279_s3 + $0x68] sm:$0xff] }
 0x171   :  { %5177 = vmatmul.msk.bf16.gmra.mxu2 %vm219_vm1, %v7246_v40  ;;  %2111 = vmatpush.bf16.msrb.mxu3 %v6424_v31 }
 0x172   :  { %5205 = vmatmul.msk.bf16.gmra.mxu3 %vm219_vm1, %v7246_v40 }
 0x174   :  { %v710_v57 = vpop.f32.mrf.mxu2 }
 0x175   :  { %v7284_v10 = vadd.f32 %v710_v57, %v385_v30  ;;  %v859_v46 = vpop.f32.mrf.mxu3  ;;  %v387_v48 = vpop.f32.mrf.mxu0  ;;  %v148_v30 = vld [vmem:[%s9276_s0 + $0x170] sm:$0xff] }
 0x176   :  { %v7286_v18 = vadd.f32 %v859_v46, %v534_v12  ;;  %v536_v24 = vpop.f32.mrf.mxu1  ;;  %v149_v12 = vld [vmem:[%s9276_s0 + $0x178] sm:$0xff] }
 0x177   :  { %9329 = vst [vmem:[#allocation39_spill] sm:$0xff] %v7284_v10  ;;  %v7300_v46 = vpack.c.bf16 %v149_v12, %v148_v30  ;;  %v150_v12 = vld [vmem:[%s9276_s0 + $0x180] sm:$0xff] }
 0x178   :  { %9330 = vst [vmem:[#allocation40_spill] sm:$0xff] %v7286_v18 }
 0x179   :  { %9331 = vst [vmem:[#allocation41_spill] sm:$0xff] %v7300_v46 }
 0x17c   :  { %v712_v57 = vpop.f32.mrf.mxu2 }
 0x17d   :  { %v7302_v37 = vadd.f32 %v712_v57, %v387_v48  ;;  %v861_v18 = vpop.f32.mrf.mxu3  ;;  %v390_v10 = vpop.f32.mrf.mxu0  ;;  %v151_v57 = vld [vmem:[%s9276_s0 + $0x188] sm:$0xff] }
 0x17e   :  { %v7304_v0 = vadd.f32 %v861_v18, %v536_v24  ;;  %v539_v40 = vpop.f32.mrf.mxu1 }
 0x17f   :  { %9332 = vst [vmem:[#allocation42_spill] sm:$0xff] %v7302_v37  ;;  %v7324_v37 = vpack.c.bf16 %v151_v57, %v150_v12 }
 0x180   :  { %9333 = vst [vmem:[#allocation43_spill] sm:$0xff] %v7304_v0  ;;  %5106 = vmatmul.msk.bf16.gmra.mxu0 %vm219_vm1, %v7300_v46  ;;  %5134 = vmatmul.msk.bf16.gmra.mxu1 %vm219_vm1, %v7300_v46 }
 0x181   :  { %5178 = vmatmul.msk.bf16.gmra.mxu2 %vm219_vm1, %v7270_v60 }
 0x182   :  { %5206 = vmatmul.msk.bf16.gmra.mxu3 %vm219_vm1, %v7270_v60 }
 0x184   :  { %v715_v31 = vpop.f32.mrf.mxu2 }
 0x185   :  { %v7314_v48 = vadd.f32 %v715_v31, %v390_v10  ;;  %v864_v19 = vpop.f32.mrf.mxu3  ;;  %v392_v30 = vpop.f32.mrf.mxu0 }
 0x186   :  { %v7316_v18 = vadd.f32 %v864_v19, %v539_v40  ;;  %v541_v24 = vpop.f32.mrf.mxu1 }
 0x187   :  { %9334 = vst [vmem:[#allocation44_spill] sm:$0xff] %v7314_v48 }
 0x188   :  { %9335 = vst [vmem:[#allocation45_spill] sm:$0xff] %v7316_v18 }
 0x18c   :  { %v717_v0 = vpop.f32.mrf.mxu2 }
 0x18d   :  { %v7326_v60 = vadd.f32 %v717_v0, %v392_v30  ;;  %v866_v10 = vpop.f32.mrf.mxu3  ;;  %v395_v31 = vpop.f32.mrf.mxu0 }
 0x18e   :  { %v7328_v48 = vadd.f32 %v866_v10, %v541_v24  ;;  %v544_v40 = vpop.f32.mrf.mxu1  ;;  %v152_v10 = vld [vmem:[%s9276_s0 + $0x190] sm:$0xff] }
 0x18f   :  { %9336 = vst [vmem:[#allocation46_spill] sm:$0xff] %v7326_v60 }
 0x190   :  { %9337 = vst [vmem:[#allocation47_spill] sm:$0xff] %v7328_v48  ;;  %5107 = vmatmul.msk.bf16.gmra.mxu0 %vm219_vm1, %v7324_v37  ;;  %5135 = vmatmul.msk.bf16.gmra.mxu1 %vm219_vm1, %v7324_v37  ;;  %v153_v48 = vld [vmem:[%s9276_s0 + $0x198] sm:$0xff] }
 0x191   :  { %5179 = vmatmul.msk.bf16.gmra.mxu2 %vm219_vm1, %v7300_v46  ;;  %v7348_v18 = vpack.c.bf16 %v153_v48, %v152_v10 }
 0x192   :  { %5207 = vmatmul.msk.bf16.gmra.mxu3 %vm219_vm1, %v7300_v46 }
 0x193   :  { %9340 = vst [vmem:[#allocation50_spill] sm:$0xff] %v7348_v18 }
 0x194   :  { %v720_v19 = vpop.f32.mrf.mxu2 }
 0x195   :  { %v7338_v0 = vadd.f32 %v720_v19, %v395_v31  ;;  %v869_v30 = vpop.f32.mrf.mxu3  ;;  %v397_v12 = vpop.f32.mrf.mxu0 }
 0x196   :  { %v7340_v24 = vadd.f32 %v869_v30, %v544_v40  ;;  %v546_v57 = vpop.f32.mrf.mxu1 }
 0x197   :  { %9338 = vst [vmem:[#allocation48_spill] sm:$0xff] %v7338_v0 }
 0x198   :  { %9339 = vst [vmem:[#allocation49_spill] sm:$0xff] %v7340_v24 }
 0x19c   :  { %v722_v60 = vpop.f32.mrf.mxu2 }
 0x19d   :  { %v7350_v46 = vadd.f32 %v722_v60, %v397_v12  ;;  %v871_v31 = vpop.f32.mrf.mxu3  ;;  %v400_v19 = vpop.f32.mrf.mxu0 }
 0x19e   :  { %v7352_v0 = vadd.f32 %v871_v31, %v546_v57  ;;  %v549_v40 = vpop.f32.mrf.mxu1  ;;  %v154_v31 = vld [vmem:[%s9276_s0 + $0x1a0] sm:$0xff] }
 0x19f   :  { %9341 = vst [vmem:[#allocation51_spill] sm:$0xff] %v7350_v46 }
 0x1a0   :  { %9342 = vst [vmem:[#allocation52_spill] sm:$0xff] %v7352_v0  ;;  %5108 = vmatmul.msk.bf16.gmra.mxu0 %vm219_vm1, %v7348_v18  ;;  %5136 = vmatmul.msk.bf16.gmra.mxu1 %vm219_vm1, %v7348_v18  ;;  %v155_v0 = vld [vmem:[%s9276_s0 + $0x1a8] sm:$0xff] }
 0x1a1   :  { %5180 = vmatmul.msk.bf16.gmra.mxu2 %vm219_vm1, %v7324_v37  ;;  %v7378_v24 = vpack.c.bf16 %v155_v0, %v154_v31  ;;  %v6417_v0 = vld [vmem:[%s9279_s3 + $0x30] sm:$0xff] }
 0x1a2   :  { %5208 = vmatmul.msk.bf16.gmra.mxu3 %vm219_vm1, %v7324_v37  ;;  %2031 = vmatpush.bf16.msrb.mxu2 %v6417_v0 }
 0x1a3   :  { %9348 = vst [vmem:[#allocation58_spill] sm:$0xff] %v7378_v24 }
 0x1a4   :  { %v725_v48 = vpop.f32.mrf.mxu2 }
 0x1a5   :  { %v7362_v60 = vadd.f32 %v725_v48, %v400_v19  ;;  %v874_v30 = vpop.f32.mrf.mxu3  ;;  %v7364_v12 = vpop.f32.mrf.mxu0 }
 0x1a6   :  { %9344 = vst [vmem:[#allocation54_spill] sm:$0xff] %v7364_v12  ;;  %v7366_v57 = vadd.f32 %v874_v30, %v549_v40  ;;  %v7368_v10 = vpop.f32.mrf.mxu1 }
 0x1a7   :  { %9343 = vst [vmem:[#allocation53_spill] sm:$0xff] %v7362_v60  ;;  %v157_v60 = vld [vmem:[%s9276_s0 + $0x1b8] sm:$0xff] }
 0x1a8   :  { %9345 = vst [vmem:[#allocation55_spill] sm:$0xff] %v7366_v57  ;;  %v156_v57 = vld [vmem:[%s9276_s0 + $0x1b0] sm:$0xff] }
 0x1a9   :  { %9346 = vst [vmem:[#allocation56_spill] sm:$0xff] %v7368_v10  ;;  %v7409_v0 = vpack.c.bf16 %v157_v60, %v156_v57 }
 0x1ac   :  { %v7376_v46 = vpop.f32.mrf.mxu2 }
 0x1ad   :  { %9347 = vst [vmem:[#allocation57_spill] sm:$0xff] %v7376_v46  ;;  %v7380_v19 = vpop.f32.mrf.mxu3  ;;  %v405_v48 = vpop.f32.mrf.mxu0 }
 0x1ae   :  { %9349 = vst [vmem:[#allocation59_spill] sm:$0xff] %v7380_v19  ;;  %v554_v12 = vpop.f32.mrf.mxu1 }
 0x1b0   :  { %5109 = vmatmul.msk.bf16.gmra.mxu0 %vm219_vm1, %v7378_v24  ;;  %5137 = vmatmul.msk.bf16.gmra.mxu1 %vm219_vm1, %v7378_v24 }
 0x1b1   :  { %5181 = vmatmul.msk.bf16.gmra.mxu2 %vm219_vm1, %v7348_v18 }
 0x1b2   :  { %5209 = vmatmul.msk.bf16.gmra.mxu3 %vm219_vm1, %v7348_v18 }
 0x1b4   :  { %v730_v40 = vpop.f32.mrf.mxu2 }
 0x1b5   :  { %v7393_v30 = vadd.f32 %v730_v40, %v405_v48  ;;  %v879_v31 = vpop.f32.mrf.mxu3  ;;  %v7395_v19 = vpop.f32.mrf.mxu0 }
 0x1b6   :  { %9351 = vst [vmem:[#allocation61_spill] sm:$0xff] %v7395_v19  ;;  %v7397_v10 = vadd.f32 %v879_v31, %v554_v12  ;;  %v7399_v46 = vpop.f32.mrf.mxu1 }
 0x1b7   :  { %9350 = vst [vmem:[#allocation60_spill] sm:$0xff] %v7393_v30 }
 0x1b8   :  { %9352 = vst [vmem:[#allocation62_spill] sm:$0xff] %v7397_v10  ;;  %v186_v10 = vld [vmem:[%s9276_s0 + $0x1c0] sm:$0xff] }
 0x1b9   :  { %9353 = vst [vmem:[#allocation63_spill] sm:$0xff] %v7399_v46 }
 0x1bc   :  { %v7407_v18 = vpop.f32.mrf.mxu2 }
 0x1bd   :  { %9354 = vst [vmem:[#allocation64_spill] sm:$0xff] %v7407_v18  ;;  %v7411_v48 = vpop.f32.mrf.mxu3  ;;  %v410_v40 = vpop.f32.mrf.mxu0  ;;  %v6423_v18 = vld [vmem:[%s9279_s3 + $0x60] sm:$0xff] }
 0x1be   :  { %9355 = vst [vmem:[#allocation65_spill] sm:$0xff] %v7411_v48  ;;  %v559_v19 = vpop.f32.mrf.mxu1  ;;  %2112 = vmatpush.bf16.msrb.mxu3 %v6423_v18 }
 0x1c0   :  { %5110 = vmatmul.msk.bf16.gmra.mxu0 %vm219_vm1, %v7409_v0  ;;  %5138 = vmatmul.msk.bf16.gmra.mxu1 %vm219_vm1, %v7409_v0 }
 0x1c1   :  { %5182 = vmatmul.msk.bf16.gmra.mxu2 %vm219_vm1, %v7378_v24 }
 0x1c2   :  { %5210 = vmatmul.msk.bf16.gmra.mxu3 %vm219_vm1, %v7378_v24 }
 0x1c4   :  { %v735_v12 = vpop.f32.mrf.mxu2 }
 0x1c5   :  { %v7421_v31 = vadd.f32 %v735_v12, %v410_v40  ;;  %v884_v60 = vpop.f32.mrf.mxu3  ;;  %v7423_v57 = vpop.f32.mrf.mxu0  ;;  %v187_v40 = vld [vmem:[%s9276_s0 + $0x1c8] sm:$0xff] }
 0x1c6   :  { %9357 = vst [vmem:[#allocation67_spill] sm:$0xff] %v7423_v57  ;;  %v7425_v48 = vadd.f32 %v884_v60, %v559_v19  ;;  %v7427_v46 = vpop.f32.mrf.mxu1  ;;  %v7440_v57 = vpack.c.bf16 %v187_v40, %v186_v10 }
 0x1c7   :  { %9356 = vst [vmem:[#allocation66_spill] sm:$0xff] %v7421_v31 }
 0x1c8   :  { %9358 = vst [vmem:[#allocation68_spill] sm:$0xff] %v7425_v48 }
 0x1c9   :  { %9359 = vst [vmem:[#allocation69_spill] sm:$0xff] %v7427_v46 }
 0x1ca   :  { %9361 = vst [vmem:[#allocation71_spill] sm:$0xff] %v7440_v57 }
 0x1cc   :  { %v7438_v12 = vpop.f32.mrf.mxu2 }
 0x1cd   :  { %9360 = vst [vmem:[#allocation70_spill] sm:$0xff] %v7438_v12  ;;  %v7442_v19 = vpop.f32.mrf.mxu3  ;;  %v415_v60 = vpop.f32.mrf.mxu0 }
 0x1ce   :  { %9362 = vst [vmem:[#allocation72_spill] sm:$0xff] %v7442_v19  ;;  %v564_v46 = vpop.f32.mrf.mxu1 }
 0x1d0   :  { %5111 = vmatmul.msk.bf16.gmra.mxu0 %vm219_vm1, %v7440_v57  ;;  %5139 = vmatmul.msk.bf16.gmra.mxu1 %vm219_vm1, %v7440_v57 }
 0x1d1   :  { %5183 = vmatmul.msk.bf16.gmra.mxu2 %vm219_vm1, %v7409_v0 }
 0x1d2   :  { %5211 = vmatmul.msk.bf16.gmra.mxu3 %vm219_vm1, %v7409_v0 }
 0x1d4   :  { %v740_v18 = vpop.f32.mrf.mxu2 }
 0x1d5   :  { %v7452_v12 = vadd.f32 %v740_v18, %v415_v60  ;;  %v889_v10 = vpop.f32.mrf.mxu3  ;;  %v7454_v40 = vpop.f32.mrf.mxu0 }
 0x1d6   :  { %9364 = vst [vmem:[#allocation74_spill] sm:$0xff] %v7454_v40  ;;  %v7456_v19 = vadd.f32 %v889_v10, %v564_v46  ;;  %v7458_v48 = vpop.f32.mrf.mxu1 }
 0x1d7   :  { %9363 = vst [vmem:[#allocation73_spill] sm:$0xff] %v7452_v12 }
 0x1d8   :  { %9365 = vst [vmem:[#allocation75_spill] sm:$0xff] %v7456_v19 }
 0x1d9   :  { %9366 = vst [vmem:[#allocation76_spill] sm:$0xff] %v7458_v48 }
 0x1dc   :  { %v7460_v31 = vpop.f32.mrf.mxu2 }
 0x1dd   :  { %9367 = vst [vmem:[#allocation77_spill] sm:$0xff] %v7460_v31  ;;  %v7462_v30 = vpop.f32.mrf.mxu3  ;;  %v420_v57 = vpop.f32.mrf.mxu0 }
 0x1de   :  { %9368 = vst [vmem:[#allocation78_spill] sm:$0xff] %v7462_v30  ;;  %v569_v24 = vpop.f32.mrf.mxu1  ;;  %v6416_v30 = vld [vmem:[%s9279_s3 + $0x28] sm:$0xff] }
 0x1df   :  { %2032 = vmatpush.bf16.msrb.mxu2 %v6416_v30 }
 0x1e0   :  { %5228 = vmatmul.msk.bf16.vlgmr.msrb.gmra.mxu0 %vm219_vm1, %v6852_v44  ;;  %5256 = vmatmul.msk.bf16.vlgmr.msrb.gmra.mxu1 %vm219_vm1, %v6852_v44 }
 0x1e4   :  { %v745_v60 = vpop.f32.mrf.mxu2 }
 0x1e5   :  { %v7468_v18 = vadd.f32 %v745_v60, %v420_v57  ;;  %v894_v40 = vpop.f32.mrf.mxu3  ;;  %v7470_v46 = vpop.f32.mrf.mxu0 }
 0x1e6   :  { %9369 = vst [vmem:[#allocation79_spill] sm:$0xff] %v7470_v46  ;;  %v7472_v10 = vadd.f32 %v894_v40, %v569_v24  ;;  %v7474_v48 = vpop.f32.mrf.mxu1 }
 0x1e7   :  { %9371 = vst [vmem:[#allocation81_spill] sm:$0xff] %v7474_v48 }
 0x1e8   :  { %9370 = vst [vmem:[#allocation80_spill] sm:$0xff] %v7472_v10 }
 0x1ec   :  { %v7479_v31 = vpop.f32.mrf.mxu2 }
 0x1ed   :  { %9372 = vst [vmem:[#allocation82_spill] sm:$0xff] %v7479_v31  ;;  %v7481_v19 = vpop.f32.mrf.mxu3  ;;  %v425_v44 = vpop.f32.mrf.mxu0 }
 0x1ee   :  { %9373 = vst [vmem:[#allocation83_spill] sm:$0xff] %v7481_v19  ;;  %v574_v12 = vpop.f32.mrf.mxu1 }
 0x1f0   :  { %5229 = vmatmul.msk.bf16.gmra.mxu0 %vm219_vm1, %v6866_v47  ;;  %5257 = vmatmul.msk.bf16.gmra.mxu1 %vm219_vm1, %v6866_v47 }
 0x1f4   :  { %v750_v24 = vpop.f32.mrf.mxu2 }
 0x1f5   :  { %v7487_v57 = vadd.f32 %v750_v24, %v425_v44  ;;  %v899_v40 = vpop.f32.mrf.mxu3  ;;  %v7489_v60 = vpop.f32.mrf.mxu0 }
 0x1f6   :  { %9374 = vst [vmem:[#allocation84_spill] sm:$0xff] %v7489_v60  ;;  %v7491_v48 = vadd.f32 %v899_v40, %v574_v12  ;;  %v7493_v30 = vpop.f32.mrf.mxu1 }
 0x1f7   :  { %9376 = vst [vmem:[#allocation86_spill] sm:$0xff] %v7493_v30 }
 0x1f8   :  { %9375 = vst [vmem:[#allocation85_spill] sm:$0xff] %v7491_v48 }
 0x1fc   :  { %v7495_v31 = vpop.f32.mrf.mxu2 }
 0x1fd   :  { %9377 = vst [vmem:[#allocation87_spill] sm:$0xff] %v7495_v31  ;;  %v7497_v19 = vpop.f32.mrf.mxu3  ;;  %v430_v46 = vpop.f32.mrf.mxu0 }
 0x1fe   :  { %9378 = vst [vmem:[#allocation88_spill] sm:$0xff] %v7497_v19  ;;  %v579_v10 = vpop.f32.mrf.mxu1 }
 0x200   :  { %5230 = vmatmul.msk.bf16.gmra.mxu0 %vm219_vm1, %v6882_v50  ;;  %5258 = vmatmul.msk.bf16.gmra.mxu1 %vm219_vm1, %v6882_v50  ;;  %v6422_v50 = vld [vmem:[%s9279_s3 + $0x58] sm:$0xff] }
 0x201   :  { %2113 = vmatpush.bf16.msrb.mxu3 %v6422_v50 }
 0x204   :  { %v755_v47 = vpop.f32.mrf.mxu2 }
 0x205   :  { %v7503_v44 = vadd.f32 %v755_v47, %v430_v46  ;;  %v904_v24 = vpop.f32.mrf.mxu3  ;;  %v7505_v12 = vpop.f32.mrf.mxu0 }
 0x206   :  { %9379 = vst [vmem:[#allocation89_spill] sm:$0xff] %v7505_v12  ;;  %v7507_v40 = vadd.f32 %v904_v24, %v579_v10  ;;  %v7509_v30 = vpop.f32.mrf.mxu1 }
 0x207   :  { %9381 = vst [vmem:[#allocation91_spill] sm:$0xff] %v7509_v30 }
 0x208   :  { %9380 = vst [vmem:[#allocation90_spill] sm:$0xff] %v7507_v40 }
 0x20c   :  { %v7511_v31 = vpop.f32.mrf.mxu2 }
 0x20d   :  { %9382 = vst [vmem:[#allocation92_spill] sm:$0xff] %v7511_v31  ;;  %v7513_v19 = vpop.f32.mrf.mxu3  ;;  %v435_v60 = vpop.f32.mrf.mxu0 }
 0x20e   :  { %9383 = vst [vmem:[#allocation93_spill] sm:$0xff] %v7513_v19  ;;  %v584_v48 = vpop.f32.mrf.mxu1 }
 0x210   :  { %5231 = vmatmul.msk.bf16.gmra.mxu0 %vm219_vm1, %v6898_v53  ;;  %5259 = vmatmul.msk.bf16.gmra.mxu1 %vm219_vm1, %v6898_v53 }
 0x214   :  { %v760_v46 = vpop.f32.mrf.mxu2 }
 0x215   :  { %v7522_v10 = vadd.f32 %v760_v46, %v435_v60  ;;  %v909_v47 = vpop.f32.mrf.mxu3  ;;  %v7524_v24 = vpop.f32.mrf.mxu0  ;;  %v6415_v60 = vld [vmem:[%s9279_s3 + $0x20] sm:$0xff] }
 0x216   :  { %9384 = vst [vmem:[#allocation94_spill] sm:$0xff] %v7524_v24  ;;  %v7526_v19 = vadd.f32 %v909_v47, %v584_v48  ;;  %v7528_v30 = vpop.f32.mrf.mxu1  ;;  %2033 = vmatpush.bf16.msrb.mxu2 %v6415_v60 }
 0x217   :  { %9386 = vst [vmem:[#allocation96_spill] sm:$0xff] %v7528_v30 }
 0x218   :  { %9385 = vst [vmem:[#allocation95_spill] sm:$0xff] %v7526_v19 }
 0x21c   :  { %v7530_v31 = vpop.f32.mrf.mxu2 }
 0x21d   :  { %9387 = vst [vmem:[#allocation97_spill] sm:$0xff] %v7530_v31  ;;  %v7532_v12 = vpop.f32.mrf.mxu3  ;;  %v440_v53 = vpop.f32.mrf.mxu0 }
 0x21e   :  { %9388 = vst [vmem:[#allocation98_spill] sm:$0xff] %v7532_v12  ;;  %v589_v40 = vpop.f32.mrf.mxu1 }
 0x220   :  { %5232 = vmatmul.msk.bf16.gmra.mxu0 %vm219_vm1, %v6914_v56  ;;  %5260 = vmatmul.msk.bf16.gmra.mxu1 %vm219_vm1, %v6914_v56 }
 0x224   :  { %v765_v48 = vpop.f32.mrf.mxu2 }
 0x225   :  { %v7541_v50 = vadd.f32 %v765_v48, %v440_v53  ;;  %v914_v46 = vpop.f32.mrf.mxu3  ;;  %v7543_v47 = vpop.f32.mrf.mxu0 }
 0x226   :  { %9390 = vst [vmem:[#allocation100_spill] sm:$0xff] %v7543_v47  ;;  %v7545_v12 = vadd.f32 %v914_v46, %v589_v40  ;;  %v7547_v30 = vpop.f32.mrf.mxu1 }
 0x227   :  { %9389 = vst [vmem:[#allocation99_spill] sm:$0xff] %v7541_v50 }
 0x228   :  { %9391 = vst [vmem:[#allocation101_spill] sm:$0xff] %v7545_v12 }
 0x229   :  { %9392 = vst [vmem:[#allocation102_spill] sm:$0xff] %v7547_v30 }
 0x22c   :  { %v7549_v31 = vpop.f32.mrf.mxu2 }
 0x22d   :  { %9393 = vst [vmem:[#allocation103_spill] sm:$0xff] %v7549_v31  ;;  %v7551_v24 = vpop.f32.mrf.mxu3  ;;  %v445_v56 = vpop.f32.mrf.mxu0 }
 0x22e   :  { %9394 = vst [vmem:[#allocation104_spill] sm:$0xff] %v7551_v24  ;;  %v594_v19 = vpop.f32.mrf.mxu1 }
 0x230   :  { %5233 = vmatmul.msk.bf16.gmra.mxu0 %vm219_vm1, %v6930_v59  ;;  %5261 = vmatmul.msk.bf16.gmra.mxu1 %vm219_vm1, %v6930_v59 }
 0x234   :  { %v770_v53 = vpop.f32.mrf.mxu2 }
 0x235   :  { %v7557_v60 = vadd.f32 %v770_v53, %v445_v56  ;;  %v919_v48 = vpop.f32.mrf.mxu3  ;;  %v7559_v40 = vpop.f32.mrf.mxu0 }
 0x236   :  { %9396 = vst [vmem:[#allocation106_spill] sm:$0xff] %v7559_v40  ;;  %v7561_v46 = vadd.f32 %v919_v48, %v594_v19  ;;  %v7563_v30 = vpop.f32.mrf.mxu1 }
 0x237   :  { %9395 = vst [vmem:[#allocation105_spill] sm:$0xff] %v7557_v60 }
 0x238   :  { %9397 = vst [vmem:[#allocation107_spill] sm:$0xff] %v7561_v46 }
 0x239   :  { %9398 = vst [vmem:[#allocation108_spill] sm:$0xff] %v7563_v30 }
 0x23c   :  { %v7565_v31 = vpop.f32.mrf.mxu2 }
 0x23d   :  { %9399 = vst [vmem:[#allocation109_spill] sm:$0xff] %v7565_v31  ;;  %v7567_v24 = vpop.f32.mrf.mxu3  ;;  %v450_v47 = vpop.f32.mrf.mxu0 }
 0x23e   :  { %9400 = vst [vmem:[#allocation110_spill] sm:$0xff] %v7567_v24  ;;  %v599_v12 = vpop.f32.mrf.mxu1 }
 0x240   :  { %5234 = vmatmul.msk.bf16.gmra.mxu0 %vm219_vm1, %v6946_v62  ;;  %5262 = vmatmul.msk.bf16.gmra.mxu1 %vm219_vm1, %v6946_v62 }
 0x244   :  { %v775_v59 = vpop.f32.mrf.mxu2 }
 0x245   :  { %v7573_v56 = vadd.f32 %v775_v59, %v450_v47  ;;  %v924_v53 = vpop.f32.mrf.mxu3  ;;  %v7575_v19 = vpop.f32.mrf.mxu0 }
 0x246   :  { %9402 = vst [vmem:[#allocation112_spill] sm:$0xff] %v7575_v19  ;;  %v7577_v48 = vadd.f32 %v924_v53, %v599_v12  ;;  %v7579_v30 = vpop.f32.mrf.mxu1  ;;  %v6414_v12 = vld [vmem:[%s9279_s3 + $0x18] sm:$0xff]  ;;  %v6413_v19 = vld [vmem:[%s9279_s3 + $0x10] sm:$0xff] }
 0x247   :  { %9401 = vst [vmem:[#allocation111_spill] sm:$0xff] %v7573_v56  ;;  %2034 = vmatpush.bf16.msrb.mxu2 %v6414_v12  ;;  %v6420_v12 = vld [vmem:[%s9279_s3 + $0x48] sm:$0xff] }
 0x248   :  { %9403 = vst [vmem:[#allocation113_spill] sm:$0xff] %v7577_v48 }
 0x249   :  { %9404 = vst [vmem:[#allocation114_spill] sm:$0xff] %v7579_v30  ;;  %v6421_v30 = vld [vmem:[%s9279_s3 + $0x50] sm:$0xff] }
 0x24a   :  { %2114 = vmatpush.bf16.msrb.mxu3 %v6421_v30  ;;  %v6419_v30 = vld [vmem:[%s9279_s3 + $0x40] sm:$0xff] }
 0x24b   :  { %2035 = vmatpush.bf16.msrb.mxu2 %v6413_v19 }
 0x24d   :  { %v7581_v31 = vpop.f32.mrf.mxu0 }
 0x24e   :  { %9405 = vst [vmem:[#allocation115_spill] sm:$0xff] %v7581_v31  ;;  %v7583_v24 = vpop.f32.mrf.mxu1  ;;  %2115 = vmatpush.bf16.msrb.mxu3 %v6420_v12 }
 0x24f   :  { %9406 = vst [vmem:[#allocation116_spill] sm:$0xff] %v7583_v24  ;;  %v1376_v24 = vld [vmem:[%s9278_s2] sm:$0x3] }
 0x250   :  { %5235 = vmatmul.msk.bf16.gmra.mxu0 %vm219_vm1, %v6962_v1  ;;  %5263 = vmatmul.msk.bf16.gmra.mxu1 %vm219_vm1, %v6962_v1  ;;  %v6412_v1 = vld [vmem:[%s9279_s3 + $0x8] sm:$0xff]  ;;  %v7622_v31 = vperm.slane %v1376_v24, 0  ;;  %v7625_v12 = vperm.slane %v1376_v24, 1 }
 0x251   :  { %2036 = vmatpush.bf16.msrb.mxu2 %v6412_v1 }
 0x252   :  { %2116 = vmatpush.bf16.msrb.mxu3 %v6419_v30 }
 0x255   :  { %v7589_v62 = vpop.f32.mrf.mxu0 }
 0x256   :  { %9407 = vst [vmem:[#allocation117_spill] sm:$0xff] %v7589_v62  ;;  %v7591_v47 = vpop.f32.mrf.mxu1 }
 0x257   :  { %9408 = vst [vmem:[#allocation118_spill] sm:$0xff] %v7591_v47 }
 0x25d   :  { %v975_v59 = vpop.f32.mrf.mxu0 }
 0x25e   :  { %v1124_v53 = vpop.f32.mrf.mxu1  ;;  %v1264_v19 = vadd.f32 %v975_v59, %v6972_v5 }
 0x25f   :  { %v1265_v1 = vadd.f32 %v1124_v53, %v6974_v8 }
 0x260   :  { %5236 = vmatmul.msk.bf16.gmra.mxu0 %vm219_vm1, %v6982_v13  ;;  %5264 = vmatmul.msk.bf16.gmra.mxu1 %vm219_vm1, %v6982_v13  ;;  %v6411_v13 = vld [vmem:[%s9279_s3] sm:$0xff]  ;;  %v1382_v56 = vadd.f32 %v7622_v31, %v1264_v19 }
 0x261   :  { %2037 = vmatpush.bf16.msrb.mxu2 %v6411_v13  ;;  %v1383_v60 = vadd.f32 %v7625_v12, %v1265_v1 }
 0x262   :  { %v1494_v8 = vmax.f32 %v1382_v56, 0.0 }
 0x265   :  { %v977_v47 = vpop.f32.mrf.mxu0 }
 0x266   :  { %v1126_v62 = vpop.f32.mrf.mxu1  ;;  %v1266_v24 = vadd.f32 %v977_v47, %v6984_v14 }
 0x268   :  { %v1384_v13 = vadd.f32 %v7622_v31, %v1266_v24 }
 0x26a   :  { %v1496_v19 = vmax.f32 %v1384_v13, 0.0 }
 0x26d   :  { %v980_v48 = vpop.f32.mrf.mxu0 }
 0x26e   :  { %v1268_v40 = vadd.f32 %v980_v48, %v6996_v20  ;;  %v1129_v46 = vpop.f32.mrf.mxu1  ;;  %v1495_v20 = vmax.f32 %v1383_v60, 0.0  ;;  %v1267_v48 = vadd.f32 %v1126_v62, %v6986_v17 }
 0x26f   :  { %v1269_v50 = vadd.f32 %v1129_v46, %v6998_v23 }
 0x270   :  { %v1386_v30 = vadd.f32 %v7622_v31, %v1268_v40  ;;  %5237 = vmatmul.msk.bf16.gmra.mxu0 %vm219_vm1, %v7006_v28  ;;  %5265 = vmatmul.msk.bf16.gmra.mxu1 %vm219_vm1, %v7006_v28  ;;  %v1385_v56 = vadd.f32 %v7625_v12, %v1267_v48 }
 0x271   :  { %v1387_v5 = vadd.f32 %v7625_v12, %v1269_v50 }
 0x272   :  { %v1498_v59 = vmax.f32 %v1386_v30, 0.0  ;;  %v1497_v30 = vmax.f32 %v1385_v56, 0.0 }
 0x273   :  { %v1499_v53 = vmax.f32 %v1387_v5, 0.0 }
 0x274   :  { %v1606_v23 = vmax.f32 %v1494_v8, %v1498_v59 }
 0x275   :  { %v1607_v40 = vmax.f32 %v1495_v20, %v1499_v53  ;;  %v982_v46 = vpop.f32.mrf.mxu0 }
 0x276   :  { %v1270_v28 = vadd.f32 %v982_v46, %v7008_v29  ;;  %v1131_v14 = vpop.f32.mrf.mxu1 }
 0x277   :  { %v1610_v60 = vpack.c.bf16 %v1607_v40, %v1606_v23  ;;  %v1271_v17 = vadd.f32 %v1131_v14, %v7010_v32 }
 0x278   :  { %v1388_v62 = vadd.f32 %v7622_v31, %v1270_v28 }
 0x279   :  { %1615 = vst.msk [vmem:[#allocation2] sm:$0xff] %vm7641_vm4, %v1610_v60  ;;  %v1389_v47 = vadd.f32 %v7625_v12, %v1271_v17 }
 0x27a   :  { %v1500_v1 = vmax.f32 %v1388_v62, 0.0 }
 0x27b   :  { %v1501_v5 = vmax.f32 %v1389_v47, 0.0 }
 0x27c   :  { %v1608_v8 = vmax.f32 %v1496_v19, %v1500_v1 }
 0x27d   :  { %v1609_v24 = vmax.f32 %v1497_v30, %v1501_v5  ;;  %v985_v29 = vpop.f32.mrf.mxu0 }
 0x27e   :  { %v1134_v59 = vpop.f32.mrf.mxu1  ;;  %v1272_v14 = vadd.f32 %v985_v29, %v7020_v35 }
 0x27f   :  { %v1611_v20 = vpack.c.bf16 %v1609_v24, %v1608_v8  ;;  %v1273_v56 = vadd.f32 %v1134_v59, %v7022_v38 }
 0x280   :  { %5238 = vmatmul.msk.bf16.gmra.mxu0 %vm219_vm1, %v7030_v43  ;;  %5266 = vmatmul.msk.bf16.gmra.mxu1 %vm219_vm1, %v7030_v43  ;;  %v5286_v53 = vld [vmem:[#allocation2] sm:$0xf]  ;;  %v6383_v40 = vld [vmem:[#allocation2 + $0x4] sm:$0xf]  ;;  %v1390_v60 = vadd.f32 %v7622_v31, %v1272_v14 }
 0x281   :  { %1616 = vst.msk [vmem:[#allocation2 + $0x8] sm:$0xff] %vm7641_vm4, %v1611_v20  ;;  %v1391_v47 = vadd.f32 %v7625_v12, %v1273_v56 }
 0x282   :  { %v1502_v38 = vmax.f32 %v1390_v60, 0.0 }
 0x285   :  { %v987_v32 = vpop.f32.mrf.mxu0 }
 0x286   :  { %v1136_v48 = vpop.f32.mrf.mxu1  ;;  %v1274_v30 = vadd.f32 %v987_v32, %v7032_v45 }
 0x287   :  { %v1275_v8 = vadd.f32 %v1136_v48, %v7034_v49 }
 0x288   :  { %v6384_v23 = vld [vmem:[#allocation2 + $0x4] sm:$0xf0]  ;;  %v5288_v46 = vld [vmem:[#allocation2 + $0x8] sm:$0xf0]  ;;  %v1392_v20 = vadd.f32 %v7622_v31, %v1274_v30 }
 0x289   :  { %v7658_v13 = vor.u32 %v6384_v23, %v5286_v53  ;;  %v7660_v28 = vor.u32 %v6383_v40, %v5288_v46  ;;  %v1393_v40 = vadd.f32 %v7625_v12, %v1275_v8 }
 0x28a   :  { %v1504_v32 = vmax.f32 %v1392_v20, 0.0 }
 0x28b   :  { %2038 = vmatmul.bf16.vlgmr.msrb.gmra.mxu2 %v7658_v13  ;;  %5452 = vmatmul.msk.bf16.vlgmr.msrb.gmra.mxu3 %vm1987_vm5, %v7660_v28  ;;  %v1505_v14 = vmax.f32 %v1393_v40, 0.0 }
 0x28d   :  { %v990_v43 = vpop.f32.mrf.mxu0 }
 0x28e   :  { %v1276_v17 = vadd.f32 %v990_v43, %v7044_v54  ;;  %v1139_v62 = vpop.f32.mrf.mxu1  ;;  %v1503_v54 = vmax.f32 %v1391_v47, 0.0 }
 0x28f   :  { %v1277_v19 = vadd.f32 %v1139_v62, %v7046_v58 }
 0x290   :  { %v1394_v1 = vadd.f32 %v7622_v31, %v1276_v17  ;;  %5239 = vmatmul.msk.bf16.gmra.mxu0 %vm219_vm1, %v7054_v2  ;;  %5267 = vmatmul.msk.bf16.gmra.mxu1 %vm219_vm1, %v7054_v2 }
 0x291   :  { %v1395_v35 = vadd.f32 %v7625_v12, %v1277_v19 }
 0x292   :  { %v1506_v5 = vmax.f32 %v1394_v1, 0.0 }
 0x293   :  { %v1507_v24 = vmax.f32 %v1395_v35, 0.0 }
 0x294   :  { %v1617_v29 = vmax.f32 %v1502_v38, %v1506_v5 }
 0x295   :  { %v1618_v58 = vmax.f32 %v1503_v54, %v1507_v24  ;;  %v992_v59 = vpop.f32.mrf.mxu0 }
 0x296   :  { %v1278_v53 = vadd.f32 %v992_v59, %v7056_v3  ;;  %v1141_v23 = vpop.f32.mrf.mxu1 }
 0x297   :  { %v1621_v46 = vpack.c.bf16 %v1618_v58, %v1617_v29  ;;  %v1279_v2 = vadd.f32 %v1141_v23, %v7058_v7 }
 0x298   :  { %v1396_v45 = vadd.f32 %v7622_v31, %v1278_v53 }
 0x299   :  { %1623 = vst.msk [vmem:[#allocation2 + $0x10] sm:$0xff] %vm7641_vm4, %v1621_v46  ;;  %v1397_v49 = vadd.f32 %v7625_v12, %v1279_v2 }
 0x29a   :  { %v1508_v48 = vmax.f32 %v1396_v45, 0.0 }
 0x29b   :  { %v1509_v56 = vmax.f32 %v1397_v49, 0.0 }
 0x29c   :  { %v1619_v43 = vmax.f32 %v1504_v32, %v1508_v48 }
 0x29d   :  { %v1620_v60 = vmax.f32 %v1505_v14, %v1509_v56  ;;  %v995_v3 = vpop.f32.mrf.mxu0 }
 0x29e   :  { %v1144_v17 = vpop.f32.mrf.mxu1  ;;  %v1280_v54 = vadd.f32 %v995_v3, %v7068_v21 }
 0x29f   :  { %v1622_v62 = vpack.c.bf16 %v1620_v60, %v1619_v43  ;;  %v1281_v8 = vadd.f32 %v1144_v17, %v7070_v25 }
 0x2a0   :  { %5240 = vmatmul.msk.bf16.gmra.mxu0 %vm219_vm1, %v7078_v33  ;;  %5268 = vmatmul.msk.bf16.gmra.mxu1 %vm219_vm1, %v7078_v33  ;;  %v5294_v19 = vld [vmem:[#allocation2 + $0x10] sm:$0xf]  ;;  %v6385_v35 = vld [vmem:[#allocation2 + $0x14] sm:$0xf]  ;;  %v1398_v24 = vadd.f32 %v7622_v31, %v1280_v54 }
 0x2a1   :  { %1624 = vst.msk [vmem:[#allocation2 + $0x18] sm:$0xff] %vm7641_vm4, %v1622_v62  ;;  %v1399_v59 = vadd.f32 %v7625_v12, %v1281_v8 }
 0x2a2   :  { %v1510_v25 = vmax.f32 %v1398_v24, 0.0 }
 0x2a5   :  { %v997_v7 = vpop.f32.mrf.mxu0 }
 0x2a6   :  { %v1146_v47 = vpop.f32.mrf.mxu1  ;;  %v1282_v23 = vadd.f32 %v997_v7, %v7080_v34 }
 0x2a7   :  { %v1283_v46 = vadd.f32 %v1146_v47, %v7082_v39 }
 0x2a8   :  { %v6386_v1 = vld [vmem:[#allocation2 + $0x14] sm:$0xf0]  ;;  %v5296_v38 = vld [vmem:[#allocation2 + $0x18] sm:$0xf0]  ;;  %v1400_v32 = vadd.f32 %v7622_v31, %v1282_v23 }
 0x2a9   :  { %v7693_v30 = vor.u32 %v6386_v1, %v5294_v19  ;;  %v7695_v5 = vor.u32 %v6385_v35, %v5296_v38  ;;  %v1401_v56 = vadd.f32 %v7625_v12, %v1283_v46 }
 0x2aa   :  { %v1512_v60 = vmax.f32 %v1400_v32, 0.0 }
 0x2ab   :  { %2043 = vmatmul.bf16.gmra.mxu2 %v7693_v30  ;;  %5453 = vmatmul.msk.bf16.gmra.mxu3 %vm1987_vm5, %v7695_v5  ;;  %v1513_v17 = vmax.f32 %v1401_v56, 0.0 }
 0x2ad   :  { %v1000_v33 = vpop.f32.mrf.mxu0 }
 0x2ae   :  { %v1284_v29 = vadd.f32 %v1000_v33, %v7092_v42  ;;  %v1149_v58 = vpop.f32.mrf.mxu1  ;;  %v1511_v42 = vmax.f32 %v1399_v59, 0.0 }
 0x2af   :  { %v1285_v20 = vadd.f32 %v1149_v58, %v7094_v51 }
 0x2b0   :  { %v1402_v53 = vadd.f32 %v7622_v31, %v1284_v29  ;;  %5241 = vmatmul.msk.bf16.gmra.mxu0 %vm219_vm1, %v7102_v61  ;;  %5269 = vmatmul.msk.bf16.gmra.mxu1 %vm219_vm1, %v7102_v61 }
 0x2b1   :  { %v1403_v21 = vadd.f32 %v7625_v12, %v1285_v20 }
 0x2b2   :  { %v1514_v40 = vmax.f32 %v1402_v53, 0.0 }
 0x2b3   :  { %v1515_v2 = vmax.f32 %v1403_v21, 0.0 }
 0x2b4   :  { %v1625_v45 = vmax.f32 %v1510_v25, %v1514_v40 }
 0x2b5   :  { %v1626_v51 = vmax.f32 %v1511_v42, %v1515_v2  ;;  %v1002_v49 = vpop.f32.mrf.mxu0 }
 0x2b6   :  { %v1286_v48 = vadd.f32 %v1002_v49, %v7104_v63  ;;  %v1151_v14 = vpop.f32.mrf.mxu1 }
 0x2b7   :  { %v1629_v43 = vpack.c.bf16 %v1626_v51, %v1625_v45  ;;  %v1287_v61 = vadd.f32 %v1151_v14, %v7106_v6 }
 0x2b8   :  { %v1404_v34 = vadd.f32 %v7622_v31, %v1286_v48 }
 0x2b9   :  { %1631 = vst.msk [vmem:[#allocation2 + $0x20] sm:$0xff] %vm7641_vm4, %v1629_v43  ;;  %v1405_v39 = vadd.f32 %v7625_v12, %v1287_v61 }
 0x2ba   :  { %v1516_v3 = vmax.f32 %v1404_v34, 0.0 }
 0x2bb   :  { %v1517_v62 = vmax.f32 %v1405_v39, 0.0 }
 0x2bc   :  { %v1627_v7 = vmax.f32 %v1512_v60, %v1516_v3 }
 0x2bd   :  { %v1628_v47 = vmax.f32 %v1513_v17, %v1517_v62  ;;  %v1005_v63 = vpop.f32.mrf.mxu0 }
 0x2be   :  { %v1154_v19 = vpop.f32.mrf.mxu1  ;;  %v1288_v58 = vadd.f32 %v1005_v63, %v7116_v11 }
 0x2bf   :  { %v1630_v1 = vpack.c.bf16 %v1628_v47, %v1627_v7  ;;  %v1289_v59 = vadd.f32 %v1154_v19, %v7118_v16 }
 0x2c0   :  { %5242 = vmatmul.msk.bf16.gmra.mxu0 %vm219_vm1, %v7126_v26  ;;  %5270 = vmatmul.msk.bf16.gmra.mxu1 %vm219_vm1, %v7126_v26  ;;  %v5302_v38 = vld [vmem:[#allocation2 + $0x20] sm:$0xf]  ;;  %v6387_v8 = vld [vmem:[#allocation2 + $0x24] sm:$0xf]  ;;  %v1406_v20 = vadd.f32 %v7622_v31, %v1288_v58 }
 0x2c1   :  { %1632 = vst.msk [vmem:[#allocation2 + $0x28] sm:$0xff] %vm7641_vm4, %v1630_v1  ;;  %v1407_v25 = vadd.f32 %v7625_v12, %v1289_v59  ;;  %v9412_v59 = vld [vmem:[#allocation19_spill] sm:$0xff] }
 0x2c2   :  { %v1518_v16 = vmax.f32 %v1406_v20, 0.0 }
 0x2c5   :  { %v1007_v6 = vpop.f32.mrf.mxu0 }
 0x2c6   :  { %v1156_v35 = vpop.f32.mrf.mxu1  ;;  %v1290_v42 = vadd.f32 %v1007_v6, %v7128_v27 }
 0x2c7   :  { %v1291_v2 = vadd.f32 %v1156_v35, %v7130_v36 }
 0x2c8   :  { %v6388_v54 = vld [vmem:[#allocation2 + $0x24] sm:$0xf0]  ;;  %v5304_v33 = vld [vmem:[#allocation2 + $0x28] sm:$0xf0]  ;;  %v1408_v32 = vadd.f32 %v7622_v31, %v1290_v42  ;;  %v9415_v42 = vld [vmem:[#allocation17_spill] sm:$0xff] }
 0x2c9   :  { %v7728_v24 = vor.u32 %v6388_v54, %v5302_v38  ;;  %v7730_v29 = vor.u32 %v6387_v8, %v5304_v33  ;;  %v1409_v56 = vadd.f32 %v7625_v12, %v1291_v2  ;;  %v9411_v8 = vld [vmem:[#allocation16_spill] sm:$0xff]  ;;  %v7785_v2 = vpop.f32.mrf.mxu3 }
 0x2ca   :  { %v1520_v61 = vmax.f32 %v1408_v32, 0.0 }
 0x2cb   :  { %2048 = vmatmul.bf16.gmra.mxu2 %v7728_v24  ;;  %5454 = vmatmul.msk.bf16.gmra.mxu3 %vm1987_vm5, %v7730_v29  ;;  %v1521_v39 = vmax.f32 %v1409_v56, 0.0 }
 0x2cd   :  { %v1010_v26 = vpop.f32.mrf.mxu0 }
 0x2ce   :  { %v1292_v53 = vadd.f32 %v1010_v26, %v7140_v41  ;;  %v1159_v21 = vpop.f32.mrf.mxu1  ;;  %v1519_v41 = vmax.f32 %v1407_v25, 0.0 }
 0x2cf   :  { %v1293_v23 = vadd.f32 %v1159_v21, %v7142_v52  ;;  %v9413_v21 = vld [vmem:[#allocation20_spill] sm:$0xff] }
 0x2d0   :  { %v1410_v40 = vadd.f32 %v7622_v31, %v1292_v53  ;;  %5243 = vmatmul.msk.bf16.gmra.mxu0 %vm219_vm1, %v7150_v4  ;;  %5271 = vmatmul.msk.bf16.gmra.mxu1 %vm219_vm1, %v7150_v4 }
 0x2d1   :  { %v1411_v11 = vadd.f32 %v7625_v12, %v1293_v23 }
 0x2d2   :  { %v1522_v46 = vmax.f32 %v1410_v40, 0.0 }
 0x2d3   :  { %v1523_v45 = vmax.f32 %v1411_v11, 0.0  ;;  %v7782_v11 = vpop.f32.mrf.mxu2 }
 0x2d4   :  { %v1633_v51 = vmax.f32 %v1518_v16, %v1522_v46 }
 0x2d5   :  { %v1634_v52 = vmax.f32 %v1519_v41, %v1523_v45  ;;  %v1012_v49 = vpop.f32.mrf.mxu0 }
 0x2d6   :  { %v1294_v48 = vadd.f32 %v1012_v49, %v7152_v9  ;;  %v1161_v14 = vpop.f32.mrf.mxu1 }
 0x2d7   :  { %v1637_v43 = vpack.c.bf16 %v1634_v52, %v1633_v51  ;;  %v1295_v4 = vadd.f32 %v1161_v14, %v7154_v15  ;;  %v9416_v51 = vld [vmem:[#allocation18_spill] sm:$0xff] }
 0x2d8   :  { %v1412_v27 = vadd.f32 %v7622_v31, %v1294_v48 }
 0x2d9   :  { %1639 = vst.msk [vmem:[#allocation2 + $0x30] sm:$0xff] %vm7641_vm4, %v1637_v43  ;;  %v1413_v36 = vadd.f32 %v7625_v12, %v1295_v4  ;;  %v9417_v43 = vld [vmem:[#allocation22_spill] sm:$0xff] }
 0x2da   :  { %v1524_v34 = vmax.f32 %v1412_v27, 0.0 }
 0x2db   :  { %v1525_v60 = vmax.f32 %v1413_v36, 0.0 }
 0x2dc   :  { %v1635_v3 = vmax.f32 %v1520_v61, %v1524_v34  ;;  %v9418_v34 = vld [vmem:[#allocation23_spill] sm:$0xff] }
 0x2dd   :  { %v1636_v17 = vmax.f32 %v1521_v39, %v1525_v60  ;;  %v1015_v9 = vpop.f32.mrf.mxu0 }
 0x2de   :  { %v1164_v62 = vpop.f32.mrf.mxu1  ;;  %v1296_v54 = vadd.f32 %v1015_v9, %v7164_v22  ;;  %v9414_v22 = vld [vmem:[#allocation21_spill] sm:$0xff] }
 0x2df   :  { %v1638_v7 = vpack.c.bf16 %v1636_v17, %v1635_v3  ;;  %v1297_v33 = vadd.f32 %v1164_v62, %v9411_v8  ;;  %v9419_v8 = vld [vmem:[#allocation26_spill] sm:$0xff] }
 0x2e0   :  { %5244 = vmatmul.msk.bf16.gmra.mxu0 %vm219_vm1, %v7174_v55  ;;  %5272 = vmatmul.msk.bf16.gmra.mxu1 %vm219_vm1, %v7174_v55  ;;  %v5310_v63 = vld [vmem:[#allocation2 + $0x30] sm:$0xf]  ;;  %v6389_v1 = vld [vmem:[#allocation2 + $0x34] sm:$0xf]  ;;  %v1414_v58 = vadd.f32 %v7622_v31, %v1296_v54 }
 0x2e1   :  { %1640 = vst.msk [vmem:[#allocation2 + $0x38] sm:$0xff] %vm7641_vm4, %v1638_v7  ;;  %v1415_v53 = vadd.f32 %v7625_v12, %v1297_v33  ;;  %v5670_v33 = vld [vmem:[#allocation8 + $0xd0] sm:$0xf] }
 0x2e2   :  { %v1526_v16 = vmax.f32 %v1414_v58, 0.0 }
 0x2e3   :  { %v1527_v45 = vmax.f32 %v1415_v53, 0.0 }
 0x2e5   :  { %v1017_v15 = vpop.f32.mrf.mxu0 }
 0x2e6   :  { %v1166_v47 = vpop.f32.mrf.mxu1  ;;  %v1298_v46 = vadd.f32 %v1017_v15, %v9415_v42  ;;  %v7796_v15 = vpop.f32.mrf.mxu2 }
 0x2e7   :  { %v1299_v52 = vadd.f32 %v1166_v47, %v9416_v51 }
 0x2e8   :  { %v6390_v19 = vld [vmem:[#allocation2 + $0x34] sm:$0xf0]  ;;  %v5312_v6 = vld [vmem:[#allocation2 + $0x38] sm:$0xf0]  ;;  %v1416_v56 = vadd.f32 %v7622_v31, %v1298_v46 }
 0x2e9   :  { %v7763_v35 = vor.u32 %v6390_v19, %v5310_v63  ;;  %v7765_v38 = vor.u32 %v6389_v1, %v5312_v6  ;;  %v1417_v36 = vadd.f32 %v7625_v12, %v1299_v52  ;;  %v7798_v63 = vpop.f32.mrf.mxu3  ;;  %v9421_v52 = vld [vmem:[#allocation25_spill] sm:$0xff] }
 0x2ea   :  { %v1528_v17 = vmax.f32 %v1416_v56, 0.0 }
 0x2eb   :  { %2053 = vmatmul.bf16.gmra.mxu2 %v7763_v35  ;;  %5455 = vmatmul.msk.bf16.gmra.mxu3 %vm1987_vm5, %v7765_v38  ;;  %v1529_v62 = vmax.f32 %v1417_v36, 0.0  ;;  %v9423_v36 = vld [vmem:[#allocation30_spill] sm:$0xff] }
 0x2ed   :  { %v1020_v55 = vpop.f32.mrf.mxu0 }
 0x2ee   :  { %v1300_v26 = vadd.f32 %v1020_v55, %v9412_v59  ;;  %v1169_v20 = vpop.f32.mrf.mxu1  ;;  %v6481_v55 = vld [vmem:[#allocation8 + $0xd4] sm:$0xf0]  ;;  %v6480_v59 = vld [vmem:[#allocation8 + $0xd4] sm:$0xf] }
 0x2ef   :  { %v1301_v25 = vadd.f32 %v1169_v20, %v9413_v21  ;;  %v5671_v58 = vor.u32 %v6481_v55, %v5670_v33  ;;  %v7806_v21 = vpop.f32.mrf.mxu2 }
 0x2f0   :  { %v1418_v23 = vadd.f32 %v7622_v31, %v1300_v26  ;;  %5245 = vmatmul.msk.bf16.gmra.mxu0 %vm219_vm1, %v9414_v22  ;;  %5273 = vmatmul.msk.bf16.gmra.mxu1 %vm219_vm1, %v9414_v22  ;;  %v5672_v26 = vld [vmem:[#allocation8 + $0xd8] sm:$0xf0] }
 0x2f1   :  { %v1419_v40 = vadd.f32 %v7625_v12, %v1301_v25  ;;  %v5675_v20 = vor.u32 %v6480_v59, %v5672_v26  ;;  %2791 = vmatpush.bf16.msra.mxu0 %v5671_v58  ;;  %v9427_v59 = vld [vmem:[#allocation32_spill] sm:$0xff] }
 0x2f2   :  { %v1530_v41 = vmax.f32 %v1418_v23, 0.0  ;;  %v7808_v23 = vpop.f32.mrf.mxu3 }
 0x2f3   :  { %v1531_v49 = vmax.f32 %v1419_v40, 0.0  ;;  %2870 = vmatpush.bf16.msra.mxu1 %v5675_v20 }
 0x2f4   :  { %v1641_v32 = vmax.f32 %v1526_v16, %v1530_v41 }
 0x2f5   :  { %v1642_v48 = vmax.f32 %v1527_v45, %v1531_v49  ;;  %v1022_v14 = vpop.f32.mrf.mxu0  ;;  %v9420_v45 = vld [vmem:[#allocation24_spill] sm:$0xff] }
 0x2f6   :  { %v1302_v4 = vadd.f32 %v1022_v14, %v9417_v43  ;;  %v1171_v27 = vpop.f32.mrf.mxu1  ;;  %v9422_v14 = vld [vmem:[#allocation29_spill] sm:$0xff] }
 0x2f7   :  { %v1645_v61 = vpack.c.bf16 %v1642_v48, %v1641_v32  ;;  %v1303_v39 = vadd.f32 %v1171_v27, %v9418_v34 }
 0x2f8   :  { %v1420_v60 = vadd.f32 %v7622_v31, %v1302_v4 }
 0x2f9   :  { %1647 = vst.msk [vmem:[#allocation2 + $0x40] sm:$0xff] %vm7641_vm4, %v1645_v61  ;;  %v1421_v3 = vadd.f32 %v7625_v12, %v1303_v39 }
 0x2fa   :  { %v1532_v9 = vmax.f32 %v1420_v60, 0.0 }
 0x2fb   :  { %v1533_v7 = vmax.f32 %v1421_v3, 0.0  ;;  %v9424_v3 = vld [vmem:[#allocation31_spill] sm:$0xff] }
 0x2fc   :  { %v1643_v47 = vmax.f32 %v1528_v17, %v1532_v9 }
 0x2fd   :  { %v1644_v19 = vmax.f32 %v1529_v62, %v1533_v7  ;;  %v1025_v1 = vpop.f32.mrf.mxu0  ;;  %v9425_v62 = vld [vmem:[#allocation27_spill] sm:$0xff] }
 0x2fe   :  { %v1174_v6 = vpop.f32.mrf.mxu1  ;;  %v1304_v51 = vadd.f32 %v1025_v1, %v9420_v45  ;;  %v9426_v1 = vld [vmem:[#allocation28_spill] sm:$0xff] }
 0x2ff   :  { %v1646_v54 = vpack.c.bf16 %v1644_v19, %v1643_v47  ;;  %v1305_v49 = vadd.f32 %v1174_v6, %v9421_v52 }
 0x300   :  { %5246 = vmatmul.msk.bf16.gmra.mxu0 %vm219_vm1, %v9419_v8  ;;  %5274 = vmatmul.msk.bf16.gmra.mxu1 %vm219_vm1, %v9419_v8  ;;  %v5318_v22 = vld [vmem:[#allocation2 + $0x40] sm:$0xf]  ;;  %v6391_v16 = vld [vmem:[#allocation2 + $0x44] sm:$0xf]  ;;  %v1422_v48 = vadd.f32 %v7622_v31, %v1304_v51 }
 0x301   :  { %1648 = vst.msk [vmem:[#allocation2 + $0x48] sm:$0xff] %vm7641_vm4, %v1646_v54  ;;  %v1423_v27 = vadd.f32 %v7625_v12, %v1305_v49 }
 0x302   :  { %v1534_v9 = vmax.f32 %v1422_v48, 0.0 }
 0x303   :  { %v1535_v19 = vmax.f32 %v1423_v27, 0.0 }
 0x305   :  { %v1027_v53 = vpop.f32.mrf.mxu0 }
 0x306   :  { %v1176_v25 = vpop.f32.mrf.mxu1  ;;  %v1306_v7 = vadd.f32 %v1027_v53, %v9425_v62 }
 0x307   :  { %v1307_v6 = vadd.f32 %v1176_v25, %v9426_v1  ;;  %v9431_v1 = vld [vmem:[#allocation35_spill] sm:$0xff] }
 0x308   :  { %v6392_v40 = vld [vmem:[#allocation2 + $0x44] sm:$0xf0]  ;;  %v5320_v42 = vld [vmem:[#allocation2 + $0x48] sm:$0xf0]  ;;  %v1424_v58 = vadd.f32 %v7622_v31, %v1306_v7 }
 0x309   :  { %v7810_v46 = vor.u32 %v6392_v40, %v5318_v22  ;;  %v7812_v41 = vor.u32 %v6391_v16, %v5320_v42  ;;  %v1425_v22 = vadd.f32 %v7625_v12, %v1307_v6  ;;  %v9428_v16 = vld [vmem:[#allocation33_spill] sm:$0xff] }
 0x30a   :  { %v1536_v45 = vmax.f32 %v1424_v58, 0.0 }
 0x30b   :  { %2058 = vmatmul.bf16.gmra.mxu2 %v7810_v46  ;;  %5456 = vmatmul.msk.bf16.gmra.mxu3 %vm1987_vm5, %v7812_v41  ;;  %v1537_v52 = vmax.f32 %v1425_v22, 0.0 }
 0x30d   :  { %v1030_v32 = vpop.f32.mrf.mxu0 }
 0x30e   :  { %v1308_v56 = vadd.f32 %v1030_v32, %v9422_v14  ;;  %v1179_v43 = vpop.f32.mrf.mxu1  ;;  %v2039_v4 = vpop.f32.mrf.mxu2 }
 0x30f   :  { %v1309_v61 = vadd.f32 %v1179_v43, %v9423_v36  ;;  %v2118_v34 = vpop.f32.mrf.mxu3 }
 0x310   :  { %v1426_v39 = vadd.f32 %v7622_v31, %v1308_v56  ;;  %v7824_v60 = vadd.f32 %v2118_v34, %v2039_v4  ;;  %5247 = vmatmul.msk.bf16.gmra.mxu0 %vm219_vm1, %v9424_v3  ;;  %5275 = vmatmul.msk.bf16.gmra.mxu1 %vm219_vm1, %v9424_v3  ;;  %v9429_v4 = vld [vmem:[#allocation36_spill] sm:$0xff] }
 0x311   :  { %v1427_v17 = vadd.f32 %v7625_v12, %v1309_v61 }
 0x312   :  { %v1538_v47 = vmax.f32 %v1426_v39, 0.0 }
 0x313   :  { %v1539_v54 = vmax.f32 %v1427_v17, 0.0 }
 0x314   :  { %v1649_v8 = vmax.f32 %v1534_v9, %v1538_v47  ;;  %v9430_v47 = vld [vmem:[#allocation34_spill] sm:$0xff] }
 0x315   :  { %v1650_v33 = vmax.f32 %v1535_v19, %v1539_v54  ;;  %v1032_v55 = vpop.f32.mrf.mxu0 }
 0x316   :  { %v1310_v26 = vadd.f32 %v1032_v55, %v9427_v59  ;;  %v1181_v20 = vpop.f32.mrf.mxu1  ;;  %v7847_v36 = vpop.f32.mrf.mxu2 }
 0x317   :  { %v1653_v40 = vpack.c.bf16 %v1650_v33, %v1649_v8  ;;  %v1311_v42 = vadd.f32 %v1181_v20, %v9428_v16  ;;  %v7849_v34 = vpop.f32.mrf.mxu3  ;;  %v9432_v33 = vld [vmem:[#allocation39_spill] sm:$0xff]  ;;  %v9433_v20 = vld [vmem:[#allocation40_spill] sm:$0xff] }
 0x318   :  { %v1428_v53 = vadd.f32 %v7622_v31, %v1310_v26 }
 0x319   :  { %1655 = vst.msk [vmem:[#allocation2 + $0x50] sm:$0xff] %vm7641_vm4, %v1653_v40  ;;  %v1429_v25 = vadd.f32 %v7625_v12, %v1311_v42 }
 0x31a   :  { %v1540_v51 = vmax.f32 %v1428_v53, 0.0  ;;  %v9434_v53 = vld [vmem:[#allocation41_spill] sm:$0xff] }
 0x31b   :  { %v1541_v49 = vmax.f32 %v1429_v25, 0.0 }
 0x31c   :  { %v1651_v32 = vmax.f32 %v1536_v45, %v1540_v51  ;;  %v9435_v51 = vld [vmem:[#allocation37_spill] sm:$0xff] }
 0x31d   :  { %v1652_v48 = vmax.f32 %v1537_v52, %v1541_v49  ;;  %v1035_v14 = vpop.f32.mrf.mxu0 }
 0x31e   :  { %v1184_v56 = vpop.f32.mrf.mxu1  ;;  %v1312_v19 = vadd.f32 %v1035_v14, %v9430_v47 }
 0x31f   :  { %v1654_v43 = vpack.c.bf16 %v1652_v48, %v1651_v32  ;;  %v1313_v6 = vadd.f32 %v1184_v56, %v9431_v1  ;;  %v9436_v48 = vld [vmem:[#allocation38_spill] sm:$0xff] }
 0x320   :  { %5248 = vmatmul.msk.bf16.gmra.mxu0 %vm219_vm1, %v9429_v4  ;;  %5276 = vmatmul.msk.bf16.gmra.mxu1 %vm219_vm1, %v9429_v4  ;;  %v5326_v39 = vld [vmem:[#allocation2 + $0x50] sm:$0xf]  ;;  %v6393_v17 = vld [vmem:[#allocation2 + $0x54] sm:$0xf]  ;;  %v1430_v8 = vadd.f32 %v7622_v31, %v1312_v19 }
 0x321   :  { %1656 = vst.msk [vmem:[#allocation2 + $0x58] sm:$0xff] %vm7641_vm4, %v1654_v43  ;;  %v1431_v26 = vadd.f32 %v7625_v12, %v1313_v6  ;;  %v9438_v6 = vld [vmem:[#allocation43_spill] sm:$0xff] }
 0x322   :  { %v1542_v45 = vmax.f32 %v1430_v8, 0.0 }
 0x323   :  { %v1543_v32 = vmax.f32 %v1431_v26, 0.0 }
 0x325   :  { %v1037_v27 = vpop.f32.mrf.mxu0 }
 0x326   :  { %v1186_v61 = vpop.f32.mrf.mxu1  ;;  %v1314_v52 = vadd.f32 %v1037_v27, %v9435_v51  ;;  %v6478_v51 = vld [vmem:[#allocation8 + $0xc4] sm:$0xf] }
 0x327   :  { %v1315_v14 = vadd.f32 %v1186_v61, %v9436_v48 }
 0x328   :  { %v6394_v3 = vld [vmem:[#allocation2 + $0x54] sm:$0xf0]  ;;  %v5328_v9 = vld [vmem:[#allocation2 + $0x58] sm:$0xf0] }
 0x329   :  { %v7851_v62 = vor.u32 %v6394_v3, %v5326_v39  ;;  %v7853_v7 = vor.u32 %v6393_v17, %v5328_v9  ;;  %v1432_v3 = vadd.f32 %v7622_v31, %v1314_v52  ;;  %v9437_v17 = vld [vmem:[#allocation42_spill] sm:$0xff]  ;;  %v1433_v19 = vadd.f32 %v7625_v12, %v1315_v14  ;;  %v5664_v52 = vld [vmem:[#allocation8 + $0xc8] sm:$0xf0] }
 0x32b   :  { %2063 = vmatmul.bf16.gmra.mxu2 %v7851_v62  ;;  %5457 = vmatmul.msk.bf16.gmra.mxu3 %vm1987_vm5, %v7853_v7  ;;  %v1544_v8 = vmax.f32 %v1432_v3, 0.0 }
 0x32d   :  { %v1040_v54 = vpop.f32.mrf.mxu0 }
 0x32e   :  { %v1316_v55 = vadd.f32 %v1040_v54, %v9432_v33  ;;  %v1189_v58 = vpop.f32.mrf.mxu1  ;;  %v2044_v59 = vpop.f32.mrf.mxu2 }
 0x32f   :  { %v1317_v22 = vadd.f32 %v1189_v58, %v9433_v20  ;;  %v2123_v40 = vpop.f32.mrf.mxu3 }
 0x330   :  { %v1434_v16 = vadd.f32 %v7622_v31, %v1316_v55  ;;  %v7865_v42 = vadd.f32 %v2123_v40, %v2044_v59  ;;  %5249 = vmatmul.msk.bf16.gmra.mxu0 %vm219_vm1, %v9434_v53  ;;  %5277 = vmatmul.msk.bf16.gmra.mxu1 %vm219_vm1, %v9434_v53  ;;  %v1545_v55 = vmax.f32 %v1433_v19, 0.0  ;;  %v6479_v53 = vld [vmem:[#allocation8 + $0xc4] sm:$0xf0] }
 0x331   :  { %v1435_v25 = vadd.f32 %v7625_v12, %v1317_v22 }
 0x332   :  { %v1546_v49 = vmax.f32 %v1434_v16, 0.0  ;;  %v5662_v16 = vld [vmem:[#allocation8 + $0xc0] sm:$0xf] }
 0x333   :  { %v1547_v56 = vmax.f32 %v1435_v25, 0.0  ;;  %v6432_v25 = vld [vmem:[%s9279_s3 + $0xa8] sm:$0xff] }
 0x334   :  { %v1657_v43 = vmax.f32 %v1542_v45, %v1546_v49  ;;  %v5663_v45 = vor.u32 %v6479_v53, %v5662_v16  ;;  %v6438_v49 = vld [vmem:[%s9279_s3 + $0xd8] sm:$0xff]  ;;  %2301 = vmatpush.bf16.msra.mxu2 %v6432_v25  ;;  %v9444_v16 = vld [vmem:[#allocation50_spill] sm:$0xff] }
 0x335   :  { %v1658_v4 = vmax.f32 %v1543_v32, %v1547_v56  ;;  %v1042_v39 = vpop.f32.mrf.mxu0  ;;  %v5667_v32 = vor.u32 %v6478_v51, %v5664_v52  ;;  %2382 = vmatpush.bf16.msra.mxu3 %v6438_v49 }
 0x336   :  { %v1318_v9 = vadd.f32 %v1042_v39, %v9437_v17  ;;  %v1191_v47 = vpop.f32.mrf.mxu1  ;;  %2792 = vmatpush.bf16.msra.mxu0 %v5663_v45  ;;  %v9445_v45 = vld [vmem:[#allocation46_spill] sm:$0xff] }
 0x337   :  { %v1661_v1 = vpack.c.bf16 %v1658_v4, %v1657_v43  ;;  %v1319_v54 = vadd.f32 %v1191_v47, %v9438_v6  ;;  %2871 = vmatpush.bf16.msra.mxu1 %v5667_v32  ;;  %v7896_v56 = vpop.f32.mrf.mxu3  ;;  %v9439_v47 = vld [vmem:[#allocation44_spill] sm:$0xff]  ;;  %v9446_v32 = vld [vmem:[#allocation47_spill] sm:$0xff] }
 0x338   :  { %v1436_v27 = vadd.f32 %v7622_v31, %v1318_v9 }
 0x339   :  { %1663 = vst.msk [vmem:[#allocation2 + $0x60] sm:$0xff] %vm7641_vm4, %v1661_v1  ;;  %v1437_v61 = vadd.f32 %v7625_v12, %v1319_v54  ;;  %v9440_v1 = vld [vmem:[#allocation45_spill] sm:$0xff] }
 0x33a   :  { %v1548_v33 = vmax.f32 %v1436_v27, 0.0 }
 0x33b   :  { %v1549_v58 = vmax.f32 %v1437_v61, 0.0  ;;  %v9441_v61 = vld [vmem:[#allocation48_spill] sm:$0xff] }
 0x33c   :  { %v1659_v59 = vmax.f32 %v1544_v8, %v1548_v33 }
 0x33d   :  { %v1660_v26 = vmax.f32 %v1545_v55, %v1549_v58  ;;  %v1045_v20 = vpop.f32.mrf.mxu0 }
 0x33e   :  { %v1194_v22 = vpop.f32.mrf.mxu1  ;;  %v1320_v19 = vadd.f32 %v1045_v20, %v9439_v47 }
 0x33f   :  { %v1662_v40 = vpack.c.bf16 %v1660_v26, %v1659_v59  ;;  %v1321_v6 = vadd.f32 %v1194_v22, %v9440_v1  ;;  %v9442_v59 = vld [vmem:[#allocation49_spill] sm:$0xff]  ;;  %v9447_v1 = vld [vmem:[#allocation51_spill] sm:$0xff] }
 0x340   :  { %5250 = vmatmul.msk.bf16.gmra.mxu0 %vm219_vm1, %v7324_v37  ;;  %5278 = vmatmul.msk.bf16.gmra.mxu1 %vm219_vm1, %v7324_v37  ;;  %v7894_v37 = vpop.f32.mrf.mxu2  ;;  %v5334_v43 = vld [vmem:[#allocation2 + $0x60] sm:$0xf]  ;;  %v6395_v39 = vld [vmem:[#allocation2 + $0x64] sm:$0xf]  ;;  %v1438_v27 = vadd.f32 %v7622_v31, %v1320_v19 }
 0x341   :  { %1664 = vst.msk [vmem:[#allocation2 + $0x68] sm:$0xff] %vm7641_vm4, %v1662_v40  ;;  %v1439_v58 = vadd.f32 %v7625_v12, %v1321_v6 }
 0x342   :  { %v1550_v25 = vmax.f32 %v1438_v27, 0.0 }
 0x343   :  { %v1551_v49 = vmax.f32 %v1439_v58, 0.0 }
 0x345   :  { %v1047_v48 = vpop.f32.mrf.mxu0 }
 0x346   :  { %v1196_v14 = vpop.f32.mrf.mxu1  ;;  %v1322_v51 = vadd.f32 %v1047_v48, %v9445_v45  ;;  %v9449_v45 = vld [vmem:[#allocation58_spill] sm:$0xff] }
 0x348   :  { %v6396_v4 = vld [vmem:[#allocation2 + $0x64] sm:$0xf0]  ;;  %v5336_v3 = vld [vmem:[#allocation2 + $0x68] sm:$0xf0]  ;;  %v1440_v19 = vadd.f32 %v7622_v31, %v1322_v51  ;;  %v6431_v51 = vld [vmem:[%s9279_s3 + $0xa0] sm:$0xff] }
 0x349   :  { %v7898_v17 = vor.u32 %v6396_v4, %v5334_v43  ;;  %v7900_v9 = vor.u32 %v6395_v39, %v5336_v3  ;;  %v1323_v43 = vadd.f32 %v1196_v14, %v9446_v32  ;;  %2302 = vmatpush.bf16.msra.mxu2 %v6431_v51 }
 0x34b   :  { %2068 = vmatmul.bf16.gmra.mxu2 %v7898_v17  ;;  %5458 = vmatmul.msk.bf16.gmra.mxu3 %vm1987_vm5, %v7900_v9 }
 0x34d   :  { %v1050_v54 = vpop.f32.mrf.mxu0 }
 0x34e   :  { %v1324_v8 = vadd.f32 %v1050_v54, %v9441_v61  ;;  %v1199_v33 = vpop.f32.mrf.mxu1  ;;  %v2049_v55 = vpop.f32.mrf.mxu2  ;;  %v1441_v61 = vadd.f32 %v7625_v12, %v1323_v43 }
 0x34f   :  { %v1325_v26 = vadd.f32 %v1199_v33, %v9442_v59  ;;  %v2128_v40 = vpop.f32.mrf.mxu3  ;;  %v9448_v33 = vld [vmem:[#allocation52_spill] sm:$0xff] }
 0x350   :  { %v1442_v20 = vadd.f32 %v7622_v31, %v1324_v8  ;;  %v7912_v22 = vadd.f32 %v2128_v40, %v2049_v55  ;;  %5251 = vmatmul.msk.bf16.gmra.mxu0 %vm219_vm1, %v9444_v16  ;;  %5279 = vmatmul.msk.bf16.gmra.mxu1 %vm219_vm1, %v9444_v16  ;;  %v1552_v55 = vmax.f32 %v1440_v19, 0.0  ;;  %v1553_v59 = vmax.f32 %v1441_v61, 0.0 }
 0x351   :  { %v1443_v53 = vadd.f32 %v7625_v12, %v1325_v26 }
 0x352   :  { %9443 = vst [vmem:[#allocation16_spill] sm:$0xff] %v7912_v22  ;;  %v1554_v52 = vmax.f32 %v1442_v20, 0.0 }
 0x353   :  { %v1555_v4 = vmax.f32 %v1443_v53, 0.0 }
 0x354   :  { %v1665_v39 = vmax.f32 %v1550_v25, %v1554_v52  ;;  %v6437_v52 = vld [vmem:[%s9279_s3 + $0xd0] sm:$0xff] }
 0x355   :  { %v1666_v3 = vmax.f32 %v1551_v49, %v1555_v4  ;;  %v1052_v47 = vpop.f32.mrf.mxu0  ;;  %2383 = vmatpush.bf16.msra.mxu3 %v6437_v52 }
 0x356   :  { %v1326_v6 = vadd.f32 %v1052_v47, %v9447_v1  ;;  %v1201_v54 = vpop.f32.mrf.mxu1  ;;  %v7941_v32 = vpop.f32.mrf.mxu2 }
 0x357   :  { %v1669_v8 = vpack.c.bf16 %v1666_v3, %v1665_v39  ;;  %v1327_v27 = vadd.f32 %v1201_v54, %v9448_v33  ;;  %9450 = vst [vmem:[#allocation19_spill] sm:$0xff] %v7941_v32  ;;  %v7943_v4 = vpop.f32.mrf.mxu3  ;;  %v9452_v54 = vld [vmem:[#allocation53_spill] sm:$0xff] }
 0x358   :  { %v1444_v48 = vadd.f32 %v7622_v31, %v1326_v6  ;;  %9451 = vst [vmem:[#allocation20_spill] sm:$0xff] %v7943_v4 }
 0x359   :  { %1671 = vst.msk [vmem:[#allocation2 + $0x70] sm:$0xff] %vm7641_vm4, %v1669_v8  ;;  %v1445_v14 = vadd.f32 %v7625_v12, %v1327_v27  ;;  %v9453_v8 = vld [vmem:[#allocation55_spill] sm:$0xff] }
 0x35a   :  { %v1556_v58 = vmax.f32 %v1444_v48, 0.0 }
 0x35b   :  { %v1557_v26 = vmax.f32 %v1445_v14, 0.0  ;;  %v9454_v14 = vld [vmem:[#allocation60_spill] sm:$0xff] }
 0x35c   :  { %v1667_v40 = vmax.f32 %v1552_v55, %v1556_v58 }
 0x35d   :  { %v1668_v20 = vmax.f32 %v1553_v59, %v1557_v26  ;;  %v1055_v16 = vpop.f32.mrf.mxu0 }
 0x35e   :  { %v1204_v53 = vpop.f32.mrf.mxu1  ;;  %v1328_v61 = vadd.f32 %v1055_v16, %v9452_v54  ;;  %v9456_v16 = vld [vmem:[#allocation54_spill] sm:$0xff] }
 0x35f   :  { %v1670_v25 = vpack.c.bf16 %v1668_v20, %v1667_v40  ;;  %v1329_v33 = vadd.f32 %v1204_v53, %v9453_v8  ;;  %v9455_v40 = vld [vmem:[#allocation62_spill] sm:$0xff] }
 0x360   :  { %5252 = vmatmul.msk.bf16.gmra.mxu0 %vm219_vm1, %v9449_v45  ;;  %5280 = vmatmul.msk.bf16.gmra.mxu1 %vm219_vm1, %v9449_v45  ;;  %v5342_v39 = vld [vmem:[#allocation2 + $0x70] sm:$0xf]  ;;  %v6397_v47 = vld [vmem:[#allocation2 + $0x74] sm:$0xf]  ;;  %v1446_v48 = vadd.f32 %v7622_v31, %v1328_v61  ;;  %v9457_v45 = vld [vmem:[#allocation57_spill] sm:$0xff] }
 0x361   :  { %1672 = vst.msk [vmem:[#allocation2 + $0x78] sm:$0xff] %vm7641_vm4, %v1670_v25  ;;  %v1447_v26 = vadd.f32 %v7625_v12, %v1329_v33  ;;  %v728_v53 = vadd.f32 %v9457_v45, %v9456_v16  ;;  %v9464_v16 = vld [vmem:[#allocation65_spill] sm:$0xff] }
 0x362   :  { %v1558_v54 = vmax.f32 %v1446_v48, 0.0 }
 0x363   :  { %v1559_v33 = vmax.f32 %v1447_v26, 0.0 }
 0x365   :  { %v1057_v49 = vpop.f32.mrf.mxu0 }
 0x366   :  { %v1206_v43 = vpop.f32.mrf.mxu1  ;;  %v1330_v61 = vadd.f32 %v1057_v49, %v728_v53  ;;  %v6430_v53 = vld [vmem:[%s9279_s3 + $0x98] sm:$0xff] }
 0x367   :  { %2303 = vmatpush.bf16.msra.mxu2 %v6430_v53  ;;  %v189_v53 = vld [vmem:[%s9276_s0 + $0x1d0] sm:$0xff] }
 0x368   :  { %v6398_v3 = vld [vmem:[#allocation2 + $0x74] sm:$0xf0]  ;;  %v5344_v19 = vld [vmem:[#allocation2 + $0x78] sm:$0xf0] }
 0x369   :  { %v7945_v1 = vor.u32 %v6398_v3, %v5342_v39  ;;  %v7947_v6 = vor.u32 %v6397_v47, %v5344_v19  ;;  %v9459_v39 = vld [vmem:[#allocation56_spill] sm:$0xff]  ;;  %v9460_v3 = vld [vmem:[#allocation59_spill] sm:$0xff] }
 0x36a   :  { %v877_v47 = vadd.f32 %v9460_v3, %v9459_v39 }
 0x36b   :  { %2073 = vmatmul.bf16.gmra.mxu2 %v7945_v1  ;;  %5459 = vmatmul.msk.bf16.gmra.mxu3 %vm1987_vm5, %v7947_v6 }
 0x36d   :  { %v1060_v27 = vpop.f32.mrf.mxu0 }
 0x36e   :  { %v1332_v55 = vadd.f32 %v1060_v27, %v9454_v14  ;;  %v1209_v58 = vpop.f32.mrf.mxu1  ;;  %v2054_v59 = vpop.f32.mrf.mxu2  ;;  %v1331_v27 = vadd.f32 %v1206_v43, %v877_v47 }
 0x36f   :  { %v1333_v20 = vadd.f32 %v1209_v58, %v9455_v40  ;;  %v2133_v25 = vpop.f32.mrf.mxu3  ;;  %v9462_v58 = vld [vmem:[#allocation64_spill] sm:$0xff] }
 0x370   :  { %v1450_v51 = vadd.f32 %v7622_v31, %v1332_v55  ;;  %v7961_v52 = vadd.f32 %v2133_v25, %v2054_v59  ;;  %5253 = vmatmul.msk.bf16.gmra.mxu0 %vm219_vm1, %v7409_v0  ;;  %5281 = vmatmul.msk.bf16.gmra.mxu1 %vm219_vm1, %v7409_v0  ;;  %v9461_v55 = vld [vmem:[#allocation61_spill] sm:$0xff]  ;;  %v9463_v25 = vld [vmem:[#allocation63_spill] sm:$0xff]  ;;  %v1449_v0 = vadd.f32 %v7625_v12, %v1331_v27 }
 0x371   :  { %v1451_v19 = vadd.f32 %v7625_v12, %v1333_v20  ;;  %v733_v59 = vadd.f32 %v9462_v58, %v9461_v55  ;;  %v882_v45 = vadd.f32 %v9464_v16, %v9463_v25  ;;  %v1448_v20 = vadd.f32 %v7622_v31, %v1330_v61  ;;  %v9465_v27 = vld [vmem:[#allocation71_spill] sm:$0xff]  ;;  %v6477_v55 = vld [vmem:[#allocation8 + $0xb4] sm:$0xf0] }
 0x372   :  { %9458 = vst [vmem:[#allocation21_spill] sm:$0xff] %v7961_v52  ;;  %v1562_v8 = vmax.f32 %v1450_v51, 0.0 }
 0x373   :  { %v1563_v14 = vmax.f32 %v1451_v19, 0.0  ;;  %v1560_v51 = vmax.f32 %v1448_v20, 0.0  ;;  %v1561_v19 = vmax.f32 %v1449_v0, 0.0 }
 0x374   :  { %v1673_v40 = vmax.f32 %v1558_v54, %v1562_v8 }
 0x375   :  { %v1674_v52 = vmax.f32 %v1559_v33, %v1563_v14  ;;  %v1062_v39 = vpop.f32.mrf.mxu0  ;;  %v5654_v14 = vld [vmem:[#allocation8 + $0xb0] sm:$0xf] }
 0x376   :  { %v1334_v3 = vadd.f32 %v1062_v39, %v733_v59  ;;  %v1211_v4 = vpop.f32.mrf.mxu1  ;;  %v5655_v58 = vor.u32 %v6477_v55, %v5654_v14  ;;  %v6476_v59 = vld [vmem:[#allocation8 + $0xb4] sm:$0xf]  ;;  %v9470_v55 = vld [vmem:[#allocation73_spill] sm:$0xff] }
 0x377   :  { %v1677_v49 = vpack.c.bf16 %v1674_v52, %v1673_v40  ;;  %v1335_v48 = vadd.f32 %v1211_v4, %v882_v45  ;;  %v5656_v40 = vld [vmem:[#allocation8 + $0xb8] sm:$0xf0]  ;;  %v7989_v45 = vpop.f32.mrf.mxu2  ;;  %v7991_v20 = vpop.f32.mrf.mxu3 }
 0x378   :  { %v1452_v43 = vadd.f32 %v7622_v31, %v1334_v3  ;;  %v5659_v25 = vor.u32 %v6476_v59, %v5656_v40  ;;  %2793 = vmatpush.bf16.msra.mxu0 %v5655_v58  ;;  %9466 = vst [vmem:[#allocation17_spill] sm:$0xff] %v7989_v45  ;;  %v9471_v40 = vld [vmem:[#allocation75_spill] sm:$0xff] }
 0x379   :  { %1679 = vst.msk [vmem:[#allocation2 + $0x80] sm:$0xff] %vm7641_vm4, %v1677_v49  ;;  %v1453_v26 = vadd.f32 %v7625_v12, %v1335_v48 }
 0x37a   :  { %v1564_v47 = vmax.f32 %v1452_v43, 0.0  ;;  %2872 = vmatpush.bf16.msra.mxu1 %v5659_v25  ;;  %9467 = vst [vmem:[#allocation18_spill] sm:$0xff] %v7991_v20 }
 0x37b   :  { %v1565_v54 = vmax.f32 %v1453_v26, 0.0 }
 0x37c   :  { %v1675_v61 = vmax.f32 %v1560_v51, %v1564_v47  ;;  %v190_v51 = vld [vmem:[%s9276_s0 + $0x1d8] sm:$0xff]  ;;  %v9468_v47 = vld [vmem:[#allocation66_spill] sm:$0xff] }
 0x37d   :  { %v1676_v8 = vmax.f32 %v1561_v19, %v1565_v54  ;;  %v1065_v52 = vpop.f32.mrf.mxu0  ;;  %v9469_v54 = vld [vmem:[#allocation68_spill] sm:$0xff] }
 0x37e   :  { %v1214_v4 = vpop.f32.mrf.mxu1  ;;  %v1336_v19 = vadd.f32 %v1065_v52, %v9468_v47 }
 0x37f   :  { %v1678_v33 = vpack.c.bf16 %v1676_v8, %v1675_v61  ;;  %v1337_v61 = vadd.f32 %v1214_v4, %v9469_v54  ;;  %v6436_v8 = vld [vmem:[%s9279_s3 + $0xc8] sm:$0xff] }
 0x380   :  { %5254 = vmatmul.msk.bf16.gmra.mxu0 %vm219_vm1, %v9465_v27  ;;  %5282 = vmatmul.msk.bf16.gmra.mxu1 %vm219_vm1, %v9465_v27  ;;  %v5350_v3 = vld [vmem:[#allocation2 + $0x80] sm:$0xf]  ;;  %v6399_v49 = vld [vmem:[#allocation2 + $0x84] sm:$0xf]  ;;  %v1454_v14 = vadd.f32 %v7622_v31, %v1336_v19 }
 0x381   :  { %1680 = vst.msk [vmem:[#allocation2 + $0x88] sm:$0xff] %vm7641_vm4, %v1678_v33  ;;  %v191_v33 = vpack.c.bf16 %v190_v51, %v189_v53  ;;  %2384 = vmatpush.bf16.msra.mxu3 %v6436_v8  ;;  %v1455_v4 = vadd.f32 %v7625_v12, %v1337_v61  ;;  %v9475_v53 = vld [vmem:[#allocation69_spill] sm:$0xff]  ;;  %v9476_v51 = vld [vmem:[#allocation72_spill] sm:$0xff] }
 0x382   :  { %v887_v19 = vadd.f32 %v9476_v51, %v9475_v53  ;;  %v1566_v61 = vmax.f32 %v1454_v14, 0.0 }
 0x385   :  { %v1067_v16 = vpop.f32.mrf.mxu0 }
 0x386   :  { %v1216_v39 = vpop.f32.mrf.mxu1 }
 0x388   :  { %v6400_v0 = vld [vmem:[#allocation2 + $0x84] sm:$0xf0]  ;;  %v5352_v48 = vld [vmem:[#allocation2 + $0x88] sm:$0xf0] }
 0x389   :  { %v7993_v43 = vor.u32 %v6400_v0, %v5350_v3  ;;  %v7995_v26 = vor.u32 %v6399_v49, %v5352_v48  ;;  %v9472_v0 = vld [vmem:[#allocation67_spill] sm:$0xff]  ;;  %v9473_v49 = vld [vmem:[#allocation70_spill] sm:$0xff] }
 0x38a   :  { %v738_v48 = vadd.f32 %v9473_v49, %v9472_v0  ;;  %v9477_v0 = vld [vmem:[#allocation74_spill] sm:$0xff]  ;;  %v9478_v49 = vld [vmem:[#allocation77_spill] sm:$0xff] }
 0x38b   :  { %2078 = vmatmul.bf16.gmra.mxu2 %v7993_v43  ;;  %5460 = vmatmul.msk.bf16.gmra.mxu3 %vm1987_vm5, %v7995_v26 }
 0x38d   :  { %v1070_v27 = vpop.f32.mrf.mxu0 }
 0x38e   :  { %v1340_v58 = vadd.f32 %v1070_v27, %v9470_v55  ;;  %v1219_v59 = vpop.f32.mrf.mxu1  ;;  %v2059_v52 = vpop.f32.mrf.mxu2  ;;  %v1338_v27 = vadd.f32 %v1067_v16, %v738_v48 }
 0x38f   :  { %v1341_v25 = vadd.f32 %v1219_v59, %v9471_v40  ;;  %v2138_v3 = vpop.f32.mrf.mxu3  ;;  %v1567_v59 = vmax.f32 %v1455_v4, 0.0  ;;  %v1339_v40 = vadd.f32 %v1216_v39, %v887_v19 }
 0x390   :  { %v1458_v47 = vadd.f32 %v7622_v31, %v1340_v58  ;;  %v8018_v54 = vadd.f32 %v2138_v3, %v2059_v52  ;;  %5255 = vmatmul.msk.bf16.gmra.mxu0 %vm219_vm1, %v191_v33  ;;  %5283 = vmatmul.msk.bf16.gmra.mxu1 %vm219_vm1, %v191_v33  ;;  %v743_v58 = vadd.f32 %v9478_v49, %v9477_v0  ;;  %v9479_v3 = vld [vmem:[#allocation76_spill] sm:$0xff]  ;;  %vm4388_vm1 = vcmask 1043968  }
 0x391   :  { %v1459_v8 = vadd.f32 %v7625_v12, %v1341_v25  ;;  %v1456_v53 = vadd.f32 %v7622_v31, %v1338_v27  ;;  %v1457_v33 = vadd.f32 %v7625_v12, %v1339_v40 }
 0x392   :  { %9474 = vst [vmem:[#allocation22_spill] sm:$0xff] %v8018_v54  ;;  %v1570_v55 = vmax.f32 %v1458_v47, 0.0  ;;  %v9480_v54 = vld [vmem:[#allocation78_spill] sm:$0xff] }
 0x393   :  { %v1571_v20 = vmax.f32 %v1459_v8, 0.0  ;;  %v892_v45 = vadd.f32 %v9480_v54, %v9479_v3  ;;  %v1568_v48 = vmax.f32 %v1456_v53, 0.0  ;;  %v1569_v54 = vmax.f32 %v1457_v33, 0.0 }
 0x394   :  { %v1681_v52 = vmax.f32 %v1566_v61, %v1570_v55 }
 0x395   :  { %v1682_v32 = vmax.f32 %v1567_v59, %v1571_v20  ;;  %v1072_v22 = vpop.f32.mrf.mxu0  ;;  %v6429_v20 = vld [vmem:[%s9279_s3 + $0x90] sm:$0xff] }
 0x396   :  { %v1342_v25 = vadd.f32 %v1072_v22, %v743_v58  ;;  %v1221_v51 = vpop.f32.mrf.mxu1  ;;  %2304 = vmatpush.bf16.msra.mxu2 %v6429_v20  ;;  %v8040_v55 = vpop.f32.mrf.mxu2 }
 0x397   :  { %v1685_v16 = vpack.c.bf16 %v1682_v32, %v1681_v52  ;;  %v1343_v14 = vadd.f32 %v1221_v51, %v892_v45  ;;  %9481 = vst [vmem:[#allocation23_spill] sm:$0xff] %v8040_v55  ;;  %v8042_v40 = vpop.f32.mrf.mxu3  ;;  %v9483_v51 = vld [vmem:[#allocation80_spill] sm:$0xff] }
 0x398   :  { %v1460_v39 = vadd.f32 %v7622_v31, %v1342_v25  ;;  %9482 = vst [vmem:[#allocation26_spill] sm:$0xff] %v8042_v40 }
 0x399   :  { %1687 = vst.msk [vmem:[#allocation2 + $0x90] sm:$0xff] %vm7641_vm4, %v1685_v16  ;;  %v1461_v4 = vadd.f32 %v7625_v12, %v1343_v14  ;;  %v6428_v16 = vld [vmem:[%s9279_s3 + $0x88] sm:$0xff]  ;;  %v6435_v14 = vld [vmem:[%s9279_s3 + $0xc0] sm:$0xff] }
 0x39a   :  { %v1572_v47 = vmax.f32 %v1460_v39, 0.0  ;;  %2305 = vmatpush.bf16.msra.mxu2 %v6428_v16  ;;  %2385 = vmatpush.bf16.msra.mxu3 %v6435_v14 }
 0x39b   :  { %v1573_v22 = vmax.f32 %v1461_v4, 0.0 }
 0x39c   :  { %v1683_v19 = vmax.f32 %v1568_v48, %v1572_v47 }
 0x39d   :  { %v1684_v8 = vmax.f32 %v1569_v54, %v1573_v22  ;;  %v1075_v32 = vpop.f32.mrf.mxu0  ;;  %v9484_v54 = vld [vmem:[#allocation85_spill] sm:$0xff] }
 0x39e   :  { %v1224_v45 = vpop.f32.mrf.mxu1  ;;  %v1344_v25 = vadd.f32 %v1075_v32, %v7468_v18  ;;  %v9486_v32 = vld [vmem:[#allocation82_spill] sm:$0xff] }
 0x39f   :  { %v1686_v61 = vpack.c.bf16 %v1684_v8, %v1683_v19  ;;  %v1345_v33 = vadd.f32 %v1224_v45, %v9483_v51  ;;  %v9485_v8 = vld [vmem:[#allocation79_spill] sm:$0xff] }
 0x3a0   :  { %v5358_v0 = vld [vmem:[#allocation2 + $0x90] sm:$0xf]  ;;  %v6401_v58 = vld [vmem:[#allocation2 + $0x94] sm:$0xf]  ;;  %v1462_v18 = vadd.f32 %v7622_v31, %v1344_v25  ;;  %v748_v45 = vadd.f32 %v9486_v32, %v9485_v8  ;;  %v9492_v8 = vld [vmem:[#allocation86_spill] sm:$0xff] }
 0x3a1   :  { %1688 = vst.msk [vmem:[#allocation2 + $0x98] sm:$0xff] %vm7641_vm4, %v1686_v61  ;;  %v1463_v47 = vadd.f32 %v7625_v12, %v1345_v33  ;;  %v9493_v32 = vld [vmem:[#allocation88_spill] sm:$0xff] }
 0x3a3   :  { %v1575_v14 = vmax.f32 %v1463_v47, 0.0 }
 0x3a5   :  { %v1077_v27 = vpop.f32.mrf.mxu0 }
 0x3a6   :  { %v1226_v59 = vpop.f32.mrf.mxu1  ;;  %v1346_v51 = vadd.f32 %v1077_v27, %v748_v45 }
 0x3a8   :  { %v6402_v49 = vld [vmem:[#allocation2 + $0x94] sm:$0xf0]  ;;  %v5360_v52 = vld [vmem:[#allocation2 + $0x98] sm:$0xf0] }
 0x3a9   :  { %v8044_v3 = vor.u32 %v6402_v49, %v5358_v0  ;;  %v8046_v53 = vor.u32 %v6401_v58, %v5360_v52  ;;  %v9488_v49 = vld [vmem:[#allocation81_spill] sm:$0xff]  ;;  %v9489_v58 = vld [vmem:[#allocation83_spill] sm:$0xff] }
 0x3aa   :  { %v897_v52 = vadd.f32 %v9489_v58, %v9488_v49 }
 0x3ab   :  { %2083 = vmatmul.bf16.gmra.mxu2 %v8044_v3  ;;  %5461 = vmatmul.msk.bf16.gmra.mxu3 %vm1987_vm5, %v8046_v53 }
 0x3ac   :  { %v1347_v33 = vadd.f32 %v1226_v59, %v897_v52 }
 0x3ad   :  { %v1080_v39 = vpop.f32.mrf.mxu0 }
 0x3ae   :  { %v1348_v4 = vadd.f32 %v1080_v39, %v7487_v57  ;;  %v1229_v20 = vpop.f32.mrf.mxu1  ;;  %v2064_v48 = vpop.f32.mrf.mxu2  ;;  %v1574_v57 = vmax.f32 %v1462_v18, 0.0  ;;  %v1465_v18 = vadd.f32 %v7625_v12, %v1347_v33  ;;  %v6475_v33 = vld [vmem:[#allocation8 + $0xa4] sm:$0xf0] }
 0x3af   :  { %v1349_v22 = vadd.f32 %v1229_v20, %v9484_v54  ;;  %v2143_v19 = vpop.f32.mrf.mxu3  ;;  %v9490_v20 = vld [vmem:[#allocation84_spill] sm:$0xff]  ;;  %v9491_v54 = vld [vmem:[#allocation87_spill] sm:$0xff] }
 0x3b0   :  { %v1466_v61 = vadd.f32 %v7622_v31, %v1348_v4  ;;  %v8066_v0 = vadd.f32 %v2143_v19, %v2064_v48  ;;  %v753_v40 = vadd.f32 %v9491_v54, %v9490_v20  ;;  %v902_v4 = vadd.f32 %v9493_v32, %v9492_v8  ;;  %v6474_v20 = vld [vmem:[#allocation8 + $0xa4] sm:$0xf]  ;;  %v5648_v54 = vld [vmem:[#allocation8 + $0xa8] sm:$0xf0] }
 0x3b1   :  { %v1467_v25 = vadd.f32 %v7625_v12, %v1349_v22  ;;  %v1577_v52 = vmax.f32 %v1465_v18, 0.0  ;;  %v5651_v8 = vor.u32 %v6474_v20, %v5648_v54 }
 0x3b2   :  { %9487 = vst [vmem:[#allocation24_spill] sm:$0xff] %v8066_v0  ;;  %v1578_v16 = vmax.f32 %v1466_v61, 0.0  ;;  %v1464_v0 = vadd.f32 %v7622_v31, %v1346_v51 }
 0x3b3   :  { %v1579_v39 = vmax.f32 %v1467_v25, 0.0  ;;  %2873 = vmatpush.bf16.msra.mxu1 %v5651_v8 }
 0x3b4   :  { %v1689_v55 = vmax.f32 %v1574_v57, %v1578_v16  ;;  %v1576_v45 = vmax.f32 %v1464_v0, 0.0 }
 0x3b5   :  { %v1690_v48 = vmax.f32 %v1575_v14, %v1579_v39  ;;  %v1082_v19 = vpop.f32.mrf.mxu0 }
 0x3b6   :  { %v1350_v49 = vadd.f32 %v1082_v19, %v753_v40  ;;  %v1231_v58 = vpop.f32.mrf.mxu1  ;;  %v8083_v0 = vpop.f32.mrf.mxu2 }
 0x3b7   :  { %v1693_v27 = vpack.c.bf16 %v1690_v48, %v1689_v55  ;;  %v1351_v22 = vadd.f32 %v1231_v58, %v902_v4  ;;  %v5646_v55 = vld [vmem:[#allocation8 + $0xa0] sm:$0xf]  ;;  %9494 = vst [vmem:[#allocation25_spill] sm:$0xff] %v8083_v0  ;;  %v8085_v48 = vpop.f32.mrf.mxu3 }
 0x3b8   :  { %v1468_v59 = vadd.f32 %v7622_v31, %v1350_v49  ;;  %v5647_v39 = vor.u32 %v6475_v33, %v5646_v55  ;;  %9495 = vst [vmem:[#allocation29_spill] sm:$0xff] %v8085_v48  ;;  %v9498_v33 = vld [vmem:[#allocation89_spill] sm:$0xff] }
 0x3b9   :  { %1695 = vst.msk [vmem:[#allocation2 + $0xa0] sm:$0xff] %vm7641_vm4, %v1693_v27  ;;  %v1469_v47 = vadd.f32 %v7625_v12, %v1351_v22 }
 0x3ba   :  { %v1580_v61 = vmax.f32 %v1468_v59, 0.0  ;;  %2794 = vmatpush.bf16.msra.mxu0 %v5647_v39  ;;  %v9499_v39 = vld [vmem:[#allocation92_spill] sm:$0xff] }
 0x3bb   :  { %v1581_v25 = vmax.f32 %v1469_v47, 0.0  ;;  %v9496_v47 = vld [vmem:[#allocation90_spill] sm:$0xff]  ;;  %v758_v20 = vadd.f32 %v9499_v39, %v9498_v33  ;;  %v9505_v33 = vld [vmem:[#allocation96_spill] sm:$0xff] }
 0x3bc   :  { %v1691_v57 = vmax.f32 %v1576_v45, %v1580_v61  ;;  %v6427_v61 = vld [vmem:[%s9279_s3 + $0x80] sm:$0xff]  ;;  %v9506_v39 = vld [vmem:[#allocation98_spill] sm:$0xff] }
 0x3bd   :  { %v1692_v16 = vmax.f32 %v1577_v52, %v1581_v25  ;;  %v1085_v51 = vpop.f32.mrf.mxu0  ;;  %2306 = vmatpush.bf16.msra.mxu2 %v6427_v61 }
 0x3be   :  { %v1234_v40 = vpop.f32.mrf.mxu1  ;;  %v1352_v59 = vadd.f32 %v1085_v51, %v7503_v44  ;;  %v9497_v51 = vld [vmem:[#allocation95_spill] sm:$0xff] }
 0x3bf   :  { %v1694_v14 = vpack.c.bf16 %v1692_v16, %v1691_v57  ;;  %v1353_v45 = vadd.f32 %v1234_v40, %v9496_v47 }
 0x3c0   :  { %v5366_v19 = vld [vmem:[#allocation2 + $0xa0] sm:$0xf]  ;;  %v6403_v58 = vld [vmem:[#allocation2 + $0xa4] sm:$0xf]  ;;  %v1470_v25 = vadd.f32 %v7622_v31, %v1352_v59 }
 0x3c1   :  { %1696 = vst.msk [vmem:[#allocation2 + $0xa8] sm:$0xff] %vm7641_vm4, %v1694_v14  ;;  %v1471_v44 = vadd.f32 %v7625_v12, %v1353_v45 }
 0x3c3   :  { %v1583_v61 = vmax.f32 %v1471_v44, 0.0 }
 0x3c5   :  { %v1087_v32 = vpop.f32.mrf.mxu0 }
 0x3c6   :  { %v1236_v4 = vpop.f32.mrf.mxu1  ;;  %v1354_v59 = vadd.f32 %v1087_v32, %v758_v20  ;;  %v6434_v20 = vld [vmem:[%s9279_s3 + $0xb8] sm:$0xff] }
 0x3c7   :  { %2386 = vmatpush.bf16.msra.mxu3 %v6434_v20  ;;  %v9513_v20 = vld [vmem:[#allocation105_spill] sm:$0xff] }
 0x3c8   :  { %v6404_v49 = vld [vmem:[#allocation2 + $0xa4] sm:$0xf0]  ;;  %v5368_v18 = vld [vmem:[#allocation2 + $0xa8] sm:$0xf0] }
 0x3c9   :  { %v8087_v27 = vor.u32 %v6404_v49, %v5366_v19  ;;  %v8089_v22 = vor.u32 %v6403_v58, %v5368_v18  ;;  %v9501_v19 = vld [vmem:[#allocation91_spill] sm:$0xff]  ;;  %v9502_v49 = vld [vmem:[#allocation93_spill] sm:$0xff] }
 0x3ca   :  { %v907_v58 = vadd.f32 %v9502_v49, %v9501_v19 }
 0x3cb   :  { %2088 = vmatmul.bf16.gmra.mxu2 %v8087_v27  ;;  %5462 = vmatmul.msk.bf16.gmra.mxu3 %vm1987_vm5, %v8089_v22 }
 0x3cc   :  { %v1355_v45 = vadd.f32 %v1236_v4, %v907_v58 }
 0x3cd   :  { %v1090_v52 = vpop.f32.mrf.mxu0 }
 0x3ce   :  { %v1356_v57 = vadd.f32 %v1090_v52, %v7522_v10  ;;  %v1239_v16 = vpop.f32.mrf.mxu1  ;;  %v2069_v14 = vpop.f32.mrf.mxu2  ;;  %v1582_v10 = vmax.f32 %v1470_v25, 0.0  ;;  %v1473_v25 = vadd.f32 %v7625_v12, %v1355_v45  ;;  %v6426_v45 = vld [vmem:[%s9279_s3 + $0x78] sm:$0xff] }
 0x3cf   :  { %v1357_v40 = vadd.f32 %v1239_v16, %v9497_v51  ;;  %v2148_v55 = vpop.f32.mrf.mxu3  ;;  %v9503_v16 = vld [vmem:[#allocation94_spill] sm:$0xff]  ;;  %v9504_v51 = vld [vmem:[#allocation97_spill] sm:$0xff]  ;;  %2307 = vmatpush.bf16.msra.mxu2 %v6426_v45  ;;  %v9516_v45 = vld [vmem:[#allocation103_spill] sm:$0xff] }
 0x3d0   :  { %v1474_v54 = vadd.f32 %v7622_v31, %v1356_v57  ;;  %v8106_v8 = vadd.f32 %v2148_v55, %v2069_v14  ;;  %v763_v48 = vadd.f32 %v9504_v51, %v9503_v16  ;;  %v912_v57 = vadd.f32 %v9506_v39, %v9505_v33 }
 0x3d1   :  { %v1475_v18 = vadd.f32 %v7625_v12, %v1357_v40 }
 0x3d2   :  { %9500 = vst [vmem:[#allocation30_spill] sm:$0xff] %v8106_v8  ;;  %v1586_v47 = vmax.f32 %v1474_v54, 0.0  ;;  %v1472_v8 = vadd.f32 %v7622_v31, %v1354_v59 }
 0x3d3   :  { %v1587_v52 = vmax.f32 %v1475_v18, 0.0  ;;  %v1585_v18 = vmax.f32 %v1473_v25, 0.0 }
 0x3d4   :  { %v1697_v0 = vmax.f32 %v1582_v10, %v1586_v47  ;;  %v1584_v54 = vmax.f32 %v1472_v8, 0.0 }
 0x3d5   :  { %v1698_v14 = vmax.f32 %v1583_v61, %v1587_v52  ;;  %v1092_v55 = vpop.f32.mrf.mxu0 }
 0x3d6   :  { %v1358_v19 = vadd.f32 %v1092_v55, %v763_v48  ;;  %v1241_v49 = vpop.f32.mrf.mxu1  ;;  %v8129_v16 = vpop.f32.mrf.mxu2 }
 0x3d7   :  { %v1701_v32 = vpack.c.bf16 %v1698_v14, %v1697_v0  ;;  %v1359_v40 = vadd.f32 %v1241_v49, %v912_v57  ;;  %9507 = vst [vmem:[#allocation31_spill] sm:$0xff] %v8129_v16  ;;  %v8131_v51 = vpop.f32.mrf.mxu3  ;;  %v9511_v49 = vld [vmem:[#allocation99_spill] sm:$0xff] }
 0x3d8   :  { %v1476_v4 = vadd.f32 %v7622_v31, %v1358_v19  ;;  %9508 = vst [vmem:[#allocation27_spill] sm:$0xff] %v8131_v51 }
 0x3d9   :  { %1703 = vst.msk [vmem:[#allocation2 + $0xb0] sm:$0xff] %vm7641_vm4, %v1701_v32  ;;  %v1477_v44 = vadd.f32 %v7625_v12, %v1359_v40  ;;  %v9512_v32 = vld [vmem:[#allocation101_spill] sm:$0xff] }
 0x3da   :  { %v1588_v58 = vmax.f32 %v1476_v4, 0.0 }
 0x3db   :  { %v1589_v48 = vmax.f32 %v1477_v44, 0.0 }
 0x3dc   :  { %v1699_v10 = vmax.f32 %v1584_v54, %v1588_v58 }
 0x3dd   :  { %v1700_v59 = vmax.f32 %v1585_v18, %v1589_v48  ;;  %v1095_v0 = vpop.f32.mrf.mxu0 }
 0x3de   :  { %v1244_v47 = vpop.f32.mrf.mxu1  ;;  %v1360_v25 = vadd.f32 %v1095_v0, %v9511_v49  ;;  %v9515_v0 = vld [vmem:[#allocation100_spill] sm:$0xff] }
 0x3df   :  { %v1702_v61 = vpack.c.bf16 %v1700_v59, %v1699_v10  ;;  %v1361_v40 = vadd.f32 %v1244_v47, %v9512_v32  ;;  %v9514_v10 = vld [vmem:[#allocation107_spill] sm:$0xff]  ;;  %v768_v47 = vadd.f32 %v9516_v45, %v9515_v0  ;;  %v9522_v0 = vld [vmem:[#allocation108_spill] sm:$0xff]  ;;  %v9523_v45 = vld [vmem:[#allocation110_spill] sm:$0xff] }
 0x3e0   :  { %v5374_v33 = vld [vmem:[#allocation2 + $0xb0] sm:$0xf]  ;;  %v6405_v57 = vld [vmem:[#allocation2 + $0xb4] sm:$0xf]  ;;  %v1478_v44 = vadd.f32 %v7622_v31, %v1360_v25 }
 0x3e1   :  { %1704 = vst.msk [vmem:[#allocation2 + $0xb8] sm:$0xff] %vm7641_vm4, %v1702_v61  ;;  %v1479_v48 = vadd.f32 %v7625_v12, %v1361_v40 }
 0x3e2   :  { %v1590_v32 = vmax.f32 %v1478_v44, 0.0 }
 0x3e3   :  { %v1591_v51 = vmax.f32 %v1479_v48, 0.0 }
 0x3e5   :  { %v1097_v52 = vpop.f32.mrf.mxu0 }
 0x3e6   :  { %v1246_v8 = vpop.f32.mrf.mxu1 }
 0x3e8   :  { %v6406_v39 = vld [vmem:[#allocation2 + $0xb4] sm:$0xf0]  ;;  %v5376_v14 = vld [vmem:[#allocation2 + $0xb8] sm:$0xf0] }
 0x3e9   :  { %v8133_v55 = vor.u32 %v6406_v39, %v5374_v33  ;;  %v8135_v19 = vor.u32 %v6405_v57, %v5376_v14  ;;  %v9518_v57 = vld [vmem:[#allocation102_spill] sm:$0xff]  ;;  %v9519_v14 = vld [vmem:[#allocation104_spill] sm:$0xff] }
 0x3ea   :  { %v917_v49 = vadd.f32 %v9519_v14, %v9518_v57 }
 0x3eb   :  { %9509 = vst [vmem:[#allocation28_spill] sm:$0xff] %v8133_v55  ;;  %2093 = vmatmul.bf16.gmra.mxu2 %v8133_v55  ;;  %5463 = vmatmul.msk.bf16.gmra.mxu3 %vm1987_vm5, %v8135_v19 }
 0x3ec   :  { %9510 = vst [vmem:[#allocation32_spill] sm:$0xff] %v8135_v19  ;;  %v1363_v40 = vadd.f32 %v1246_v8, %v917_v49 }
 0x3ed   :  { %v1100_v4 = vpop.f32.mrf.mxu0 }
 0x3ee   :  { %v1364_v54 = vadd.f32 %v1100_v4, %v9513_v20  ;;  %v1249_v58 = vpop.f32.mrf.mxu1  ;;  %v2074_v18 = vpop.f32.mrf.mxu2  ;;  %v1362_v4 = vadd.f32 %v1097_v52, %v768_v47  ;;  %v1481_v44 = vadd.f32 %v7625_v12, %v1363_v40  ;;  %v6473_v40 = vld [vmem:[#allocation8 + $0x94] sm:$0xf0] }
 0x3ef   :  { %v1365_v59 = vadd.f32 %v1249_v58, %v9514_v10  ;;  %v2153_v61 = vpop.f32.mrf.mxu3  ;;  %v9520_v58 = vld [vmem:[#allocation106_spill] sm:$0xff]  ;;  %v9521_v10 = vld [vmem:[#allocation109_spill] sm:$0xff] }
 0x3f0   :  { %v1482_v33 = vadd.f32 %v7622_v31, %v1364_v54  ;;  %v8149_v39 = vadd.f32 %v2153_v61, %v2074_v18  ;;  %v773_v19 = vadd.f32 %v9521_v10, %v9520_v58  ;;  %v922_v54 = vadd.f32 %v9523_v45, %v9522_v0  ;;  %v6472_v10 = vld [vmem:[#allocation8 + $0x94] sm:$0xf]  ;;  %v6425_v0 = vld [vmem:[%s9279_s3 + $0x70] sm:$0xff] }
 0x3f1   :  { %v1483_v25 = vadd.f32 %v7625_v12, %v1365_v59  ;;  %v1593_v49 = vmax.f32 %v1481_v44, 0.0  ;;  %2308 = vmatpush.bf16.msra.mxu2 %v6425_v0 }
 0x3f2   :  { %9517 = vst [vmem:[#allocation33_spill] sm:$0xff] %v8149_v39  ;;  %v1594_v20 = vmax.f32 %v1482_v33, 0.0  ;;  %v1480_v39 = vadd.f32 %v7622_v31, %v1362_v4 }
 0x3f3   :  { %v1595_v16 = vmax.f32 %v1483_v25, 0.0 }
 0x3f4   :  { %v1705_v55 = vmax.f32 %v1590_v32, %v1594_v20  ;;  %v1592_v47 = vmax.f32 %v1480_v39, 0.0  ;;  %v5638_v20 = vld [vmem:[#allocation8 + $0x90] sm:$0xf]  ;;  %v5640_v39 = vld [vmem:[#allocation8 + $0x98] sm:$0xf0] }
 0x3f5   :  { %v1706_v18 = vmax.f32 %v1591_v51, %v1595_v16  ;;  %v1102_v61 = vpop.f32.mrf.mxu0  ;;  %v5639_v58 = vor.u32 %v6473_v40, %v5638_v20  ;;  %v5643_v45 = vor.u32 %v6472_v10, %v5640_v39 }
 0x3f6   :  { %v1366_v57 = vadd.f32 %v1102_v61, %v773_v19  ;;  %v1251_v14 = vpop.f32.mrf.mxu1 }
 0x3f7   :  { %v1709_v52 = vpack.c.bf16 %v1706_v18, %v1705_v55  ;;  %v1367_v59 = vadd.f32 %v1251_v14, %v922_v54  ;;  %v6433_v55 = vld [vmem:[%s9279_s3 + $0xb0] sm:$0xff]  ;;  %2795 = vmatpush.bf16.msra.mxu0 %v5639_v58  ;;  %2874 = vmatpush.bf16.msra.mxu1 %v5643_v45  ;;  %v8172_v18 = vpop.f32.mrf.mxu2  ;;  %v9528_v45 = vld [vmem:[#allocation112_spill] sm:$0xff] }
 0x3f8   :  { %v1484_v8 = vadd.f32 %v7622_v31, %v1366_v57  ;;  %2387 = vmatpush.bf16.msra.mxu3 %v6433_v55  ;;  %v8174_v57 = vpop.f32.mrf.mxu3 }
 0x3f9   :  { %1711 = vst.msk [vmem:[#allocation2 + $0xc0] sm:$0xff] %vm7641_vm4, %v1709_v52  ;;  %v1485_v48 = vadd.f32 %v7625_v12, %v1367_v59 }
 0x3fa   :  { %v1596_v33 = vmax.f32 %v1484_v8, 0.0 }
 0x3fb   :  { %v1597_v16 = vmax.f32 %v1485_v48, 0.0 }
 0x3fc   :  { %v1707_v51 = vmax.f32 %v1592_v47, %v1596_v33  ;;  %v9524_v47 = vld [vmem:[#allocation111_spill] sm:$0xff] }
 0x3fd   :  { %v1708_v25 = vmax.f32 %v1593_v49, %v1597_v16  ;;  %v1105_v32 = vpop.f32.mrf.mxu0  ;;  %v9525_v49 = vld [vmem:[#allocation113_spill] sm:$0xff] }
 0x3fe   :  { %v1254_v19 = vpop.f32.mrf.mxu1  ;;  %v1368_v33 = vadd.f32 %v1105_v32, %v9524_v47 }
 0x3ff   :  { %v1710_v4 = vpack.c.bf16 %v1708_v25, %v1707_v51  ;;  %v1369_v16 = vadd.f32 %v1254_v19, %v9525_v49  ;;  %v9526_v51 = vld [vmem:[#allocation115_spill] sm:$0xff] }
 0x400   :  { %v5382_v14 = vld [vmem:[#allocation2 + $0xc0] sm:$0xf]  ;;  %v6407_v52 = vld [vmem:[#allocation2 + $0xc4] sm:$0xf]  ;;  %v781_v25 = vadd.f32 %v7796_v15, %v9526_v51  ;;  %v1486_v40 = vadd.f32 %v7622_v31, %v1368_v33  ;;  %v9529_v15 = vld [vmem:[#allocation114_spill] sm:$0xff] }
 0x401   :  { %1712 = vst.msk [vmem:[#allocation2 + $0xc8] sm:$0xff] %vm7641_vm4, %v1710_v4  ;;  %v9527_v4 = vld [vmem:[#allocation116_spill] sm:$0xff]  ;;  %v1487_v32 = vadd.f32 %v7625_v12, %v1369_v16 }
 0x402   :  { %v930_v55 = vadd.f32 %v7798_v63, %v9527_v4  ;;  %v927_v63 = vadd.f32 %v7785_v2, %v9529_v15  ;;  %v1598_v47 = vmax.f32 %v1486_v40, 0.0  ;;  %v9530_v4 = vld [vmem:[#allocation117_spill] sm:$0xff] }
 0x403   :  { %v1599_v51 = vmax.f32 %v1487_v32, 0.0 }
 0x405   :  { %v1107_v54 = vpop.f32.mrf.mxu0 }
 0x406   :  { %v1256_v61 = vpop.f32.mrf.mxu1 }
 0x408   :  { %v6408_v44 = vld [vmem:[#allocation2 + $0xc4] sm:$0xf0]  ;;  %v5384_v59 = vld [vmem:[#allocation2 + $0xc8] sm:$0xf0] }
 0x409   :  { %v8176_v8 = vor.u32 %v6408_v44, %v5382_v14  ;;  %v8178_v48 = vor.u32 %v6407_v52, %v5384_v59  ;;  %v778_v14 = vadd.f32 %v7782_v11, %v9528_v45  ;;  %v9531_v11 = vld [vmem:[#allocation118_spill] sm:$0xff] }
 0x40b   :  { %2098 = vmatmul.bf16.gmra.mxu2 %v8176_v8  ;;  %5464 = vmatmul.msk.bf16.gmra.mxu3 %vm1987_vm5, %v8178_v48  ;;  %v1370_v33 = vadd.f32 %v1107_v54, %v778_v14 }
 0x40d   :  { %v1110_v20 = vpop.f32.mrf.mxu0 }
 0x40e   :  { %v1372_v58 = vadd.f32 %v1110_v20, %v781_v25  ;;  %v1259_v10 = vpop.f32.mrf.mxu1  ;;  %v2079_v39 = vpop.f32.mrf.mxu2  ;;  %v1371_v25 = vadd.f32 %v1256_v61, %v927_v63 }
 0x40f   :  { %v1373_v19 = vadd.f32 %v1259_v10, %v930_v55  ;;  %v2158_v0 = vpop.f32.mrf.mxu3  ;;  %v783_v55 = vadd.f32 %v7806_v21, %v9530_v4 }
 0x410   :  { %v1490_v44 = vadd.f32 %v7622_v31, %v1372_v58  ;;  %v8194_v52 = vadd.f32 %v2158_v0, %v2079_v39  ;;  %v932_v58 = vadd.f32 %v7808_v23, %v9531_v11  ;;  %v1488_v0 = vadd.f32 %v7622_v31, %v1370_v33  ;;  %v5630_v11 = vld [vmem:[#allocation8 + $0x80] sm:$0xf] }
 0x411   :  { %v1491_v59 = vadd.f32 %v7625_v12, %v1373_v19  ;;  %v1489_v40 = vadd.f32 %v7625_v12, %v1371_v25 }
 0x412   :  { %v1602_v49 = vmax.f32 %v1490_v44, 0.0  ;;  %v1600_v32 = vmax.f32 %v1488_v0, 0.0  ;;  %v5632_v0 = vld [vmem:[#allocation8 + $0x88] sm:$0xf0] }
 0x413   :  { %v1603_v16 = vmax.f32 %v1491_v59, 0.0  ;;  %v1601_v23 = vmax.f32 %v1489_v40, 0.0 }
 0x414   :  { %v1713_v20 = vmax.f32 %v1598_v47, %v1602_v49 }
 0x415   :  { %v1714_v10 = vmax.f32 %v1599_v51, %v1603_v16  ;;  %v1112_v39 = vpop.f32.mrf.mxu0 }
 0x416   :  { %v1374_v2 = vadd.f32 %v1112_v39, %v783_v55  ;;  %v1261_v45 = vpop.f32.mrf.mxu1  ;;  %v8211_v47 = vpop.f32.mrf.mxu2 }
 0x417   :  { %v1717_v54 = vpack.c.bf16 %v1714_v10, %v1713_v20  ;;  %v1375_v19 = vadd.f32 %v1261_v45, %v932_v58  ;;  %v8213_v33 = vpop.f32.mrf.mxu3  ;;  %v6471_v58 = vld [vmem:[#allocation8 + $0x84] sm:$0xf0]  ;;  %v6470_v10 = vld [vmem:[#allocation8 + $0x84] sm:$0xf] }
 0x418   :  { %v1492_v61 = vadd.f32 %v7622_v31, %v1374_v2  ;;  %v5631_v39 = vor.u32 %v6471_v58, %v5630_v11  ;;  %v5635_v2 = vor.u32 %v6470_v10, %v5632_v0  ;;  %v6508_v10 = vld [vmem:[#allocation8 + $0x144] sm:$0xf] }
 0x419   :  { %1719 = vst.msk [vmem:[#allocation2 + $0xd0] sm:$0xff] %vm7641_vm4, %v1717_v54  ;;  %v1493_v21 = vadd.f32 %v7625_v12, %v1375_v19 }
 0x41a   :  { %v1604_v14 = vmax.f32 %v1492_v61, 0.0  ;;  %2796 = vmatpush.bf16.msra.mxu0 %v5631_v39  ;;  %2875 = vmatpush.bf16.msra.mxu1 %v5635_v2 }
 0x41b   :  { %v1605_v44 = vmax.f32 %v1493_v21, 0.0 }
 0x41c   :  { %v1715_v15 = vmax.f32 %v1600_v32, %v1604_v14  ;;  %v5622_v32 = vld [vmem:[#allocation8 + $0x70] sm:$0xf]  ;;  %v6469_v14 = vld [vmem:[#allocation8 + $0x74] sm:$0xf0] }
 0x41d   :  { %v1716_v63 = vmax.f32 %v1601_v23, %v1605_v44  ;;  %v6468_v23 = vld [vmem:[#allocation8 + $0x74] sm:$0xf]  ;;  %v5624_v44 = vld [vmem:[#allocation8 + $0x78] sm:$0xf0] }
 0x41f   :  { %v1718_v59 = vpack.c.bf16 %v1716_v63, %v1715_v15  ;;  %v5627_v15 = vor.u32 %v6468_v23, %v5624_v44 }
 0x420   :  { %v5390_v31 = vld [vmem:[#allocation2 + $0xd0] sm:$0xf]  ;;  %v6409_v51 = vld [vmem:[#allocation2 + $0xd4] sm:$0xf] }
 0x421   :  { %1720 = vst.msk [vmem:[#allocation2 + $0xd8] sm:$0xff] %vm7641_vm4, %v1718_v59  ;;  %2876 = vmatpush.bf16.msra.mxu1 %v5627_v15 }
 0x428   :  { %v6410_v49 = vld [vmem:[#allocation2 + $0xd4] sm:$0xf0]  ;;  %v5392_v25 = vld [vmem:[#allocation2 + $0xd8] sm:$0xf0] }
 0x429   :  { %v8215_v16 = vor.u32 %v6410_v49, %v5390_v31  ;;  %v8217_v12 = vor.u32 %v6409_v51, %v5392_v25  ;;  %v5758_v49 = vld [vmem:[#allocation8 + $0x60] sm:$0xf]  ;;  %v6466_v51 = vld [vmem:[#allocation8 + $0x64] sm:$0xf0]  ;;  %v6465_v25 = vld [vmem:[#allocation8 + $0x64] sm:$0xf] }
 0x42b   :  { %2103 = vmatmul.bf16.gmra.mxu2 %v8215_v16  ;;  %5465 = vmatmul.msk.bf16.gmra.mxu3 %vm1987_vm5, %v8217_v12 }
 0x42e   :  { %v2084_v4 = vpop.f32.mrf.mxu2  ;;  %v2163_v55 = vpop.f32.mrf.mxu3 }
 0x42f   :  { %v8222_v20 = vadd.f32 %v2163_v55, %v2084_v4  ;;  %v5759_v55 = vor.u32 %v6466_v51, %v5758_v49  ;;  %v6463_v51 = vld [vmem:[#allocation8 + $0x54] sm:$0xf] }
 0x431   :  { %3027 = vmatpush.bf16.msrb.mxu2 %v5759_v55 }
 0x436   :  { %v8227_v45 = vpop.f32.mrf.mxu2  ;;  %v8229_v40 = vpop.f32.mrf.mxu3 }
 0x43b   :  { %2309 = vmatmul.bf16.vlgmr.msra.gmra.mxu2 %v7658_v13  ;;  %5550 = vmatmul.msk.bf16.vlgmr.msra.gmra.mxu3 %vm1987_vm5, %v7660_v28 }
 0x44b   :  { %2314 = vmatmul.bf16.gmra.mxu2 %v7693_v30  ;;  %5551 = vmatmul.msk.bf16.gmra.mxu3 %vm1987_vm5, %v7695_v5 }
 0x44e   :  { %v2089_v54 = vpop.f32.mrf.mxu2  ;;  %v2168_v19 = vpop.f32.mrf.mxu3 }
 0x44f   :  { %v8234_v61 = vadd.f32 %v2168_v19, %v2089_v54  ;;  %v5900_v54 = vld [vmem:[#allocation8 + $0x148] sm:$0xf0] }
 0x456   :  { %v8239_v13 = vpop.f32.mrf.mxu2  ;;  %v8241_v28 = vpop.f32.mrf.mxu3 }
 0x45b   :  { %2319 = vmatmul.bf16.gmra.mxu2 %v7728_v24  ;;  %5552 = vmatmul.msk.bf16.gmra.mxu3 %vm1987_vm5, %v7730_v29  ;;  %v5623_v24 = vor.u32 %v6469_v14, %v5622_v32 }
 0x45d   :  { %2797 = vmatpush.bf16.msra.mxu0 %v5623_v24 }
 0x46b   :  { %2324 = vmatmul.bf16.gmra.mxu2 %v7763_v35  ;;  %5553 = vmatmul.msk.bf16.gmra.mxu3 %vm1987_vm5, %v7765_v38 }
 0x46e   :  { %v2094_v30 = vpop.f32.mrf.mxu2  ;;  %v2173_v5 = vpop.f32.mrf.mxu3 }
 0x46f   :  { %v8246_v21 = vadd.f32 %v2173_v5, %v2094_v30  ;;  %v5903_v30 = vor.u32 %v6508_v10, %v5900_v54  ;;  %v9532_v54 = vld [vmem:[#allocation16_spill] sm:$0xff] }
 0x471   :  { %3489 = vmatpush.bf16.msrb.mxu1 %v5903_v30 }
 0x476   :  { %v8251_v29 = vpop.f32.mrf.mxu2  ;;  %v8253_v35 = vpop.f32.mrf.mxu3 }
 0x47b   :  { %2329 = vmatmul.bf16.gmra.mxu2 %v7810_v46  ;;  %5554 = vmatmul.msk.bf16.gmra.mxu3 %vm1987_vm5, %v7812_v41 }
 0x48b   :  { %2334 = vmatmul.bf16.gmra.mxu2 %v7851_v62  ;;  %5555 = vmatmul.msk.bf16.gmra.mxu3 %vm1987_vm5, %v7853_v7 }
 0x48e   :  { %v2099_v38 = vpop.f32.mrf.mxu2  ;;  %v2178_v63 = vpop.f32.mrf.mxu3 }
 0x48f   :  { %v8258_v59 = vadd.f32 %v2178_v63, %v2099_v38 }
 0x496   :  { %v8263_v46 = vpop.f32.mrf.mxu2  ;;  %v8265_v41 = vpop.f32.mrf.mxu3 }
 0x49b   :  { %2339 = vmatmul.bf16.gmra.mxu2 %v7898_v17  ;;  %5556 = vmatmul.msk.bf16.gmra.mxu3 %vm1987_vm5, %v7900_v9  ;;  %v5760_v9 = vld [vmem:[#allocation8 + $0x68] sm:$0xf0] }
 0x49c   :  { %v5763_v58 = vor.u32 %v6465_v25, %v5760_v9  ;;  %v5752_v25 = vld [vmem:[#allocation8 + $0x58] sm:$0xf0] }
 0x49e   :  { %3106 = vmatpush.bf16.msrb.mxu3 %v5763_v58  ;;  %v5890_v58 = vld [vmem:[#allocation8 + $0x130] sm:$0xf] }
 0x4ab   :  { %2344 = vmatmul.bf16.gmra.mxu2 %v7945_v1  ;;  %5557 = vmatmul.msk.bf16.gmra.mxu3 %vm1987_vm5, %v7947_v6  ;;  %v5898_v1 = vld [vmem:[#allocation8 + $0x140] sm:$0xf]  ;;  %v6509_v6 = vld [vmem:[#allocation8 + $0x144] sm:$0xf0] }
 0x4ac   :  { %v5899_v2 = vor.u32 %v6509_v6, %v5898_v1  ;;  %v6507_v1 = vld [vmem:[#allocation8 + $0x134] sm:$0xf0] }
 0x4ae   :  { %v2104_v62 = vpop.f32.mrf.mxu2  ;;  %v2183_v7 = vpop.f32.mrf.mxu3  ;;  %3410 = vmatpush.bf16.msrb.mxu0 %v5899_v2 }
 0x4af   :  { %v8270_v31 = vadd.f32 %v2183_v7, %v2104_v62 }
 0x4b6   :  { %v2106_v17 = vpop.f32.mrf.mxu2  ;;  %v2185_v4 = vpop.f32.mrf.mxu3 }
 0x4b7   :  { %v8272_v11 = vadd.f32 %v2185_v4, %v2106_v17  ;;  %v5755_v4 = vor.u32 %v6463_v51, %v5752_v25  ;;  %v5736_v25 = vld [vmem:[#allocation8 + $0x38] sm:$0xf0] }
 0x4b9   :  { %3107 = vmatpush.bf16.msrb.mxu3 %v5755_v4 }
 0x4bb   :  { %2349 = vmatmul.bf16.gmra.mxu2 %v7993_v43  ;;  %5558 = vmatmul.msk.bf16.gmra.mxu3 %vm1987_vm5, %v7995_v26  ;;  %v2121_v26 = vadd.f32 %v7849_v34, %v7847_v36  ;;  %v5750_v36 = vld [vmem:[#allocation8 + $0x50] sm:$0xf]  ;;  %v6464_v34 = vld [vmem:[#allocation8 + $0x54] sm:$0xf0] }
 0x4be   :  { %v2310_v39 = vpop.f32.mrf.mxu2  ;;  %v2389_v0 = vpop.f32.mrf.mxu3 }
 0x4bf   :  { %v2390_v19 = vadd.f32 %v2389_v0, %v2310_v39  ;;  %v5891_v39 = vor.u32 %v6507_v1, %v5890_v58  ;;  %v6506_v0 = vld [vmem:[#allocation8 + $0x134] sm:$0xf]  ;;  %v6457_v58 = vld [vmem:[#allocation8 + $0x24] sm:$0xf] }
 0x4c1   :  { %v2459_v5 = vmax.f32 %v7824_v60, %v2390_v19  ;;  %3411 = vmatpush.bf16.msrb.mxu0 %v5891_v39 }
 0x4c3   :  { %v2492_v32 = vpack.c.bf16 %v2459_v5, %v2459_v5 }
 0x4c5   :  { %2520 = vst.msk [vmem:[#allocation3 + $0x8] sm:$0xf] %vm2487_vm6, %v2492_v32  ;;  %v5742_v32 = vld [vmem:[#allocation8 + $0x40] sm:$0xf] }
 0x4c6   :  { %v2312_v43 = vpop.f32.mrf.mxu2  ;;  %v2391_v14 = vpop.f32.mrf.mxu3 }
 0x4c7   :  { %v2392_v23 = vadd.f32 %v2391_v14, %v2312_v43  ;;  %v6462_v43 = vld [vmem:[#allocation8 + $0x44] sm:$0xf0]  ;;  %v6461_v14 = vld [vmem:[#allocation8 + $0x44] sm:$0xf] }
 0x4c9   :  { %v2460_v24 = vmax.f32 %v2121_v26, %v2392_v23  ;;  %v9533_v26 = vld [vmem:[#allocation19_spill] sm:$0xff]  ;;  %v9534_v23 = vld [vmem:[#allocation20_spill] sm:$0xff] }
 0x4cb   :  { %v2493_v44 = vpack.c.bf16 %v2460_v24, %v2460_v24  ;;  %2354 = vmatmul.bf16.gmra.mxu2 %v8044_v3  ;;  %5559 = vmatmul.msk.bf16.gmra.mxu3 %vm1987_vm5, %v8046_v53  ;;  %v5751_v53 = vor.u32 %v6464_v34, %v5750_v36  ;;  %v2131_v24 = vadd.f32 %v9534_v23, %v9533_v26  ;;  %v6460_v36 = vld [vmem:[#allocation8 + $0x34] sm:$0xf0]  ;;  %v6459_v34 = vld [vmem:[#allocation8 + $0x34] sm:$0xf]  ;;  %v5710_v23 = vld [vmem:[#allocation8] sm:$0xf] }
 0x4cd   :  { %2521 = vst.msk [vmem:[#allocation3 + $0xc] sm:$0xf] %vm2487_vm6, %v2493_v44  ;;  %3028 = vmatpush.bf16.msrb.mxu2 %v5751_v53  ;;  %v9536_v53 = vld [vmem:[#allocation32_spill] sm:$0xff] }
 0x4ce   :  { %v2315_v60 = vpop.f32.mrf.mxu2  ;;  %v2394_v15 = vpop.f32.mrf.mxu3 }
 0x4cf   :  { %v2395_v38 = vadd.f32 %v2394_v15, %v2315_v60  ;;  %v5743_v60 = vor.u32 %v6462_v43, %v5742_v32  ;;  %v5744_v15 = vld [vmem:[#allocation8 + $0x48] sm:$0xf0]  ;;  %v6742_v43 = vmov 0  }
 0x4d0   :  { %2488 = vst.msk [vmem:[#allocation3] sm:$0xf] %vm2487_vm6, %v6742_v43 }
 0x4d1   :  { %v2461_v63 = vmax.f32 %v7865_v42, %v2395_v38  ;;  %v2126_v42 = vadd.f32 %v7896_v56, %v7894_v37  ;;  %v5892_v37 = vld [vmem:[#allocation8 + $0x138] sm:$0xf0]  ;;  %v5747_v38 = vor.u32 %v6461_v14, %v5744_v15  ;;  %3029 = vmatpush.bf16.msrb.mxu2 %v5743_v60  ;;  %v9539_v15 = vld [vmem:[#allocation18_spill] sm:$0xff]  ;;  %2489 = vst.msk [vmem:[#allocation3 + $0x4] sm:$0xf] %vm2487_vm6, %v6742_v43 }
 0x4d2   :  { %v5895_v2 = vor.u32 %v6506_v0, %v5892_v37  ;;  %v9537_v0 = vld [vmem:[#allocation21_spill] sm:$0xff]  ;;  %2490 = vst.msk [vmem:[#allocation3 + $0x78] sm:$0xf] %vm2487_vm6, %v6742_v43 }
 0x4d3   :  { %v2494_v62 = vpack.c.bf16 %v2461_v63, %v2461_v63  ;;  %3108 = vmatpush.bf16.msrb.mxu3 %v5747_v38  ;;  %v9538_v60 = vld [vmem:[#allocation17_spill] sm:$0xff]  ;;  %2491 = vst.msk [vmem:[#allocation3 + $0x7c] sm:$0xf] %vm2487_vm6, %v6742_v43  ;;  %v9543_v43 = vld [vmem:[#allocation24_spill] sm:$0xff] }
 0x4d4   :  { %v8286_v7 = vld [vmem:[#allocation3 + $0x8] sm:$0xff]  ;;  %3490 = vmatpush.bf16.msrb.mxu1 %v5895_v2  ;;  %v6456_v2 = vld [vmem:[#allocation8 + $0x14] sm:$0xf0]  ;;  %v2136_v38 = vadd.f32 %v9539_v15, %v9538_v60 }
 0x4d5   :  { %2522 = vst.msk [vmem:[#allocation3 + $0x10] sm:$0xf] %vm2487_vm6, %v2494_v62  ;;  %5676 = vmatmul.msk.bf16.vlgmr.msra.gmra.mxu0 %vm2747_vm7, %v8286_v7  ;;  %5690 = vmatmul.msk.bf16.vlgmr.msra.gmra.mxu1 %vm2747_vm7, %v8286_v7  ;;  %v5734_v62 = vld [vmem:[#allocation8 + $0x30] sm:$0xf] }
 0x4d6   :  { %v2317_v49 = vpop.f32.mrf.mxu2  ;;  %v2396_v3 = vpop.f32.mrf.mxu3  ;;  %v5735_v51 = vor.u32 %v6460_v36, %v5734_v62  ;;  %v5712_v36 = vld [vmem:[#allocation8 + $0x8] sm:$0xf0] }
 0x4d7   :  { %v2397_v17 = vadd.f32 %v2396_v3, %v2317_v49  ;;  %v9535_v3 = vld [vmem:[#allocation28_spill] sm:$0xff] }
 0x4d8   :  { %3030 = vmatpush.bf16.msrb.mxu2 %v5735_v51  ;;  %v6505_v51 = vld [vmem:[#allocation8 + $0x124] sm:$0xf0] }
 0x4d9   :  { %v2462_v55 = vmax.f32 %v2126_v42, %v2397_v17  ;;  %v5739_v42 = vor.u32 %v6459_v34, %v5736_v25 }
 0x4db   :  { %v2495_v9 = vpack.c.bf16 %v2462_v55, %v2462_v55  ;;  %2359 = vmatmul.bf16.gmra.mxu2 %v8087_v27  ;;  %5560 = vmatmul.msk.bf16.gmra.mxu3 %vm1987_vm5, %v8089_v22  ;;  %v5726_v55 = vld [vmem:[#allocation8 + $0x20] sm:$0xf] }
 0x4dc   :  { %3109 = vmatpush.bf16.msrb.mxu3 %v5739_v42 }
 0x4dd   :  { %2523 = vst.msk [vmem:[#allocation3 + $0x14] sm:$0xf] %vm2487_vm6, %v2495_v9  ;;  %v6458_v9 = vld [vmem:[#allocation8 + $0x24] sm:$0xf0] }
 0x4de   :  { %v2320_v6 = vpop.f32.mrf.mxu2  ;;  %v2399_v10 = vpop.f32.mrf.mxu3 }
 0x4df   :  { %v2400_v56 = vadd.f32 %v2399_v10, %v2320_v6  ;;  %v5727_v6 = vor.u32 %v6458_v9, %v5726_v55  ;;  %v5728_v10 = vld [vmem:[#allocation8 + $0x28] sm:$0xf0] }
 0x4e0   :  { %v5731_v39 = vor.u32 %v6457_v58, %v5728_v10  ;;  %v5884_v55 = vld [vmem:[#allocation8 + $0x128] sm:$0xf0] }
 0x4e1   :  { %v2463_v19 = vmax.f32 %v9532_v54, %v2400_v56  ;;  %3031 = vmatpush.bf16.msrb.mxu2 %v5727_v6  ;;  %v5718_v56 = vld [vmem:[#allocation8 + $0x10] sm:$0xf]  ;;  %v6455_v54 = vld [vmem:[#allocation8 + $0x14] sm:$0xf] }
 0x4e2   :  { %3110 = vmatpush.bf16.msrb.mxu3 %v5731_v39 }
 0x4e3   :  { %v2496_v30 = vpack.c.bf16 %v2463_v19, %v2463_v19 }
 0x4e4   :  { %v8300_v27 = vld [vmem:[#allocation3 + $0x10] sm:$0xff] }
 0x4e5   :  { %2524 = vst.msk [vmem:[#allocation3 + $0x18] sm:$0xf] %vm2487_vm6, %v2496_v30  ;;  %5677 = vmatmul.msk.bf16.gmra.mxu0 %vm2747_vm7, %v8300_v27  ;;  %5691 = vmatmul.msk.bf16.gmra.mxu1 %vm2747_vm7, %v8300_v27  ;;  %v5719_v30 = vor.u32 %v6456_v2, %v5718_v56 }
 0x4e6   :  { %v2322_v22 = vpop.f32.mrf.mxu2  ;;  %v2401_v5 = vpop.f32.mrf.mxu3 }
 0x4e7   :  { %v2402_v44 = vadd.f32 %v2401_v5, %v2322_v22  ;;  %v5720_v22 = vld [vmem:[#allocation8 + $0x18] sm:$0xf0]  ;;  %3032 = vmatpush.bf16.msrb.mxu2 %v5719_v30 }
 0x4e8   :  { %v5723_v32 = vor.u32 %v6455_v54, %v5720_v22 }
 0x4e9   :  { %v2464_v63 = vmax.f32 %v2131_v24, %v2402_v44  ;;  %v6454_v24 = vld [vmem:[#allocation8 + $0x4] sm:$0xf0]  ;;  %v6453_v44 = vld [vmem:[#allocation8 + $0x4] sm:$0xf] }
 0x4ea   :  { %3111 = vmatpush.bf16.msrb.mxu3 %v5723_v32  ;;  %v5711_v62 = vor.u32 %v6454_v24, %v5710_v23  ;;  %v5715_v34 = vor.u32 %v6453_v44, %v5712_v36  ;;  %v5874_v36 = vld [vmem:[#allocation8 + $0x110] sm:$0xf] }
 0x4eb   :  { %v2497_v49 = vpack.c.bf16 %v2464_v63, %v2464_v63  ;;  %2364 = vmatmul.bf16.gmra.mxu2 %v9535_v3  ;;  %5561 = vmatmul.msk.bf16.gmra.mxu3 %vm1987_vm5, %v9536_v53  ;;  %v5882_v53 = vld [vmem:[#allocation8 + $0x120] sm:$0xf] }
 0x4ec   :  { %3033 = vmatpush.bf16.msrb.mxu2 %v5711_v62 }
 0x4ed   :  { %2525 = vst.msk [vmem:[#allocation3 + $0x1c] sm:$0xf] %vm2487_vm6, %v2497_v49 }
 0x4ee   :  { %v2325_v17 = vpop.f32.mrf.mxu2  ;;  %v2404_v4 = vpop.f32.mrf.mxu3  ;;  %3112 = vmatpush.bf16.msrb.mxu3 %v5715_v34  ;;  %v6503_v34 = vld [vmem:[#allocation8 + $0x114] sm:$0xf0] }
 0x4ef   :  { %v2405_v1 = vadd.f32 %v2404_v4, %v2325_v17  ;;  %v5883_v17 = vor.u32 %v6505_v51, %v5882_v53  ;;  %v6504_v4 = vld [vmem:[#allocation8 + $0x124] sm:$0xf]  ;;  %v5875_v53 = vor.u32 %v6503_v34, %v5874_v36  ;;  %v6502_v51 = vld [vmem:[#allocation8 + $0x114] sm:$0xf]  ;;  %v5868_v36 = vld [vmem:[#allocation8 + $0x108] sm:$0xf0] }
 0x4f0   :  { %v5887_v58 = vor.u32 %v6504_v4, %v5884_v55  ;;  %v9546_v4 = vld [vmem:[#allocation30_spill] sm:$0xff] }
 0x4f1   :  { %v2465_v37 = vmax.f32 %v9537_v0, %v2405_v1  ;;  %3412 = vmatpush.bf16.msrb.mxu0 %v5883_v17  ;;  %v9540_v1 = vld [vmem:[#allocation22_spill] sm:$0xff]  ;;  %v9541_v0 = vld [vmem:[#allocation23_spill] sm:$0xff] }
 0x4f2   :  { %3491 = vmatpush.bf16.msrb.mxu1 %v5887_v58 }
 0x4f3   :  { %v2498_v19 = vpack.c.bf16 %v2465_v37, %v2465_v37  ;;  %v9542_v37 = vld [vmem:[#allocation26_spill] sm:$0xff] }
 0x4f4   :  { %v8314_v5 = vld [vmem:[#allocation3 + $0x18] sm:$0xff]  ;;  %v2141_v56 = vadd.f32 %v9542_v37, %v9541_v0 }
 0x4f5   :  { %2526 = vst.msk [vmem:[#allocation3 + $0x20] sm:$0xf] %vm2487_vm6, %v2498_v19  ;;  %5678 = vmatmul.msk.bf16.gmra.mxu0 %vm2747_vm7, %v8314_v5  ;;  %5692 = vmatmul.msk.bf16.gmra.mxu1 %vm2747_vm7, %v8314_v5 }
 0x4f6   :  { %v2327_v14 = vpop.f32.mrf.mxu2  ;;  %v2406_v26 = vpop.f32.mrf.mxu3  ;;  %3413 = vmatpush.bf16.msrb.mxu0 %v5875_v53 }
 0x4f7   :  { %v2407_v63 = vadd.f32 %v2406_v26, %v2327_v14 }
 0x4f9   :  { %v2466_v49 = vmax.f32 %v2136_v38, %v2407_v63  ;;  %v6439_v38 = vld [vmem:[#allocation3] sm:$0xff] }
 0x4fb   :  { %v2499_v3 = vpack.c.bf16 %v2466_v49, %v2466_v49  ;;  %2369 = vmatmul.bf16.gmra.mxu2 %v8176_v8  ;;  %5562 = vmatmul.msk.bf16.gmra.mxu3 %vm1987_vm5, %v8178_v48 }
 0x4fd   :  { %2527 = vst.msk [vmem:[#allocation3 + $0x24] sm:$0xf] %vm2487_vm6, %v2499_v3 }
 0x4fe   :  { %v2330_v25 = vpop.f32.mrf.mxu2  ;;  %v2409_v42 = vpop.f32.mrf.mxu3 }
 0x4ff   :  { %v2410_v9 = vadd.f32 %v2409_v42, %v2330_v25  ;;  %v5876_v25 = vld [vmem:[#allocation8 + $0x118] sm:$0xf0] }
 0x500   :  { %v5879_v17 = vor.u32 %v6502_v51, %v5876_v25  ;;  %v2161_v51 = vadd.f32 %v8213_v33, %v8211_v47 }
 0x501   :  { %v2467_v6 = vmax.f32 %v9540_v1, %v2410_v9 }
 0x502   :  { %3492 = vmatpush.bf16.msrb.mxu1 %v5879_v17 }
 0x503   :  { %v2500_v8 = vpack.c.bf16 %v2467_v6, %v2467_v6 }
 0x504   :  { %v8332_v10 = vld [vmem:[#allocation3 + $0x20] sm:$0xff] }
 0x505   :  { %2528 = vst.msk [vmem:[#allocation3 + $0x28] sm:$0xf] %vm2487_vm6, %v2500_v8  ;;  %5679 = vmatmul.msk.bf16.gmra.mxu0 %vm2747_vm7, %v8332_v10  ;;  %5693 = vmatmul.msk.bf16.gmra.mxu1 %vm2747_vm7, %v8332_v10  ;;  %v9547_v8 = vld [vmem:[#allocation31_spill] sm:$0xff] }
 0x506   :  { %v2332_v48 = vpop.f32.mrf.mxu2  ;;  %v2411_v39 = vpop.f32.mrf.mxu3 }
 0x507   :  { %v2412_v2 = vadd.f32 %v2411_v39, %v2332_v48  ;;  %v9548_v48 = vld [vmem:[#allocation27_spill] sm:$0xff] }
 0x508   :  { %v2151_v39 = vadd.f32 %v9548_v48, %v9547_v8 }
 0x509   :  { %v2468_v54 = vmax.f32 %v2141_v56, %v2412_v2 }
 0x50b   :  { %v2501_v19 = vpack.c.bf16 %v2468_v54, %v2468_v54  ;;  %2374 = vmatmul.bf16.gmra.mxu2 %v8215_v16  ;;  %5563 = vmatmul.msk.bf16.gmra.mxu3 %vm1987_vm5, %v8217_v12  ;;  %v9544_v16 = vld [vmem:[#allocation25_spill] sm:$0xff] }
 0x50c   :  { %v9545_v12 = vld [vmem:[#allocation29_spill] sm:$0xff] }
 0x50d   :  { %2529 = vst.msk [vmem:[#allocation3 + $0x2c] sm:$0xf] %vm2487_vm6, %v2501_v19  ;;  %v2146_v60 = vadd.f32 %v9545_v12, %v9544_v16  ;;  %v5866_v12 = vld [vmem:[#allocation8 + $0x100] sm:$0xf] }
 0x50e   :  { %v2335_v30 = vpop.f32.mrf.mxu2  ;;  %v2414_v22 = vpop.f32.mrf.mxu3 }
 0x50f   :  { %v2415_v32 = vadd.f32 %v2414_v22, %v2335_v30  ;;  %v9549_v30 = vld [vmem:[#allocation33_spill] sm:$0xff] }
 0x511   :  { %v2469_v14 = vmax.f32 %v9543_v43, %v2415_v32 }
 0x513   :  { %v2502_v26 = vpack.c.bf16 %v2469_v14, %v2469_v14 }
 0x514   :  { %v8346_v23 = vld [vmem:[#allocation3 + $0x28] sm:$0xff] }
 0x515   :  { %2530 = vst.msk [vmem:[#allocation3 + $0x30] sm:$0xf] %vm2487_vm6, %v2502_v26  ;;  %5680 = vmatmul.msk.bf16.gmra.mxu0 %vm2747_vm7, %v8346_v23  ;;  %5694 = vmatmul.msk.bf16.gmra.mxu1 %vm2747_vm7, %v8346_v23 }
 0x516   :  { %v2337_v24 = vpop.f32.mrf.mxu2  ;;  %v2416_v44 = vpop.f32.mrf.mxu3 }
 0x517   :  { %v2417_v15 = vadd.f32 %v2416_v44, %v2337_v24 }
 0x519   :  { %v2470_v63 = vmax.f32 %v2146_v60, %v2417_v15  ;;  %v6501_v60 = vld [vmem:[#allocation8 + $0x104] sm:$0xf0] }
 0x51b   :  { %v2503_v62 = vpack.c.bf16 %v2470_v63, %v2470_v63  ;;  %5764 = vmatmul.msk.bf16.vlgmr.msrb.gmra.mxu2 %vm2747_vm7, %v6439_v38  ;;  %5778 = vmatmul.msk.bf16.vlgmr.msrb.gmra.mxu3 %vm2747_vm7, %v6439_v38  ;;  %v5867_v63 = vor.u32 %v6501_v60, %v5866_v12 }
 0x51d   :  { %2531 = vst.msk [vmem:[#allocation3 + $0x34] sm:$0xf] %vm2487_vm6, %v2503_v62  ;;  %v6500_v62 = vld [vmem:[#allocation8 + $0x104] sm:$0xf]  ;;  %3414 = vmatpush.bf16.msrb.mxu0 %v5867_v63 }
 0x51e   :  { %v2340_v49 = vpop.f32.mrf.mxu2  ;;  %v2419_v3 = vpop.f32.mrf.mxu3 }
 0x51f   :  { %v2420_v42 = vadd.f32 %v2419_v3, %v2340_v49 }
 0x521   :  { %v2471_v55 = vmax.f32 %v9546_v4, %v2420_v42 }
 0x523   :  { %v2504_v9 = vpack.c.bf16 %v2471_v55, %v2471_v55 }
 0x524   :  { %v8359_v58 = vld [vmem:[#allocation3 + $0x30] sm:$0xff] }
 0x525   :  { %2532 = vst.msk [vmem:[#allocation3 + $0x38] sm:$0xf] %vm2487_vm6, %v2504_v9  ;;  %5681 = vmatmul.msk.bf16.gmra.mxu0 %vm2747_vm7, %v8359_v58  ;;  %5695 = vmatmul.msk.bf16.gmra.mxu1 %vm2747_vm7, %v8359_v58 }
 0x526   :  { %v2342_v1 = vpop.f32.mrf.mxu2  ;;  %v2421_v6 = vpop.f32.mrf.mxu3 }
 0x527   :  { %v2422_v0 = vadd.f32 %v2421_v6, %v2342_v1 }
 0x529   :  { %v2472_v37 = vmax.f32 %v2151_v39, %v2422_v0 }
 0x52b   :  { %v2505_v56 = vpack.c.bf16 %v2472_v37, %v2472_v37  ;;  %5765 = vmatmul.msk.bf16.gmra.mxu2 %vm2747_vm7, %v8286_v7  ;;  %5779 = vmatmul.msk.bf16.gmra.mxu3 %vm2747_vm7, %v8286_v7  ;;  %v2156_v7 = vadd.f32 %v8174_v57, %v8172_v18  ;;  %v5871_v18 = vor.u32 %v6500_v62, %v5868_v36 }
 0x52d   :  { %2533 = vst.msk [vmem:[#allocation3 + $0x3c] sm:$0xf] %vm2487_vm6, %v2505_v56  ;;  %3493 = vmatpush.bf16.msrb.mxu1 %v5871_v18 }
 0x52e   :  { %v2345_v2 = vpop.f32.mrf.mxu2  ;;  %v2424_v54 = vpop.f32.mrf.mxu3 }
 0x52f   :  { %v2425_v19 = vadd.f32 %v2424_v54, %v2345_v2  ;;  %v5858_v2 = vld [vmem:[#allocation8 + $0xf0] sm:$0xf]  ;;  %v6499_v54 = vld [vmem:[#allocation8 + $0xf4] sm:$0xf0] }
 0x531   :  { %v2473_v22 = vmax.f32 %v9549_v30, %v2425_v19 }
 0x533   :  { %v2506_v32 = vpack.c.bf16 %v2473_v22, %v2473_v22  ;;  %v5860_v22 = vld [vmem:[#allocation8 + $0xf8] sm:$0xf0] }
 0x534   :  { %v8374_v43 = vld [vmem:[#allocation3 + $0x38] sm:$0xff] }
 0x535   :  { %2534 = vst.msk [vmem:[#allocation3 + $0x40] sm:$0xf] %vm2487_vm6, %v2506_v32  ;;  %5682 = vmatmul.msk.bf16.gmra.mxu0 %vm2747_vm7, %v8374_v43  ;;  %5696 = vmatmul.msk.bf16.gmra.mxu1 %vm2747_vm7, %v8374_v43 }
 0x536   :  { %v2347_v14 = vpop.f32.mrf.mxu2  ;;  %v2426_v26 = vpop.f32.mrf.mxu3 }
 0x537   :  { %v2427_v24 = vadd.f32 %v2426_v26, %v2347_v14 }
 0x539   :  { %v2474_v44 = vmax.f32 %v2156_v7, %v2427_v24 }
 0x53b   :  { %v2507_v16 = vpack.c.bf16 %v2474_v44, %v2474_v44  ;;  %5766 = vmatmul.msk.bf16.gmra.mxu2 %vm2747_vm7, %v8300_v27  ;;  %5780 = vmatmul.msk.bf16.gmra.mxu3 %vm2747_vm7, %v8300_v27 }
 0x53d   :  { %2535 = vst.msk [vmem:[#allocation3 + $0x44] sm:$0xf] %vm2487_vm6, %v2507_v16 }
 0x53e   :  { %v2350_v15 = vpop.f32.mrf.mxu2  ;;  %v2429_v38 = vpop.f32.mrf.mxu3 }
 0x53f   :  { %v2430_v34 = vadd.f32 %v2429_v38, %v2350_v15 }
 0x541   :  { %v2475_v57 = vmax.f32 %v8194_v52, %v2430_v34 }
 0x543   :  { %v2508_v49 = vpack.c.bf16 %v2475_v57, %v2475_v57 }
 0x544   :  { %v8389_v3 = vld [vmem:[#allocation3 + $0x40] sm:$0xff] }
 0x545   :  { %2536 = vst.msk [vmem:[#allocation3 + $0x48] sm:$0xf] %vm2487_vm6, %v2508_v49  ;;  %5683 = vmatmul.msk.bf16.gmra.mxu0 %vm2747_vm7, %v8389_v3  ;;  %5697 = vmatmul.msk.bf16.gmra.mxu1 %vm2747_vm7, %v8389_v3 }
 0x546   :  { %v2352_v27 = vpop.f32.mrf.mxu2  ;;  %v2431_v53 = vpop.f32.mrf.mxu3 }
 0x547   :  { %v2432_v25 = vadd.f32 %v2431_v53, %v2352_v27 }
 0x549   :  { %v2476_v42 = vmax.f32 %v2161_v51, %v2432_v25 }
 0x54b   :  { %v2509_v52 = vpack.c.bf16 %v2476_v42, %v2476_v42  ;;  %5767 = vmatmul.msk.bf16.gmra.mxu2 %vm2747_vm7, %v8314_v5  ;;  %5781 = vmatmul.msk.bf16.gmra.mxu3 %vm2747_vm7, %v8314_v5 }
 0x54d   :  { %2537 = vst.msk [vmem:[#allocation3 + $0x4c] sm:$0xf] %vm2487_vm6, %v2509_v52 }
 0x54e   :  { %v2355_v17 = vpop.f32.mrf.mxu2  ;;  %v2434_v4 = vpop.f32.mrf.mxu3 }
 0x54f   :  { %v2435_v55 = vadd.f32 %v2434_v4, %v2355_v17  ;;  %v5850_v4 = vld [vmem:[#allocation8 + $0xe0] sm:$0xf] }
 0x551   :  { %v2477_v9 = vmax.f32 %v8222_v20, %v2435_v55  ;;  %v2166_v20 = vadd.f32 %v8229_v40, %v8227_v45  ;;  %v5859_v45 = vor.u32 %v6499_v54, %v5858_v2  ;;  %v6498_v40 = vld [vmem:[#allocation8 + $0xf4] sm:$0xf]  ;;  %v6497_v55 = vld [vmem:[#allocation8 + $0xe4] sm:$0xf0] }
 0x552   :  { %v8404_v6 = vpop.f32.mrf.mxu0  ;;  %v8406_v47 = vpop.f32.mrf.mxu1  ;;  %v5863_v14 = vor.u32 %v6498_v40, %v5860_v22 }
 0x553   :  { %v2510_v1 = vpack.c.bf16 %v2477_v9, %v2477_v9  ;;  %3415 = vmatpush.bf16.msrb.mxu0 %v5859_v45 }
 0x554   :  { %v8408_v33 = vld [vmem:[#allocation3 + $0x48] sm:$0xff]  ;;  %3494 = vmatpush.bf16.msrb.mxu1 %v5863_v14 }
 0x555   :  { %2538 = vst.msk [vmem:[#allocation3 + $0x50] sm:$0xf] %vm2487_vm6, %v2510_v1  ;;  %5684 = vmatmul.msk.bf16.gmra.mxu0 %vm2747_vm7, %v8408_v33  ;;  %5698 = vmatmul.msk.bf16.gmra.mxu1 %vm2747_vm7, %v8408_v33 }
 0x556   :  { %v2357_v8 = vpop.f32.mrf.mxu2  ;;  %v2436_v48 = vpop.f32.mrf.mxu3 }
 0x557   :  { %v2437_v5 = vadd.f32 %v2436_v48, %v2357_v8  ;;  %v5852_v8 = vld [vmem:[#allocation8 + $0xe8] sm:$0xf0] }
 0x559   :  { %v2478_v39 = vmax.f32 %v2166_v20, %v2437_v5 }
 0x55a   :  { %v8421_v37 = vpop.f32.mrf.mxu0  ;;  %v8423_v56 = vpop.f32.mrf.mxu1 }
 0x55b   :  { %v2511_v0 = vpack.c.bf16 %v2478_v39, %v2478_v39  ;;  %5768 = vmatmul.msk.bf16.gmra.mxu2 %vm2747_vm7, %v8332_v10  ;;  %5782 = vmatmul.msk.bf16.gmra.mxu3 %vm2747_vm7, %v8332_v10 }
 0x55d   :  { %2539 = vst.msk [vmem:[#allocation3 + $0x54] sm:$0xf] %vm2487_vm6, %v2511_v0 }
 0x55e   :  { %v2360_v19 = vpop.f32.mrf.mxu2  ;;  %v2439_v30 = vpop.f32.mrf.mxu3 }
 0x55f   :  { %v2440_v32 = vadd.f32 %v2439_v30, %v2360_v19 }
 0x561   :  { %v2479_v26 = vmax.f32 %v8234_v61, %v2440_v32  ;;  %v2171_v61 = vadd.f32 %v8241_v28, %v8239_v13 }
 0x562   :  { %v8427_v7 = vpop.f32.mrf.mxu0  ;;  %v8429_v24 = vpop.f32.mrf.mxu1 }
 0x563   :  { %v2512_v10 = vpack.c.bf16 %v2479_v26, %v2479_v26 }
 0x564   :  { %v8431_v44 = vld [vmem:[#allocation3 + $0x50] sm:$0xff] }
 0x565   :  { %2540 = vst.msk [vmem:[#allocation3 + $0x58] sm:$0xf] %vm2487_vm6, %v2512_v10  ;;  %5685 = vmatmul.msk.bf16.gmra.mxu0 %vm2747_vm7, %v8431_v44  ;;  %5699 = vmatmul.msk.bf16.gmra.mxu1 %vm2747_vm7, %v8431_v44 }
 0x566   :  { %v2362_v16 = vpop.f32.mrf.mxu2  ;;  %v2441_v12 = vpop.f32.mrf.mxu3 }
 0x567   :  { %v2442_v60 = vadd.f32 %v2441_v12, %v2362_v16 }
 0x569   :  { %v2480_v15 = vmax.f32 %v2171_v61, %v2442_v60 }
 0x56a   :  { %v8444_v63 = vpop.f32.mrf.mxu0  ;;  %v8446_v62 = vpop.f32.mrf.mxu1 }
 0x56b   :  { %v2513_v38 = vpack.c.bf16 %v2480_v15, %v2480_v15  ;;  %5769 = vmatmul.msk.bf16.gmra.mxu2 %vm2747_vm7, %v8346_v23  ;;  %5783 = vmatmul.msk.bf16.gmra.mxu3 %vm2747_vm7, %v8346_v23 }
 0x56d   :  { %2541 = vst.msk [vmem:[#allocation3 + $0x5c] sm:$0xf] %vm2487_vm6, %v2513_v38 }
 0x56e   :  { %v2365_v36 = vpop.f32.mrf.mxu2  ;;  %v2444_v34 = vpop.f32.mrf.mxu3 }
 0x56f   :  { %v2445_v18 = vadd.f32 %v2444_v34, %v2365_v36 }
 0x571   :  { %v2481_v13 = vmax.f32 %v8246_v21, %v2445_v18  ;;  %v2176_v21 = vadd.f32 %v8253_v35, %v8251_v29  ;;  %v5851_v29 = vor.u32 %v6497_v55, %v5850_v4  ;;  %v6496_v35 = vld [vmem:[#allocation8 + $0xe4] sm:$0xf] }
 0x572   :  { %v8450_v57 = vpop.f32.mrf.mxu0  ;;  %v8452_v49 = vpop.f32.mrf.mxu1  ;;  %v5855_v20 = vor.u32 %v6496_v35, %v5852_v8 }
 0x573   :  { %v2514_v28 = vpack.c.bf16 %v2481_v13, %v2481_v13  ;;  %3416 = vmatpush.bf16.msrb.mxu0 %v5851_v29 }
 0x574   :  { %v8454_v27 = vld [vmem:[#allocation3 + $0x58] sm:$0xff]  ;;  %3495 = vmatpush.bf16.msrb.mxu1 %v5855_v20  ;;  %v6484_v20 = vld [vmem:[#allocation3 + $0x20] sm:$0xff] }
 0x575   :  { %2542 = vst.msk [vmem:[#allocation3 + $0x60] sm:$0xf] %vm2487_vm6, %v2514_v28  ;;  %5686 = vmatmul.msk.bf16.gmra.mxu0 %vm2747_vm7, %v8454_v27  ;;  %5700 = vmatmul.msk.bf16.gmra.mxu1 %vm2747_vm7, %v8454_v27 }
 0x576   :  { %v2367_v23 = vpop.f32.mrf.mxu2  ;;  %v2446_v53 = vpop.f32.mrf.mxu3 }
 0x577   :  { %v2447_v51 = vadd.f32 %v2446_v53, %v2367_v23 }
 0x579   :  { %v2482_v25 = vmax.f32 %v2176_v21, %v2447_v51  ;;  %v6482_v21 = vld [vmem:[#allocation3 + $0x10] sm:$0xff] }
 0x57a   :  { %v8467_v52 = vpop.f32.mrf.mxu0  ;;  %v8469_v17 = vpop.f32.mrf.mxu1 }
 0x57b   :  { %v2515_v42 = vpack.c.bf16 %v2482_v25, %v2482_v25  ;;  %5770 = vmatmul.msk.bf16.gmra.mxu2 %vm2747_vm7, %v8359_v58  ;;  %5784 = vmatmul.msk.bf16.gmra.mxu3 %vm2747_vm7, %v8359_v58  ;;  %v6531_v25 = vld [vmem:[#allocation10 + $0x38] sm:$0xff] }
 0x57c   :  { %4007 = vmatpush.bf16.msra.mxu2 %v6531_v25 }
 0x57d   :  { %2543 = vst.msk [vmem:[#allocation3 + $0x64] sm:$0xf] %vm2487_vm6, %v2515_v42  ;;  %v6537_v42 = vld [vmem:[#allocation10 + $0x68] sm:$0xff] }
 0x57e   :  { %v2370_v9 = vpop.f32.mrf.mxu2  ;;  %v2449_v1 = vpop.f32.mrf.mxu3  ;;  %4053 = vmatpush.bf16.msra.mxu3 %v6537_v42 }
 0x57f   :  { %v2450_v48 = vadd.f32 %v2449_v1, %v2370_v9  ;;  %v6483_v9 = vld [vmem:[#allocation3 + $0x18] sm:$0xff] }
 0x581   :  { %v2483_v5 = vmax.f32 %v8258_v59, %v2450_v48  ;;  %v2181_v59 = vadd.f32 %v8265_v41, %v8263_v46 }
 0x582   :  { %v8473_v39 = vpop.f32.mrf.mxu0  ;;  %v8475_v0 = vpop.f32.mrf.mxu1 }
 0x583   :  { %v2516_v58 = vpack.c.bf16 %v2483_v5, %v2483_v5 }
 0x584   :  { %v8477_v2 = vld [vmem:[#allocation3 + $0x60] sm:$0xff] }
 0x585   :  { %2544 = vst.msk [vmem:[#allocation3 + $0x68] sm:$0xf] %vm2487_vm6, %v2516_v58  ;;  %5687 = vmatmul.msk.bf16.gmra.mxu0 %vm2747_vm7, %v8477_v2  ;;  %5701 = vmatmul.msk.bf16.gmra.mxu1 %vm2747_vm7, %v8477_v2 }
 0x586   :  { %v2372_v54 = vpop.f32.mrf.mxu2  ;;  %v2451_v19 = vpop.f32.mrf.mxu3 }
 0x587   :  { %v2452_v30 = vadd.f32 %v2451_v19, %v2372_v54  ;;  %v6530_v19 = vld [vmem:[#allocation10 + $0x30] sm:$0xff] }
 0x588   :  { %4008 = vmatpush.bf16.msra.mxu2 %v6530_v19  ;;  %v6487_v19 = vld [vmem:[#allocation3 + $0x38] sm:$0xff] }
 0x589   :  { %v2484_v45 = vmax.f32 %v2181_v59, %v2452_v30 }
 0x58a   :  { %v8490_v22 = vpop.f32.mrf.mxu0  ;;  %v8492_v32 = vpop.f32.mrf.mxu1 }
 0x58b   :  { %v2517_v40 = vpack.c.bf16 %v2484_v45, %v2484_v45  ;;  %5771 = vmatmul.msk.bf16.gmra.mxu2 %vm2747_vm7, %v8374_v43  ;;  %5785 = vmatmul.msk.bf16.gmra.mxu3 %vm2747_vm7, %v8374_v43 }
 0x58d   :  { %2545 = vst.msk [vmem:[#allocation3 + $0x6c] sm:$0xf] %vm2487_vm6, %v2517_v40 }
 0x58e   :  { %v2375_v14 = vpop.f32.mrf.mxu2  ;;  %v2454_v26 = vpop.f32.mrf.mxu3 }
 0x58f   :  { %v2455_v10 = vadd.f32 %v2454_v26, %v2375_v14  ;;  %v6485_v14 = vld [vmem:[#allocation3 + $0x28] sm:$0xff] }
 0x591   :  { %v2485_v46 = vmax.f32 %v8270_v31, %v2455_v10 }
 0x592   :  { %v8496_v16 = vpop.f32.mrf.mxu0  ;;  %v8498_v12 = vpop.f32.mrf.mxu1 }
 0x593   :  { %v2518_v41 = vpack.c.bf16 %v2485_v46, %v2485_v46 }
 0x594   :  { %v8500_v61 = vld [vmem:[#allocation3 + $0x68] sm:$0xff] }
 0x595   :  { %2546 = vst.msk [vmem:[#allocation3 + $0x70] sm:$0xf] %vm2487_vm6, %v2518_v41  ;;  %5688 = vmatmul.msk.bf16.gmra.mxu0 %vm2747_vm7, %v8500_v61  ;;  %5702 = vmatmul.msk.bf16.gmra.mxu1 %vm2747_vm7, %v8500_v61 }
 0x596   :  { %v2377_v43 = vpop.f32.mrf.mxu2  ;;  %v2456_v60 = vpop.f32.mrf.mxu3 }
 0x597   :  { %v2457_v15 = vadd.f32 %v2456_v60, %v2377_v43 }
 0x599   :  { %v2486_v31 = vmax.f32 %v8272_v11, %v2457_v15  ;;  %v6486_v15 = vld [vmem:[#allocation3 + $0x30] sm:$0xff] }
 0x59a   :  { %v8512_v36 = vpop.f32.mrf.mxu0  ;;  %v8514_v34 = vpop.f32.mrf.mxu1 }
 0x59b   :  { %v2519_v38 = vpack.c.bf16 %v2486_v31, %v2486_v31  ;;  %5772 = vmatmul.msk.bf16.gmra.mxu2 %vm2747_vm7, %v8389_v3  ;;  %5786 = vmatmul.msk.bf16.gmra.mxu3 %vm2747_vm7, %v8389_v3 }
 0x59d   :  { %2547 = vst.msk [vmem:[#allocation3 + $0x74] sm:$0xf] %vm2487_vm6, %v2519_v38 }
 0x59e   :  { %v8559_v29 = vpop.f32.mrf.mxu2  ;;  %v8561_v35 = vpop.f32.mrf.mxu3 }
 0x5a2   :  { %v8517_v18 = vpop.f32.mrf.mxu0  ;;  %v8519_v13 = vpop.f32.mrf.mxu1 }
 0x5a4   :  { %v6467_v28 = vld [vmem:[#allocation3 + $0x70] sm:$0xff] }
 0x5a5   :  { %5689 = vmatmul.msk.bf16.gmra.mxu0 %vm2747_vm7, %v6467_v28  ;;  %5703 = vmatmul.msk.bf16.gmra.mxu1 %vm2747_vm7, %v6467_v28  ;;  %v6529_v28 = vld [vmem:[#allocation10 + $0x28] sm:$0xff] }
 0x5a6   :  { %v8567_v5 = vpop.f32.mrf.mxu2  ;;  %v8569_v58 = vpop.f32.mrf.mxu3  ;;  %4009 = vmatpush.bf16.msra.mxu2 %v6529_v28 }
 0x5aa   :  { %v8527_v11 = vpop.f32.mrf.mxu0  ;;  %v8529_v3 = vpop.f32.mrf.mxu1 }
 0x5ab   :  { %5773 = vmatmul.msk.bf16.gmra.mxu2 %vm2747_vm7, %v8408_v33  ;;  %5787 = vmatmul.msk.bf16.gmra.mxu3 %vm2747_vm7, %v8408_v33 }
 0x5ae   :  { %v8581_v59 = vpop.f32.mrf.mxu2  ;;  %v8583_v30 = vpop.f32.mrf.mxu3 }
 0x5b2   :  { %v8531_v23 = vpop.f32.mrf.mxu0  ;;  %v8533_v53 = vpop.f32.mrf.mxu1 }
 0x5b3   :  { %9550 = vst [vmem:[#allocation36_spill] sm:$0xff] %v8531_v23  ;;  %v3120_v23 = vadd.f32 %v8583_v30, %v8429_v24 }
 0x5b4   :  { %9551 = vst [vmem:[#allocation34_spill] sm:$0xff] %v8533_v53  ;;  %v3041_v53 = vadd.f32 %v8581_v59, %v8427_v7 }
 0x5b5   :  { %5904 = vmatmul.msk.bf16.vlgmr.msrb.gmra.mxu0 %vm2747_vm7, %v6482_v21  ;;  %5918 = vmatmul.msk.bf16.vlgmr.msrb.gmra.mxu1 %vm2747_vm7, %v6482_v21 }
 0x5b6   :  { %v8591_v26 = vpop.f32.mrf.mxu2  ;;  %v8593_v10 = vpop.f32.mrf.mxu3 }
 0x5ba   :  { %v8541_v33 = vpop.f32.mrf.mxu0  ;;  %v8543_v51 = vpop.f32.mrf.mxu1 }
 0x5bb   :  { %5774 = vmatmul.msk.bf16.gmra.mxu2 %vm2747_vm7, %v8431_v44  ;;  %5788 = vmatmul.msk.bf16.gmra.mxu3 %vm2747_vm7, %v8431_v44  ;;  %9552 = vst [vmem:[#allocation35_spill] sm:$0xff] %v8541_v33  ;;  %v6524_v33 = vld [vmem:[#allocation10] sm:$0xff] }
 0x5bc   :  { %9553 = vst [vmem:[#allocation39_spill] sm:$0xff] %v8543_v51  ;;  %v3623_v51 = vld [vmem:[%s9281_s5] sm:$0x3] }
 0x5be   :  { %v8607_v31 = vpop.f32.mrf.mxu2  ;;  %v8609_v38 = vpop.f32.mrf.mxu3 }
 0x5c2   :  { %v8545_v4 = vpop.f32.mrf.mxu0  ;;  %v8547_v55 = vpop.f32.mrf.mxu1 }
 0x5c3   :  { %9554 = vst [vmem:[#allocation40_spill] sm:$0xff] %v8545_v4  ;;  %v8684_v4 = vperm.slane %v3623_v51, 0 }
 0x5c4   :  { %9555 = vst [vmem:[#allocation41_spill] sm:$0xff] %v8547_v55  ;;  %v6532_v55 = vld [vmem:[#allocation10 + $0x40] sm:$0xff] }
 0x5c5   :  { %5905 = vmatmul.msk.bf16.gmra.mxu0 %vm2747_vm7, %v6483_v9  ;;  %5919 = vmatmul.msk.bf16.gmra.mxu1 %vm2747_vm7, %v6483_v9 }
 0x5c6   :  { %v8617_v25 = vpop.f32.mrf.mxu2  ;;  %v8619_v42 = vpop.f32.mrf.mxu3 }
 0x5ca   :  { %v8555_v44 = vpop.f32.mrf.mxu0  ;;  %v8557_v1 = vpop.f32.mrf.mxu1 }
 0x5cb   :  { %5775 = vmatmul.msk.bf16.gmra.mxu2 %vm2747_vm7, %v8454_v27  ;;  %5789 = vmatmul.msk.bf16.gmra.mxu3 %vm2747_vm7, %v8454_v27  ;;  %9556 = vst [vmem:[#allocation37_spill] sm:$0xff] %v8555_v44 }
 0x5cc   :  { %9557 = vst [vmem:[#allocation38_spill] sm:$0xff] %v8557_v1 }
 0x5d2   :  { %v8563_v8 = vpop.f32.mrf.mxu0  ;;  %v8565_v48 = vpop.f32.mrf.mxu1 }
 0x5d3   :  { %9558 = vst [vmem:[#allocation42_spill] sm:$0xff] %v8563_v8  ;;  %v6526_v8 = vld [vmem:[#allocation10 + $0x10] sm:$0xff] }
 0x5d4   :  { %9559 = vst [vmem:[#allocation43_spill] sm:$0xff] %v8565_v48  ;;  %v6534_v48 = vld [vmem:[#allocation10 + $0x50] sm:$0xff] }
 0x5d5   :  { %5906 = vmatmul.msk.bf16.gmra.mxu0 %vm2747_vm7, %v6484_v20  ;;  %5920 = vmatmul.msk.bf16.gmra.mxu1 %vm2747_vm7, %v6484_v20 }
 0x5da   :  { %v8577_v27 = vpop.f32.mrf.mxu0  ;;  %v8579_v54 = vpop.f32.mrf.mxu1 }
 0x5db   :  { %5776 = vmatmul.msk.bf16.gmra.mxu2 %vm2747_vm7, %v8477_v2  ;;  %5790 = vmatmul.msk.bf16.gmra.mxu3 %vm2747_vm7, %v8477_v2  ;;  %9560 = vst [vmem:[#allocation44_spill] sm:$0xff] %v8577_v27  ;;  %v6536_v2 = vld [vmem:[#allocation10 + $0x60] sm:$0xff] }
 0x5dc   :  { %9561 = vst [vmem:[#allocation45_spill] sm:$0xff] %v8579_v54  ;;  %4054 = vmatpush.bf16.msra.mxu3 %v6536_v2  ;;  %v8629_v2 = vpop.f32.mrf.mxu3  ;;  %v6527_v54 = vld [vmem:[#allocation10 + $0x18] sm:$0xff] }
 0x5e2   :  { %v8585_v45 = vpop.f32.mrf.mxu0  ;;  %v8587_v40 = vpop.f32.mrf.mxu1 }
 0x5e3   :  { %9562 = vst [vmem:[#allocation48_spill] sm:$0xff] %v8585_v45  ;;  %v6490_v45 = vld [vmem:[#allocation3 + $0x50] sm:$0xff] }
 0x5e4   :  { %9563 = vst [vmem:[#allocation49_spill] sm:$0xff] %v8587_v40 }
 0x5e5   :  { %5907 = vmatmul.msk.bf16.gmra.mxu0 %vm2747_vm7, %v6485_v14  ;;  %5921 = vmatmul.msk.bf16.gmra.mxu1 %vm2747_vm7, %v6485_v14  ;;  %v8627_v14 = vpop.f32.mrf.mxu2 }
 0x5ea   :  { %v8599_v46 = vpop.f32.mrf.mxu0  ;;  %v8601_v41 = vpop.f32.mrf.mxu1 }
 0x5eb   :  { %5777 = vmatmul.msk.bf16.gmra.mxu2 %vm2747_vm7, %v8500_v61  ;;  %5791 = vmatmul.msk.bf16.gmra.mxu3 %vm2747_vm7, %v8500_v61  ;;  %9564 = vst [vmem:[#allocation50_spill] sm:$0xff] %v8599_v46  ;;  %v6489_v46 = vld [vmem:[#allocation3 + $0x48] sm:$0xff] }
 0x5ec   :  { %9565 = vst [vmem:[#allocation46_spill] sm:$0xff] %v8601_v41 }
 0x5f2   :  { %v8603_v43 = vpop.f32.mrf.mxu0  ;;  %v8605_v60 = vpop.f32.mrf.mxu1 }
 0x5f3   :  { %9566 = vst [vmem:[#allocation47_spill] sm:$0xff] %v8603_v43  ;;  %v6488_v43 = vld [vmem:[#allocation3 + $0x40] sm:$0xff] }
 0x5f4   :  { %9567 = vst [vmem:[#allocation51_spill] sm:$0xff] %v8605_v60  ;;  %v8641_v60 = vpop.f32.mrf.mxu3 }
 0x5f5   :  { %5908 = vmatmul.msk.bf16.gmra.mxu0 %vm2747_vm7, %v6486_v15  ;;  %5922 = vmatmul.msk.bf16.gmra.mxu1 %vm2747_vm7, %v6486_v15 }
 0x5fa   :  { %v8613_v61 = vpop.f32.mrf.mxu0  ;;  %v8615_v21 = vpop.f32.mrf.mxu1 }
 0x5fb   :  { %9568 = vst [vmem:[#allocation52_spill] sm:$0xff] %v8613_v61 }
 0x5fc   :  { %9569 = vst [vmem:[#allocation58_spill] sm:$0xff] %v8615_v21  ;;  %v6535_v21 = vld [vmem:[#allocation10 + $0x58] sm:$0xff] }
 0x5fd   :  { %4055 = vmatpush.bf16.msra.mxu3 %v6535_v21 }
 0x601   :  { %4056 = vmatpush.bf16.msra.mxu3 %v6534_v48  ;;  %v3036_v48 = vadd.f32 %v8559_v29, %v8404_v6 }
 0x602   :  { %v8621_v9 = vpop.f32.mrf.mxu0  ;;  %v8623_v20 = vpop.f32.mrf.mxu1 }
 0x603   :  { %9570 = vst [vmem:[#allocation53_spill] sm:$0xff] %v8621_v9 }
 0x604   :  { %9571 = vst [vmem:[#allocation55_spill] sm:$0xff] %v8623_v20  ;;  %v8639_v20 = vpop.f32.mrf.mxu2 }
 0x605   :  { %5909 = vmatmul.msk.bf16.gmra.mxu0 %vm2747_vm7, %v6487_v19  ;;  %5923 = vmatmul.msk.bf16.gmra.mxu1 %vm2747_vm7, %v6487_v19  ;;  %v6528_v19 = vld [vmem:[#allocation10 + $0x20] sm:$0xff] }
 0x606   :  { %4010 = vmatpush.bf16.msra.mxu2 %v6528_v19 }
 0x60a   :  { %v8631_v15 = vpop.f32.mrf.mxu0  ;;  %v8633_v28 = vpop.f32.mrf.mxu1  ;;  %4011 = vmatpush.bf16.msra.mxu2 %v6527_v54 }
 0x60b   :  { %9572 = vst [vmem:[#allocation60_spill] sm:$0xff] %v8631_v15 }
 0x60c   :  { %9573 = vst [vmem:[#allocation62_spill] sm:$0xff] %v8633_v28  ;;  %v8649_v21 = vpop.f32.mrf.mxu2 }
 0x60e   :  { %4012 = vmatpush.bf16.msra.mxu2 %v6526_v8  ;;  %v3115_v8 = vadd.f32 %v8561_v35, %v8406_v47 }
 0x612   :  { %v8635_v61 = vpop.f32.mrf.mxu0  ;;  %v8637_v9 = vpop.f32.mrf.mxu1 }
 0x613   :  { %9574 = vst [vmem:[#allocation54_spill] sm:$0xff] %v8635_v61  ;;  %v8651_v61 = vpop.f32.mrf.mxu3 }
 0x614   :  { %9575 = vst [vmem:[#allocation57_spill] sm:$0xff] %v8637_v9 }
 0x615   :  { %5910 = vmatmul.msk.bf16.gmra.mxu0 %vm2747_vm7, %v6488_v43  ;;  %5924 = vmatmul.msk.bf16.gmra.mxu1 %vm2747_vm7, %v6488_v43  ;;  %v8659_v43 = vpop.f32.mrf.mxu2 }
 0x61a   :  { %v8645_v15 = vpop.f32.mrf.mxu0  ;;  %v8647_v28 = vpop.f32.mrf.mxu1 }
 0x61b   :  { %9576 = vst [vmem:[#allocation56_spill] sm:$0xff] %v8645_v15  ;;  %v8661_v19 = vpop.f32.mrf.mxu3 }
 0x61c   :  { %9577 = vst [vmem:[#allocation59_spill] sm:$0xff] %v8647_v28 }
 0x61d   :  { %v8667_v27 = vpop.f32.mrf.mxu2 }
 0x622   :  { %v8653_v9 = vpop.f32.mrf.mxu0  ;;  %v8655_v41 = vpop.f32.mrf.mxu1 }
 0x623   :  { %9578 = vst [vmem:[#allocation61_spill] sm:$0xff] %v8653_v9  ;;  %v8669_v40 = vpop.f32.mrf.mxu3 }
 0x624   :  { %9579 = vst [vmem:[#allocation64_spill] sm:$0xff] %v8655_v41 }
 0x625   :  { %5911 = vmatmul.msk.bf16.gmra.mxu0 %vm2747_vm7, %v6489_v46  ;;  %5925 = vmatmul.msk.bf16.gmra.mxu1 %vm2747_vm7, %v6489_v46  ;;  %v6525_v46 = vld [vmem:[#allocation10 + $0x8] sm:$0xff]  ;;  %v8673_v44 = vpop.f32.mrf.mxu2 }
 0x626   :  { %4013 = vmatpush.bf16.msra.mxu2 %v6525_v46  ;;  %v8686_v46 = vperm.slane %v3623_v51, 1  ;;  %v3117_v51 = vadd.f32 %v8569_v58, %v8423_v56  ;;  %v3043_v56 = vadd.f32 %v8591_v26, %v8444_v63  ;;  %v3122_v58 = vadd.f32 %v8593_v10, %v8446_v62 }
 0x62a   :  { %v8663_v15 = vpop.f32.mrf.mxu0  ;;  %v8665_v28 = vpop.f32.mrf.mxu1  ;;  %4014 = vmatpush.bf16.msra.mxu2 %v6524_v33  ;;  %v3038_v33 = vadd.f32 %v8567_v5, %v8421_v37 }
 0x62b   :  { %9580 = vst [vmem:[#allocation63_spill] sm:$0xff] %v8663_v15  ;;  %v6533_v15 = vld [vmem:[#allocation10 + $0x48] sm:$0xff]  ;;  %v8675_v54 = vpop.f32.mrf.mxu3 }
 0x62c   :  { %9581 = vst [vmem:[#allocation65_spill] sm:$0xff] %v8665_v28  ;;  %4057 = vmatpush.bf16.msra.mxu3 %v6533_v15 }
 0x62d   :  { %9582 = vst [vmem:[#allocation71_spill] sm:$0xff] %v8675_v54 }
 0x630   :  { %4058 = vmatpush.bf16.msra.mxu3 %v6532_v55  ;;  %v8698_v55 = vpop.f32.mrf.mxu2 }
 0x632   :  { %v3418_v41 = vpop.f32.mrf.mxu0  ;;  %v3497_v9 = vpop.f32.mrf.mxu1 }
 0x633   :  { %v3568_v15 = vadd.f32 %v3497_v9, %v3115_v8  ;;  %v8700_v7 = vpop.f32.mrf.mxu3 }
 0x635   :  { %5912 = vmatmul.msk.bf16.gmra.mxu0 %vm2747_vm7, %v6490_v45  ;;  %5926 = vmatmul.msk.bf16.gmra.mxu1 %vm2747_vm7, %v6490_v45  ;;  %v3567_v45 = vadd.f32 %v3418_v41, %v3036_v48  ;;  %v3630_v47 = vadd.f32 %v8686_v46, %v3568_v15  ;;  %v6491_v48 = vld [vmem:[#allocation3 + $0x58] sm:$0xff] }
 0x637   :  { %v3629_v54 = vadd.f32 %v8684_v4, %v3567_v45  ;;  %v3686_v30 = vmax.f32 %v3630_v47, 0.0 }
 0x638   :  { %v8716_v26 = vpop.f32.mrf.mxu2 }
 0x63a   :  { %v3420_v28 = vpop.f32.mrf.mxu0  ;;  %v3499_v1 = vpop.f32.mrf.mxu1 }
 0x63b   :  { %v3570_v9 = vadd.f32 %v3499_v1, %v3117_v51  ;;  %v8718_v62 = vpop.f32.mrf.mxu3 }
 0x642   :  { %v3423_v6 = vpop.f32.mrf.mxu0  ;;  %v3502_v29 = vpop.f32.mrf.mxu1 }
 0x643   :  { %v3571_v35 = vadd.f32 %v3423_v6, %v3041_v53  ;;  %v3572_v41 = vadd.f32 %v3502_v29, %v3120_v23  ;;  %v3685_v23 = vmax.f32 %v3629_v54, 0.0  ;;  %v3569_v53 = vadd.f32 %v3420_v28, %v3038_v33 }
 0x645   :  { %v3633_v24 = vadd.f32 %v8684_v4, %v3571_v35  ;;  %v3634_v59 = vadd.f32 %v8686_v46, %v3572_v41  ;;  %5913 = vmatmul.msk.bf16.gmra.mxu0 %vm2747_vm7, %v6491_v48  ;;  %5927 = vmatmul.msk.bf16.gmra.mxu1 %vm2747_vm7, %v6491_v48  ;;  %v3631_v15 = vadd.f32 %v8684_v4, %v3569_v53 }
 0x646   :  { %v3632_v35 = vadd.f32 %v8686_v46, %v3570_v9  ;;  %v8724_v9 = vpop.f32.mrf.mxu2 }
 0x647   :  { %v3689_v37 = vmax.f32 %v3633_v24, 0.0  ;;  %v3690_v5 = vmax.f32 %v3634_v59, 0.0  ;;  %v3687_v10 = vmax.f32 %v3631_v15, 0.0 }
 0x648   :  { %v3688_v41 = vmax.f32 %v3632_v35, 0.0 }
 0x649   :  { %v3741_v8 = vmax.f32 %v3685_v23, %v3689_v37  ;;  %v3742_v45 = vmax.f32 %v3686_v30, %v3690_v5  ;;  %v6492_v30 = vld [vmem:[#allocation3 + $0x60] sm:$0xff]  ;;  %v8726_v37 = vpop.f32.mrf.mxu3 }
 0x64a   :  { %v3425_v6 = vpop.f32.mrf.mxu0  ;;  %v3504_v29 = vpop.f32.mrf.mxu1 }
 0x64b   :  { %v3745_v54 = vpack.c.bf16 %v3742_v45, %v3741_v8  ;;  %v3573_v28 = vadd.f32 %v3425_v6, %v3043_v56  ;;  %v3574_v47 = vadd.f32 %v3504_v29, %v3122_v58  ;;  %v3046_v8 = vadd.f32 %v8607_v31, %v8450_v57 }
 0x64c   :  { %v3125_v29 = vadd.f32 %v8609_v38, %v8452_v49  ;;  %v3051_v57 = vadd.f32 %v8627_v14, %v8473_v39  ;;  %v3130_v31 = vadd.f32 %v8629_v2, %v8475_v0  ;;  %v3127_v39 = vadd.f32 %v8619_v42, %v8469_v17 }
 0x64d   :  { %3747 = vst.msk [vmem:[#allocation4] sm:$0xff] %vm7641_vm4, %v3745_v54  ;;  %v3635_v1 = vadd.f32 %v8684_v4, %v3573_v28  ;;  %v3636_v63 = vadd.f32 %v8686_v46, %v3574_v47  ;;  %v3132_v17 = vadd.f32 %v8641_v60, %v8492_v32 }
 0x64f   :  { %v3691_v48 = vmax.f32 %v3635_v1, 0.0  ;;  %v3692_v33 = vmax.f32 %v3636_v63, 0.0  ;;  %v8744_v63 = vpop.f32.mrf.mxu2 }
 0x651   :  { %v3743_v51 = vmax.f32 %v3687_v10, %v3691_v48  ;;  %v3744_v24 = vmax.f32 %v3688_v41, %v3692_v33  ;;  %v8746_v10 = vpop.f32.mrf.mxu3 }
 0x652   :  { %v3428_v59 = vpop.f32.mrf.mxu0  ;;  %v3507_v23 = vpop.f32.mrf.mxu1 }
 0x653   :  { %v3746_v53 = vpack.c.bf16 %v3744_v24, %v3743_v51  ;;  %v3575_v28 = vadd.f32 %v3428_v59, %v3046_v8  ;;  %v3576_v47 = vadd.f32 %v3507_v23, %v3125_v29  ;;  %v6493_v51 = vld [vmem:[#allocation3 + $0x68] sm:$0xff]  ;;  %v3048_v24 = vadd.f32 %v8617_v25, %v8467_v52 }
 0x654   :  { %v5934_v58 = vld [vmem:[#allocation4] sm:$0xf]  ;;  %v6510_v15 = vld [vmem:[#allocation4 + $0x4] sm:$0xf]  ;;  %v3053_v52 = vadd.f32 %v8639_v20, %v8490_v22 }
 0x655   :  { %3748 = vst.msk [vmem:[#allocation4 + $0x8] sm:$0xff] %vm7641_vm4, %v3746_v53  ;;  %5914 = vmatmul.msk.bf16.gmra.mxu0 %vm2747_vm7, %v6492_v30  ;;  %5928 = vmatmul.msk.bf16.gmra.mxu1 %vm2747_vm7, %v6492_v30  ;;  %v3637_v1 = vadd.f32 %v8684_v4, %v3575_v28  ;;  %v3638_v41 = vadd.f32 %v8686_v46, %v3576_v47 }
 0x657   :  { %v3693_v2 = vmax.f32 %v3637_v1, 0.0  ;;  %v3694_v23 = vmax.f32 %v3638_v41, 0.0 }
 0x659   :  { %v8765_v47 = vpop.f32.mrf.mxu3 }
 0x65a   :  { %v3430_v5 = vpop.f32.mrf.mxu0  ;;  %v3509_v56 = vpop.f32.mrf.mxu1 }
 0x65b   :  { %v3577_v59 = vadd.f32 %v3430_v5, %v3048_v24  ;;  %v3578_v53 = vadd.f32 %v3509_v56, %v3127_v39  ;;  %v8763_v56 = vpop.f32.mrf.mxu2 }
 0x65c   :  { %v6511_v45 = vld [vmem:[#allocation4 + $0x4] sm:$0xf0]  ;;  %v5936_v6 = vld [vmem:[#allocation4 + $0x8] sm:$0xf0] }
 0x65d   :  { %v8732_v35 = vor.u32 %v6511_v45, %v5934_v58  ;;  %v8734_v54 = vor.u32 %v6510_v15, %v5936_v6  ;;  %v3639_v8 = vadd.f32 %v8684_v4, %v3577_v59  ;;  %v3640_v6 = vadd.f32 %v8686_v46, %v3578_v53 }
 0x65f   :  { %4015 = vmatmul.bf16.vlgmr.msra.gmra.mxu2 %v8732_v35  ;;  %6044 = vmatmul.msk.bf16.vlgmr.msra.gmra.mxu3 %vm1987_vm5, %v8734_v54  ;;  %v3695_v60 = vmax.f32 %v3639_v8, 0.0  ;;  %v3696_v20 = vmax.f32 %v3640_v6, 0.0 }
 0x661   :  { %v8777_v24 = vpop.f32.mrf.mxu3 }
 0x662   :  { %v3433_v49 = vpop.f32.mrf.mxu0  ;;  %v3512_v38 = vpop.f32.mrf.mxu1 }
 0x663   :  { %v3579_v48 = vadd.f32 %v3433_v49, %v3051_v57  ;;  %v3580_v33 = vadd.f32 %v3512_v38, %v3130_v31 }
 0x665   :  { %v3641_v0 = vadd.f32 %v8684_v4, %v3579_v48  ;;  %v3642_v14 = vadd.f32 %v8686_v46, %v3580_v33  ;;  %5915 = vmatmul.msk.bf16.gmra.mxu0 %vm2747_vm7, %v6493_v51  ;;  %5929 = vmatmul.msk.bf16.gmra.mxu1 %vm2747_vm7, %v6493_v51  ;;  %v6494_v33 = vld [vmem:[#allocation3 + $0x70] sm:$0xff]  ;;  %v8775_v51 = vpop.f32.mrf.mxu2 }
 0x667   :  { %v3697_v30 = vmax.f32 %v3641_v0, 0.0  ;;  %v3698_v58 = vmax.f32 %v3642_v14, 0.0 }
 0x669   :  { %v3749_v25 = vmax.f32 %v3693_v2, %v3697_v30  ;;  %v3750_v42 = vmax.f32 %v3694_v23, %v3698_v58  ;;  %v3056_v2 = vadd.f32 %v8649_v21, %v8496_v16  ;;  %v3135_v30 = vadd.f32 %v8651_v61, %v8498_v12  ;;  %v8796_v12 = vpop.f32.mrf.mxu3  ;;  %v6495_v61 = vld [vmem:[#allocation3 + $0x78] sm:$0xff] }
 0x66a   :  { %v3435_v45 = vpop.f32.mrf.mxu0  ;;  %v3514_v15 = vpop.f32.mrf.mxu1  ;;  %v3061_v16 = vadd.f32 %v8667_v27, %v8517_v18  ;;  %v3140_v21 = vadd.f32 %v8669_v40, %v8519_v13  ;;  %v3137_v18 = vadd.f32 %v8661_v19, %v8514_v34 }
 0x66b   :  { %v3753_v29 = vpack.c.bf16 %v3750_v42, %v3749_v25  ;;  %v3581_v5 = vadd.f32 %v3435_v45, %v3053_v52  ;;  %v3582_v28 = vadd.f32 %v3514_v15, %v3132_v17 }
 0x66d   :  { %3755 = vst.msk [vmem:[#allocation4 + $0x10] sm:$0xff] %vm7641_vm4, %v3753_v29  ;;  %v3643_v22 = vadd.f32 %v8684_v4, %v3581_v5  ;;  %v3644_v32 = vadd.f32 %v8686_v46, %v3582_v28  ;;  %v8794_v42 = vpop.f32.mrf.mxu2  ;;  %v3058_v28 = vadd.f32 %v8659_v43, %v8512_v36  ;;  %v3063_v36 = vadd.f32 %v8673_v44, %v8527_v11  ;;  %v9583_v43 = vld [vmem:[#allocation71_spill] sm:$0xff] }
 0x66e   :  { %v3142_v34 = vadd.f32 %v9583_v43, %v8529_v3  ;;  %v9586_v43 = vld [vmem:[#allocation40_spill] sm:$0xff] }
 0x66f   :  { %v3699_v57 = vmax.f32 %v3643_v22, 0.0  ;;  %v3700_v31 = vmax.f32 %v3644_v32, 0.0 }
 0x671   :  { %v3751_v1 = vmax.f32 %v3695_v60, %v3699_v57  ;;  %v3752_v49 = vmax.f32 %v3696_v20, %v3700_v31 }
 0x672   :  { %v3438_v38 = vpop.f32.mrf.mxu0  ;;  %v3517_v41 = vpop.f32.mrf.mxu1 }
 0x673   :  { %v3754_v48 = vpack.c.bf16 %v3752_v49, %v3751_v1  ;;  %v3583_v17 = vadd.f32 %v3438_v38, %v3056_v2  ;;  %v3584_v25 = vadd.f32 %v3517_v41, %v3135_v30 }
 0x674   :  { %v5942_v14 = vld [vmem:[#allocation4 + $0x10] sm:$0xf]  ;;  %v6512_v23 = vld [vmem:[#allocation4 + $0x14] sm:$0xf] }
 0x675   :  { %3756 = vst.msk [vmem:[#allocation4 + $0x18] sm:$0xff] %vm7641_vm4, %v3754_v48  ;;  %5916 = vmatmul.msk.bf16.gmra.mxu0 %vm2747_vm7, %v6494_v33  ;;  %5930 = vmatmul.msk.bf16.gmra.mxu1 %vm2747_vm7, %v6494_v33  ;;  %v3645_v8 = vadd.f32 %v8684_v4, %v3583_v17  ;;  %v3646_v6 = vadd.f32 %v8686_v46, %v3584_v25  ;;  %v8813_v41 = vpop.f32.mrf.mxu2  ;;  %v8815_v48 = vpop.f32.mrf.mxu3 }
 0x677   :  { %v3701_v40 = vmax.f32 %v3645_v8, 0.0  ;;  %v3702_v32 = vmax.f32 %v3646_v6, 0.0  ;;  %v9584_v6 = vld [vmem:[#allocation36_spill] sm:$0xff] }
 0x67a   :  { %v3440_v39 = vpop.f32.mrf.mxu0  ;;  %v3519_v0 = vpop.f32.mrf.mxu1 }
 0x67b   :  { %v3585_v22 = vadd.f32 %v3440_v39, %v3058_v28  ;;  %v3586_v60 = vadd.f32 %v3519_v0, %v3137_v18 }
 0x67c   :  { %v6513_v59 = vld [vmem:[#allocation4 + $0x14] sm:$0xf0]  ;;  %v5944_v53 = vld [vmem:[#allocation4 + $0x18] sm:$0xf0] }
 0x67d   :  { %v8783_v58 = vor.u32 %v6513_v59, %v5942_v14  ;;  %v8785_v52 = vor.u32 %v6512_v23, %v5944_v53  ;;  %v3647_v1 = vadd.f32 %v8684_v4, %v3585_v22  ;;  %v3648_v33 = vadd.f32 %v8686_v46, %v3586_v60 }
 0x67f   :  { %4020 = vmatmul.bf16.gmra.mxu2 %v8783_v58  ;;  %6045 = vmatmul.msk.bf16.gmra.mxu3 %vm1987_vm5, %v8785_v52  ;;  %v3703_v44 = vmax.f32 %v3647_v1, 0.0  ;;  %v3704_v2 = vmax.f32 %v3648_v33, 0.0 }
 0x682   :  { %v3443_v45 = vpop.f32.mrf.mxu0  ;;  %v3522_v15 = vpop.f32.mrf.mxu1 }
 0x683   :  { %v3587_v29 = vadd.f32 %v3443_v45, %v3061_v16  ;;  %v3588_v5 = vadd.f32 %v3522_v15, %v3140_v21  ;;  %v8822_v21 = vpop.f32.mrf.mxu2 }
 0x685   :  { %v3649_v13 = vadd.f32 %v8684_v4, %v3587_v29  ;;  %v3650_v27 = vadd.f32 %v8686_v46, %v3588_v5  ;;  %5917 = vmatmul.msk.bf16.gmra.mxu0 %vm2747_vm7, %v6495_v61  ;;  %5931 = vmatmul.msk.bf16.gmra.mxu1 %vm2747_vm7, %v6495_v61  ;;  %v8824_v61 = vpop.f32.mrf.mxu3  ;;  %v3066_v29 = vadd.f32 %v8698_v55, %v9584_v6  ;;  %v6545_v55 = vld [vmem:[#allocation10 + $0xa8] sm:$0xff] }
 0x686   :  { %4208 = vmatpush.bf16.msrb.mxu2 %v6545_v55 }
 0x687   :  { %v3705_v20 = vmax.f32 %v3649_v13, 0.0  ;;  %v3706_v57 = vmax.f32 %v3650_v27, 0.0  ;;  %v9585_v13 = vld [vmem:[#allocation34_spill] sm:$0xff] }
 0x688   :  { %v3145_v27 = vadd.f32 %v8700_v7, %v9585_v13  ;;  %v3071_v7 = vadd.f32 %v8724_v9, %v9586_v43 }
 0x689   :  { %v3757_v19 = vmax.f32 %v3701_v40, %v3705_v20  ;;  %v3758_v31 = vmax.f32 %v3702_v32, %v3706_v57 }
 0x68a   :  { %v3445_v49 = vpop.f32.mrf.mxu0  ;;  %v3524_v38 = vpop.f32.mrf.mxu1 }
 0x68b   :  { %v3761_v39 = vpack.c.bf16 %v3758_v31, %v3757_v19  ;;  %v3589_v0 = vadd.f32 %v3445_v49, %v3063_v36  ;;  %v3590_v14 = vadd.f32 %v3524_v38, %v3142_v34  ;;  %v8836_v60 = vpop.f32.mrf.mxu2  ;;  %v6551_v36 = vld [vmem:[#allocation10 + $0xd8] sm:$0xff]  ;;  %v9587_v34 = vld [vmem:[#allocation41_spill] sm:$0xff] }
 0x68c   :  { %v3150_v19 = vadd.f32 %v8726_v37, %v9587_v34  ;;  %4254 = vmatpush.bf16.msrb.mxu3 %v6551_v36 }
 0x68d   :  { %3763 = vst.msk [vmem:[#allocation4 + $0x20] sm:$0xff] %vm7641_vm4, %v3761_v39  ;;  %v3651_v11 = vadd.f32 %v8684_v4, %v3589_v0  ;;  %v3652_v3 = vadd.f32 %v8686_v46, %v3590_v14  ;;  %v8838_v20 = vpop.f32.mrf.mxu3  ;;  %v9588_v0 = vld [vmem:[#allocation35_spill] sm:$0xff] }
 0x68e   :  { %v3068_v14 = vadd.f32 %v8716_v26, %v9588_v0 }
 0x68f   :  { %v3707_v59 = vmax.f32 %v3651_v11, 0.0  ;;  %v3708_v23 = vmax.f32 %v3652_v3, 0.0  ;;  %v9589_v11 = vld [vmem:[#allocation39_spill] sm:$0xff] }
 0x690   :  { %v3147_v3 = vadd.f32 %v8718_v62, %v9589_v11  ;;  %v9592_v11 = vld [vmem:[#allocation42_spill] sm:$0xff] }
 0x691   :  { %v3759_v53 = vmax.f32 %v3703_v44, %v3707_v59  ;;  %v3760_v30 = vmax.f32 %v3704_v2, %v3708_v23 }
 0x692   :  { %v3448_v17 = vpop.f32.mrf.mxu0  ;;  %v3527_v25 = vpop.f32.mrf.mxu1 }
 0x693   :  { %v3762_v16 = vpack.c.bf16 %v3760_v30, %v3759_v53  ;;  %v3591_v32 = vadd.f32 %v3448_v17, %v3066_v29  ;;  %v3592_v57 = vadd.f32 %v3527_v25, %v3145_v27  ;;  %v9590_v17 = vld [vmem:[#allocation37_spill] sm:$0xff]  ;;  %v8859_v26 = vpop.f32.mrf.mxu2 }
 0x694   :  { %v5950_v15 = vld [vmem:[#allocation4 + $0x20] sm:$0xf]  ;;  %v6514_v28 = vld [vmem:[#allocation4 + $0x24] sm:$0xf]  ;;  %v3073_v25 = vadd.f32 %v8744_v63, %v9590_v17 }
 0x695   :  { %3764 = vst.msk [vmem:[#allocation4 + $0x28] sm:$0xff] %vm7641_vm4, %v3762_v16  ;;  %v3653_v31 = vadd.f32 %v8684_v4, %v3591_v32  ;;  %v3654_v38 = vadd.f32 %v8686_v46, %v3592_v57  ;;  %v9591_v16 = vld [vmem:[#allocation38_spill] sm:$0xff]  ;;  %v8861_v6 = vpop.f32.mrf.mxu3 }
 0x697   :  { %v3709_v44 = vmax.f32 %v3653_v31, 0.0  ;;  %v3710_v59 = vmax.f32 %v3654_v38, 0.0  ;;  %v6544_v38 = vld [vmem:[#allocation10 + $0xa0] sm:$0xff] }
 0x698   :  { %4209 = vmatpush.bf16.msrb.mxu2 %v6544_v38  ;;  %v9598_v38 = vld [vmem:[#allocation50_spill] sm:$0xff] }
 0x69a   :  { %v3450_v8 = vpop.f32.mrf.mxu0  ;;  %v3529_v45 = vpop.f32.mrf.mxu1 }
 0x69b   :  { %v3593_v2 = vadd.f32 %v3450_v8, %v3068_v14  ;;  %v3594_v23 = vadd.f32 %v3529_v45, %v3147_v3  ;;  %v8869_v31 = vpop.f32.mrf.mxu2  ;;  %v3076_v3 = vadd.f32 %v8763_v56, %v9592_v11  ;;  %v6543_v56 = vld [vmem:[#allocation10 + $0x98] sm:$0xff] }
 0x69c   :  { %v6515_v5 = vld [vmem:[#allocation4 + $0x24] sm:$0xf0]  ;;  %v5952_v18 = vld [vmem:[#allocation4 + $0x28] sm:$0xf0]  ;;  %4210 = vmatpush.bf16.msrb.mxu2 %v6543_v56 }
 0x69d   :  { %v8832_v40 = vor.u32 %v6515_v5, %v5950_v15  ;;  %v8834_v22 = vor.u32 %v6514_v28, %v5952_v18  ;;  %v3152_v15 = vadd.f32 %v8746_v10, %v9591_v16  ;;  %v3655_v5 = vadd.f32 %v8684_v4, %v3593_v2  ;;  %v9593_v2 = vld [vmem:[#allocation43_spill] sm:$0xff] }
 0x69e   :  { %v3656_v45 = vadd.f32 %v8686_v46, %v3594_v23 }
 0x69f   :  { %4025 = vmatmul.bf16.gmra.mxu2 %v8832_v40  ;;  %6046 = vmatmul.msk.bf16.gmra.mxu3 %vm1987_vm5, %v8834_v22  ;;  %v3711_v32 = vmax.f32 %v3655_v5, 0.0 }
 0x6a0   :  { %v3712_v57 = vmax.f32 %v3656_v45, 0.0 }
 0x6a2   :  { %v3453_v1 = vpop.f32.mrf.mxu0  ;;  %v3532_v49 = vpop.f32.mrf.mxu1 }
 0x6a3   :  { %v3595_v33 = vadd.f32 %v3453_v1, %v3071_v7  ;;  %v3596_v39 = vadd.f32 %v3532_v49, %v3150_v19  ;;  %v8871_v1 = vpop.f32.mrf.mxu3  ;;  %v8879_v23 = vpop.f32.mrf.mxu2 }
 0x6a5   :  { %v3657_v9 = vadd.f32 %v8684_v4, %v3595_v33  ;;  %v3658_v37 = vadd.f32 %v8686_v46, %v3596_v39  ;;  %v6550_v33 = vld [vmem:[#allocation10 + $0xd0] sm:$0xff] }
 0x6a6   :  { %4255 = vmatpush.bf16.msrb.mxu3 %v6550_v33  ;;  %v9599_v33 = vld [vmem:[#allocation46_spill] sm:$0xff] }
 0x6a7   :  { %v3713_v53 = vmax.f32 %v3657_v9, 0.0  ;;  %v3714_v30 = vmax.f32 %v3658_v37, 0.0 }
 0x6a9   :  { %v3765_v62 = vmax.f32 %v3709_v44, %v3713_v53  ;;  %v3766_v29 = vmax.f32 %v3710_v59, %v3714_v30  ;;  %v3155_v59 = vadd.f32 %v8765_v47, %v9593_v2  ;;  %v9595_v47 = vld [vmem:[#allocation49_spill] sm:$0xff] }
 0x6aa   :  { %v3455_v28 = vpop.f32.mrf.mxu0  ;;  %v3534_v8 = vpop.f32.mrf.mxu1 }
 0x6ab   :  { %v3769_v18 = vpack.c.bf16 %v3766_v29, %v3765_v62  ;;  %v3597_v13 = vadd.f32 %v3455_v28, %v3073_v25  ;;  %v3598_v27 = vadd.f32 %v3534_v8, %v3152_v15  ;;  %v8881_v53 = vpop.f32.mrf.mxu3  ;;  %v9594_v15 = vld [vmem:[#allocation48_spill] sm:$0xff]  ;;  %v3160_v29 = vadd.f32 %v8796_v12, %v9595_v47 }
 0x6ac   :  { %v3081_v62 = vadd.f32 %v8794_v42, %v9594_v15 }
 0x6ad   :  { %3771 = vst.msk [vmem:[#allocation4 + $0x30] sm:$0xff] %vm7641_vm4, %v3769_v18  ;;  %v3659_v63 = vadd.f32 %v8684_v4, %v3597_v13  ;;  %v3660_v10 = vadd.f32 %v8686_v46, %v3598_v27  ;;  %v9596_v27 = vld [vmem:[#allocation44_spill] sm:$0xff] }
 0x6af   :  { %v3715_v55 = vmax.f32 %v3659_v63, 0.0  ;;  %v3716_v36 = vmax.f32 %v3660_v10, 0.0  ;;  %v3078_v63 = vadd.f32 %v8775_v51, %v9596_v27  ;;  %v9597_v10 = vld [vmem:[#allocation45_spill] sm:$0xff]  ;;  %v3083_v51 = vadd.f32 %v8813_v41, %v9598_v38  ;;  %v6548_v27 = vld [vmem:[#allocation10 + $0xc0] sm:$0xff] }
 0x6b1   :  { %v3767_v43 = vmax.f32 %v3711_v32, %v3715_v55  ;;  %v3768_v7 = vmax.f32 %v3712_v57, %v3716_v36  ;;  %v3157_v32 = vadd.f32 %v8777_v24, %v9597_v10  ;;  %v8902_v36 = vpop.f32.mrf.mxu2  ;;  %v3162_v24 = vadd.f32 %v8815_v48, %v9599_v33  ;;  %v6542_v48 = vld [vmem:[#allocation10 + $0x90] sm:$0xff] }
 0x6b2   :  { %v3458_v34 = vpop.f32.mrf.mxu0  ;;  %v3537_v19 = vpop.f32.mrf.mxu1  ;;  %4211 = vmatpush.bf16.msrb.mxu2 %v6542_v48 }
 0x6b3   :  { %v3770_v49 = vpack.c.bf16 %v3768_v7, %v3767_v43  ;;  %v3599_v25 = vadd.f32 %v3458_v34, %v3076_v3  ;;  %v3600_v16 = vadd.f32 %v3537_v19, %v3155_v59  ;;  %v8904_v43 = vpop.f32.mrf.mxu3 }
 0x6b4   :  { %v5958_v14 = vld [vmem:[#allocation4 + $0x30] sm:$0xf]  ;;  %v6516_v37 = vld [vmem:[#allocation4 + $0x34] sm:$0xf] }
 0x6b5   :  { %3772 = vst.msk [vmem:[#allocation4 + $0x38] sm:$0xff] %vm7641_vm4, %v3770_v49  ;;  %v3661_v5 = vadd.f32 %v8684_v4, %v3599_v25  ;;  %v3662_v45 = vadd.f32 %v8686_v46, %v3600_v16  ;;  %v6549_v25 = vld [vmem:[#allocation10 + $0xc8] sm:$0xff] }
 0x6b6   :  { %4256 = vmatpush.bf16.msrb.mxu3 %v6549_v25  ;;  %v9604_v25 = vld [vmem:[#allocation52_spill] sm:$0xff] }
 0x6b7   :  { %v3717_v12 = vmax.f32 %v3661_v5, 0.0  ;;  %v3718_v7 = vmax.f32 %v3662_v45, 0.0  ;;  %v3088_v48 = vadd.f32 %v8836_v60, %v9604_v25 }
 0x6b9   :  { %v8916_v47 = vpop.f32.mrf.mxu2 }
 0x6ba   :  { %v3460_v39 = vpop.f32.mrf.mxu0  ;;  %v3539_v0 = vpop.f32.mrf.mxu1  ;;  %4257 = vmatpush.bf16.msrb.mxu3 %v6548_v27 }
 0x6bb   :  { %v3601_v55 = vadd.f32 %v3460_v39, %v3078_v63  ;;  %v3602_v34 = vadd.f32 %v3539_v0, %v3157_v32 }
 0x6bc   :  { %v6517_v9 = vld [vmem:[#allocation4 + $0x34] sm:$0xf0]  ;;  %v5960_v44 = vld [vmem:[#allocation4 + $0x38] sm:$0xf0] }
 0x6bd   :  { %v8883_v30 = vor.u32 %v6517_v9, %v5958_v14  ;;  %v8885_v17 = vor.u32 %v6516_v37, %v5960_v44  ;;  %v3663_v3 = vadd.f32 %v8684_v4, %v3601_v55  ;;  %v3664_v37 = vadd.f32 %v8686_v46, %v3602_v34 }
 0x6bf   :  { %4030 = vmatmul.bf16.gmra.mxu2 %v8883_v30  ;;  %6047 = vmatmul.msk.bf16.gmra.mxu3 %vm1987_vm5, %v8885_v17  ;;  %v3719_v16 = vmax.f32 %v3663_v3, 0.0  ;;  %v3720_v56 = vmax.f32 %v3664_v37, 0.0  ;;  %v9603_v3 = vld [vmem:[#allocation55_spill] sm:$0xff] }
 0x6c1   :  { %v8922_v32 = vpop.f32.mrf.mxu2 }
 0x6c2   :  { %v3463_v28 = vpop.f32.mrf.mxu0  ;;  %v3542_v8 = vpop.f32.mrf.mxu1 }
 0x6c3   :  { %v3603_v18 = vadd.f32 %v3463_v28, %v3081_v62  ;;  %v3604_v13 = vadd.f32 %v3542_v8, %v3160_v29  ;;  %v8918_v29 = vpop.f32.mrf.mxu3 }
 0x6c5   :  { %v3665_v42 = vadd.f32 %v8684_v4, %v3603_v18  ;;  %v3666_v57 = vadd.f32 %v8686_v46, %v3604_v13  ;;  %v6541_v13 = vld [vmem:[#allocation10 + $0x88] sm:$0xff] }
 0x6c6   :  { %4212 = vmatpush.bf16.msrb.mxu2 %v6541_v13  ;;  %v9606_v13 = vld [vmem:[#allocation60_spill] sm:$0xff] }
 0x6c7   :  { %v3721_v19 = vmax.f32 %v3665_v42, 0.0  ;;  %v3722_v49 = vmax.f32 %v3666_v57, 0.0  ;;  %v3093_v27 = vadd.f32 %v8869_v31, %v9606_v13 }
 0x6c9   :  { %v3773_v14 = vmax.f32 %v3717_v12, %v3721_v19  ;;  %v3774_v11 = vmax.f32 %v3718_v7, %v3722_v49  ;;  %v9600_v12 = vld [vmem:[#allocation47_spill] sm:$0xff] }
 0x6ca   :  { %v3465_v9 = vpop.f32.mrf.mxu0  ;;  %v3544_v39 = vpop.f32.mrf.mxu1  ;;  %v3086_v55 = vadd.f32 %v8822_v21, %v9600_v12  ;;  %v9601_v49 = vld [vmem:[#allocation51_spill] sm:$0xff] }
 0x6cb   :  { %v3777_v44 = vpack.c.bf16 %v3774_v11, %v3773_v14  ;;  %v3605_v2 = vadd.f32 %v3465_v9, %v3083_v51  ;;  %v3606_v59 = vadd.f32 %v3544_v39, %v3162_v24  ;;  %v8924_v42 = vpop.f32.mrf.mxu3  ;;  %v3165_v38 = vadd.f32 %v8824_v61, %v9601_v49  ;;  %v9602_v11 = vld [vmem:[#allocation53_spill] sm:$0xff] }
 0x6cc   :  { %v3091_v21 = vadd.f32 %v8859_v26, %v9602_v11  ;;  %v3170_v9 = vadd.f32 %v8861_v6, %v9603_v3 }
 0x6cd   :  { %3779 = vst.msk [vmem:[#allocation4 + $0x40] sm:$0xff] %vm7641_vm4, %v3777_v44  ;;  %v3667_v0 = vadd.f32 %v8684_v4, %v3605_v2  ;;  %v3668_v41 = vadd.f32 %v8686_v46, %v3606_v59 }
 0x6cf   :  { %v3723_v15 = vmax.f32 %v3667_v0, 0.0  ;;  %v3724_v62 = vmax.f32 %v3668_v41, 0.0 }
 0x6d1   :  { %v3775_v5 = vmax.f32 %v3719_v16, %v3723_v15  ;;  %v3776_v28 = vmax.f32 %v3720_v56, %v3724_v62  ;;  %v9605_v56 = vld [vmem:[#allocation58_spill] sm:$0xff] }
 0x6d2   :  { %v3468_v8 = vpop.f32.mrf.mxu0  ;;  %v3547_v45 = vpop.f32.mrf.mxu1  ;;  %v3167_v26 = vadd.f32 %v8838_v20, %v9605_v56 }
 0x6d3   :  { %v3778_v18 = vpack.c.bf16 %v3776_v28, %v3775_v5  ;;  %v3607_v24 = vadd.f32 %v3468_v8, %v3086_v55  ;;  %v3608_v14 = vadd.f32 %v3547_v45, %v3165_v38 }
 0x6d4   :  { %v5966_v57 = vld [vmem:[#allocation4 + $0x40] sm:$0xf]  ;;  %v6518_v34 = vld [vmem:[#allocation4 + $0x44] sm:$0xf] }
 0x6d5   :  { %3780 = vst.msk [vmem:[#allocation4 + $0x48] sm:$0xff] %vm7641_vm4, %v3778_v18  ;;  %v3669_v39 = vadd.f32 %v8684_v4, %v3607_v24  ;;  %v3670_v44 = vadd.f32 %v8686_v46, %v3608_v14  ;;  %v6540_v24 = vld [vmem:[#allocation10 + $0x80] sm:$0xff] }
 0x6d6   :  { %4213 = vmatpush.bf16.msrb.mxu2 %v6540_v24 }
 0x6d7   :  { %v3725_v62 = vmax.f32 %v3669_v39, 0.0  ;;  %v3726_v28 = vmax.f32 %v3670_v44, 0.0  ;;  %v6547_v44 = vld [vmem:[#allocation10 + $0xb8] sm:$0xff] }
 0x6d8   :  { %4258 = vmatpush.bf16.msrb.mxu3 %v6547_v44 }
 0x6da   :  { %v3470_v63 = vpop.f32.mrf.mxu0  ;;  %v3549_v10 = vpop.f32.mrf.mxu1 }
 0x6db   :  { %v3609_v5 = vadd.f32 %v3470_v63, %v3088_v48  ;;  %v3610_v8 = vadd.f32 %v3549_v10, %v3167_v26  ;;  %v9608_v26 = vld [vmem:[#allocation54_spill] sm:$0xff] }
 0x6dc   :  { %v6519_v7 = vld [vmem:[#allocation4 + $0x44] sm:$0xf0]  ;;  %v5968_v19 = vld [vmem:[#allocation4 + $0x48] sm:$0xf0] }
 0x6dd   :  { %v8930_v51 = vor.u32 %v6519_v7, %v5966_v57  ;;  %v8932_v33 = vor.u32 %v6518_v34, %v5968_v19  ;;  %v9607_v57 = vld [vmem:[#allocation62_spill] sm:$0xff]  ;;  %v3671_v20 = vadd.f32 %v8684_v4, %v3609_v5  ;;  %v3672_v19 = vadd.f32 %v8686_v46, %v3610_v8 }
 0x6de   :  { %v3172_v60 = vadd.f32 %v8871_v1, %v9607_v57  ;;  %v6538_v57 = vld [vmem:[#allocation10 + $0x70] sm:$0xff] }
 0x6df   :  { %4035 = vmatmul.bf16.gmra.mxu2 %v8930_v51  ;;  %6048 = vmatmul.msk.bf16.gmra.mxu3 %vm1987_vm5, %v8932_v33  ;;  %v3727_v1 = vmax.f32 %v3671_v20, 0.0  ;;  %v3728_v14 = vmax.f32 %v3672_v19, 0.0 }
 0x6e2   :  { %v3473_v61 = vpop.f32.mrf.mxu0  ;;  %v3552_v37 = vpop.f32.mrf.mxu1 }
 0x6e3   :  { %v3611_v2 = vadd.f32 %v3473_v61, %v3091_v21  ;;  %v3612_v59 = vadd.f32 %v3552_v37, %v3170_v9  ;;  %v4016_v0 = vpop.f32.mrf.mxu2  ;;  %v4060_v41 = vpop.f32.mrf.mxu3 }
 0x6e4   :  { %v8945_v16 = vadd.f32 %v4060_v41, %v4016_v0 }
 0x6e5   :  { %v3673_v6 = vadd.f32 %v8684_v4, %v3611_v2  ;;  %v3674_v15 = vadd.f32 %v8686_v46, %v3612_v59  ;;  %v6539_v2 = vld [vmem:[#allocation10 + $0x78] sm:$0xff]  ;;  %v6546_v59 = vld [vmem:[#allocation10 + $0xb0] sm:$0xff] }
 0x6e6   :  { %4214 = vmatpush.bf16.msrb.mxu2 %v6539_v2  ;;  %4259 = vmatpush.bf16.msrb.mxu3 %v6546_v59  ;;  %v9615_v2 = vld [vmem:[#allocation65_spill] sm:$0xff] }
 0x6e7   :  { %v3729_v45 = vmax.f32 %v3673_v6, 0.0  ;;  %v3730_v18 = vmax.f32 %v3674_v15, 0.0  ;;  %v3096_v6 = vadd.f32 %v8879_v23, %v9608_v26 }
 0x6e9   :  { %v3781_v12 = vmax.f32 %v3725_v62, %v3729_v45  ;;  %v3782_v55 = vmax.f32 %v3726_v28, %v3730_v18  ;;  %v9609_v28 = vld [vmem:[#allocation57_spill] sm:$0xff] }
 0x6ea   :  { %v3475_v7 = vpop.f32.mrf.mxu0  ;;  %v3554_v34 = vpop.f32.mrf.mxu1  ;;  %v3175_v8 = vadd.f32 %v8881_v53, %v9609_v28  ;;  %4215 = vmatpush.bf16.msrb.mxu2 %v6538_v57 }
 0x6eb   :  { %v3785_v49 = vpack.c.bf16 %v3782_v55, %v3781_v12  ;;  %v3613_v63 = vadd.f32 %v3475_v7, %v3093_v27  ;;  %v3614_v38 = vadd.f32 %v3554_v34, %v3172_v60  ;;  %v8963_v25 = vpop.f32.mrf.mxu2  ;;  %v8965_v48 = vpop.f32.mrf.mxu3  ;;  %v9610_v60 = vld [vmem:[#allocation61_spill] sm:$0xff]  ;;  %v9611_v12 = vld [vmem:[#allocation64_spill] sm:$0xff] }
 0x6ec   :  { %v3101_v23 = vadd.f32 %v8916_v47, %v9610_v60  ;;  %v3180_v55 = vadd.f32 %v8918_v29, %v9611_v12  ;;  %v9613_v47 = vld [vmem:[#allocation59_spill] sm:$0xff] }
 0x6ed   :  { %3787 = vst.msk [vmem:[#allocation4 + $0x50] sm:$0xff] %vm7641_vm4, %v3785_v49  ;;  %v3675_v10 = vadd.f32 %v8684_v4, %v3613_v63  ;;  %v3676_v31 = vadd.f32 %v8686_v46, %v3614_v38 }
 0x6ef   :  { %v3731_v11 = vmax.f32 %v3675_v10, 0.0  ;;  %v3732_v21 = vmax.f32 %v3676_v31, 0.0  ;;  %v9612_v10 = vld [vmem:[#allocation56_spill] sm:$0xff] }
 0x6f0   :  { %v3098_v31 = vadd.f32 %v8902_v36, %v9612_v10  ;;  %v3182_v36 = vadd.f32 %v8924_v42, %v9615_v2 }
 0x6f1   :  { %v3783_v3 = vmax.f32 %v3727_v1, %v3731_v11  ;;  %v3784_v9 = vmax.f32 %v3728_v14, %v3732_v21  ;;  %v3177_v1 = vadd.f32 %v8904_v43, %v9613_v47 }
 0x6f2   :  { %v3478_v39 = vpop.f32.mrf.mxu0  ;;  %v3557_v61 = vpop.f32.mrf.mxu1 }
 0x6f3   :  { %v3786_v37 = vpack.c.bf16 %v3784_v9, %v3783_v3  ;;  %v3615_v13 = vadd.f32 %v3478_v39, %v3096_v6  ;;  %v3616_v27 = vadd.f32 %v3557_v61, %v3175_v8 }
 0x6f4   :  { %v5974_v56 = vld [vmem:[#allocation4 + $0x50] sm:$0xf]  ;;  %v6520_v62 = vld [vmem:[#allocation4 + $0x54] sm:$0xf] }
 0x6f5   :  { %3788 = vst.msk [vmem:[#allocation4 + $0x58] sm:$0xff] %vm7641_vm4, %v3786_v37  ;;  %v3677_v53 = vadd.f32 %v8684_v4, %v3615_v13  ;;  %v3678_v34 = vadd.f32 %v8686_v46, %v3616_v27  ;;  %v9614_v37 = vld [vmem:[#allocation63_spill] sm:$0xff] }
 0x6f6   :  { %v3103_v44 = vadd.f32 %v8922_v32, %v9614_v37 }
 0x6f7   :  { %v3733_v11 = vmax.f32 %v3677_v53, 0.0  ;;  %v3734_v3 = vmax.f32 %v3678_v34, 0.0 }
 0x6fa   :  { %v3480_v0 = vpop.f32.mrf.mxu0  ;;  %v3559_v41 = vpop.f32.mrf.mxu1 }
 0x6fb   :  { %v3617_v21 = vadd.f32 %v3480_v0, %v3098_v31  ;;  %v3618_v9 = vadd.f32 %v3559_v41, %v3177_v1 }
 0x6fc   :  { %v6521_v15 = vld [vmem:[#allocation4 + $0x54] sm:$0xf0]  ;;  %v5976_v5 = vld [vmem:[#allocation4 + $0x58] sm:$0xf0] }
 0x6fd   :  { %v8971_v45 = vor.u32 %v6521_v15, %v5974_v56  ;;  %v8973_v18 = vor.u32 %v6520_v62, %v5976_v5  ;;  %v3679_v43 = vadd.f32 %v8684_v4, %v3617_v21  ;;  %v3680_v15 = vadd.f32 %v8686_v46, %v3618_v9  ;;  %v6565_v9 = vld [vmem:[%s9283_s7 + $0x30] sm:$0xff] }
 0x6ff   :  { %4040 = vmatmul.bf16.gmra.mxu2 %v8971_v45  ;;  %6049 = vmatmul.msk.bf16.gmra.mxu3 %vm1987_vm5, %v8973_v18  ;;  %v3735_v28 = vmax.f32 %v3679_v43, 0.0  ;;  %v3736_v42 = vmax.f32 %v3680_v15, 0.0  ;;  %v4063_v15 = vadd.f32 %v8965_v48, %v8963_v25 }
 0x702   :  { %v3483_v20 = vpop.f32.mrf.mxu0  ;;  %v3562_v7 = vpop.f32.mrf.mxu1 }
 0x703   :  { %v3619_v19 = vadd.f32 %v3483_v20, %v3101_v23  ;;  %v3620_v49 = vadd.f32 %v3562_v7, %v3180_v55  ;;  %v4021_v63 = vpop.f32.mrf.mxu2  ;;  %v4065_v38 = vpop.f32.mrf.mxu3 }
 0x704   :  { %v8986_v24 = vadd.f32 %v4065_v38, %v4021_v63 }
 0x705   :  { %v3681_v29 = vadd.f32 %v8684_v4, %v3619_v19  ;;  %v3682_v14 = vadd.f32 %v8686_v46, %v3620_v49 }
 0x707   :  { %v3737_v39 = vmax.f32 %v3681_v29, 0.0  ;;  %v3738_v61 = vmax.f32 %v3682_v14, 0.0 }
 0x709   :  { %v3789_v59 = vmax.f32 %v3733_v11, %v3737_v39  ;;  %v3790_v56 = vmax.f32 %v3734_v3, %v3738_v61  ;;  %v6573_v39 = vld [vmem:[%s9283_s7 + $0x70] sm:$0xff] }
 0x70a   :  { %v3485_v26 = vpop.f32.mrf.mxu0  ;;  %v3564_v6 = vpop.f32.mrf.mxu1 }
 0x70b   :  { %v3793_v62 = vpack.c.bf16 %v3790_v56, %v3789_v59  ;;  %v3621_v0 = vadd.f32 %v3485_v26, %v3103_v44  ;;  %v3622_v5 = vadd.f32 %v3564_v6, %v3182_v36  ;;  %v9004_v23 = vpop.f32.mrf.mxu2  ;;  %v9006_v12 = vpop.f32.mrf.mxu3 }
 0x70d   :  { %3795 = vst.msk [vmem:[#allocation4 + $0x60] sm:$0xff] %vm7641_vm4, %v3793_v62  ;;  %v3683_v41 = vadd.f32 %v8684_v4, %v3621_v0  ;;  %v3684_v32 = vadd.f32 %v8686_v46, %v3622_v5 }
 0x70f   :  { %v3739_v8 = vmax.f32 %v3683_v41, 0.0  ;;  %v3740_v13 = vmax.f32 %v3684_v32, 0.0 }
 0x711   :  { %v3791_v27 = vmax.f32 %v3735_v28, %v3739_v8  ;;  %v3792_v57 = vmax.f32 %v3736_v42, %v3740_v13  ;;  %v6572_v42 = vld [vmem:[%s9283_s7 + $0x68] sm:$0xff] }
 0x713   :  { %v3794_v60 = vpack.c.bf16 %v3792_v57, %v3791_v27  ;;  %v4068_v27 = vadd.f32 %v9006_v12, %v9004_v23  ;;  %v6563_v23 = vld [vmem:[%s9283_s7 + $0x20] sm:$0xff] }
 0x714   :  { %v5982_v55 = vld [vmem:[#allocation4 + $0x60] sm:$0xf]  ;;  %v6522_v20 = vld [vmem:[#allocation4 + $0x64] sm:$0xf] }
 0x715   :  { %3796 = vst.msk [vmem:[#allocation4 + $0x68] sm:$0xff] %vm7641_vm4, %v3794_v60  ;;  %v6571_v12 = vld [vmem:[%s9283_s7 + $0x60] sm:$0xff]  ;;  %vm4409_vm4 = vcmask 261124  }
 0x716   :  { %vm9236_vm8 = vmor %vm4409_vm4, %vm4408_vm3 }
 0x71c   :  { %v6523_v53 = vld [vmem:[#allocation4 + $0x64] sm:$0xf0]  ;;  %v5984_v4 = vld [vmem:[#allocation4 + $0x68] sm:$0xf0] }
 0x71d   :  { %v5983_v7 = vor.u32 %v6523_v53, %v5982_v55  ;;  %v5987_v46 = vor.u32 %v6522_v20, %v5984_v4 }
 0x71f   :  { %4045 = vmatmul.bf16.gmra.mxu2 %v5983_v7  ;;  %6050 = vmatmul.msk.bf16.gmra.mxu3 %vm1987_vm5, %v5987_v46 }
 0x722   :  { %v4026_v34 = vpop.f32.mrf.mxu2  ;;  %v4070_v19 = vpop.f32.mrf.mxu3 }
 0x723   :  { %v9009_v49 = vadd.f32 %v4070_v19, %v4026_v34 }
 0x72a   :  { %v9014_v50 = vpop.f32.mrf.mxu2  ;;  %v9016_v63 = vpop.f32.mrf.mxu3 }
 0x72b   :  { %v4073_v19 = vadd.f32 %v9016_v63, %v9014_v50 }
 0x72f   :  { %4216 = vmatmul.bf16.vlgmr.msrb.gmra.mxu2 %v8732_v35  ;;  %6107 = vmatmul.msk.bf16.vlgmr.msrb.gmra.mxu3 %vm1987_vm5, %v8734_v54 }
 0x73f   :  { %4221 = vmatmul.bf16.gmra.mxu2 %v8783_v58  ;;  %6108 = vmatmul.msk.bf16.gmra.mxu3 %vm1987_vm5, %v8785_v52 }
 0x742   :  { %v4031_v38 = vpop.f32.mrf.mxu2  ;;  %v4075_v10 = vpop.f32.mrf.mxu3 }
 0x743   :  { %v9021_v31 = vadd.f32 %v4075_v10, %v4031_v38 }
 0x74a   :  { %v9026_v35 = vpop.f32.mrf.mxu2  ;;  %v9028_v54 = vpop.f32.mrf.mxu3 }
 0x74f   :  { %4226 = vmatmul.bf16.gmra.mxu2 %v8832_v40  ;;  %6109 = vmatmul.msk.bf16.gmra.mxu3 %vm1987_vm5, %v8834_v22 }
 0x75f   :  { %4231 = vmatmul.bf16.gmra.mxu2 %v8883_v30  ;;  %6110 = vmatmul.msk.bf16.gmra.mxu3 %vm1987_vm5, %v8885_v17 }
 0x762   :  { %v4036_v58 = vpop.f32.mrf.mxu2  ;;  %v4080_v52 = vpop.f32.mrf.mxu3 }
 0x763   :  { %v9033_v47 = vadd.f32 %v4080_v52, %v4036_v58 }
 0x76a   :  { %v4038_v1 = vpop.f32.mrf.mxu2  ;;  %v4082_v29 = vpop.f32.mrf.mxu3 }
 0x76b   :  { %v9035_v14 = vadd.f32 %v4082_v29, %v4038_v1 }
 0x76f   :  { %4236 = vmatmul.bf16.gmra.mxu2 %v8930_v51  ;;  %6111 = vmatmul.msk.bf16.gmra.mxu3 %vm1987_vm5, %v8932_v33  ;;  %v6566_v51 = vld [vmem:[%s9283_s7 + $0x38] sm:$0xff] }
 0x770   :  { %v6574_v33 = vld [vmem:[%s9283_s7 + $0x78] sm:$0xff]  ;;  %4876 = vmatpush.bf16.msra.mxu0 %v6566_v51 }
 0x771   :  { %4890 = vmatpush.bf16.msra.mxu1 %v6574_v33 }
 0x774   :  { %4877 = vmatpush.bf16.msra.mxu0 %v6565_v9 }
 0x775   :  { %4891 = vmatpush.bf16.msra.mxu1 %v6573_v39 }
 0x779   :  { %4892 = vmatpush.bf16.msra.mxu1 %v6572_v42 }
 0x77d   :  { %4893 = vmatpush.bf16.msra.mxu1 %v6571_v12 }
 0x77f   :  { %4241 = vmatmul.bf16.gmra.mxu2 %v8971_v45  ;;  %6112 = vmatmul.msk.bf16.gmra.mxu3 %vm1987_vm5, %v8973_v18 }
 0x782   :  { %v4041_v40 = vpop.f32.mrf.mxu2  ;;  %v4085_v22 = vpop.f32.mrf.mxu3 }
 0x783   :  { %v9043_v30 = vadd.f32 %v4085_v22, %v4041_v40  ;;  %v4078_v22 = vadd.f32 %v9028_v54, %v9026_v35 }
 0x78a   :  { %v4043_v17 = vpop.f32.mrf.mxu2  ;;  %v4087_v11 = vpop.f32.mrf.mxu3 }
 0x78b   :  { %v9045_v21 = vadd.f32 %v4087_v11, %v4043_v17 }
 0x78f   :  { %4246 = vmatmul.bf16.gmra.mxu2 %v5983_v7  ;;  %6113 = vmatmul.msk.bf16.gmra.mxu3 %vm1987_vm5, %v5987_v46 }
 0x7a2   :  { %v4046_v45 = vpop.f32.mrf.mxu2  ;;  %v4090_v18 = vpop.f32.mrf.mxu3 }
 0x7a3   :  { %v9054_v3 = vadd.f32 %v4090_v18, %v4046_v45 }
 0x7aa   :  { %v4048_v61 = vpop.f32.mrf.mxu2  ;;  %v4092_v37 = vpop.f32.mrf.mxu3 }
 0x7ab   :  { %v9062_v44 = vadd.f32 %v4092_v37, %v4048_v61 }
 0x7b2   :  { %v4217_v2 = vpop.f32.mrf.mxu2  ;;  %v4261_v36 = vpop.f32.mrf.mxu3 }
 0x7b3   :  { %v4262_v59 = vadd.f32 %v4261_v36, %v4217_v2  ;;  %v6562_v36 = vld [vmem:[%s9283_s7 + $0x18] sm:$0xff] }
 0x7b5   :  { %v4296_v56 = vmax.f32 %v8945_v16, %v4262_v59  ;;  %v6564_v16 = vld [vmem:[%s9283_s7 + $0x28] sm:$0xff]  ;;  %v6590_v59 = vld [vmem:[%s9283_s7 + $0xf8] sm:$0xff] }
 0x7b6   :  { %4878 = vmatpush.bf16.msra.mxu0 %v6564_v16  ;;  %4918 = vmatpush.bf16.msra.mxu3 %v6590_v59  ;;  %v6584_v59 = vld [vmem:[%s9283_s7 + $0xc8] sm:$0xff] }
 0x7b7   :  { %v4310_v43 = vpack.c.bf16 %v4296_v56, %v4296_v56 }
 0x7b9   :  { %4312 = vst.msk [vmem:[#allocation5] sm:$0xf] %vm2487_vm6, %v4310_v43 }
 0x7ba   :  { %v4219_v26 = vpop.f32.mrf.mxu2  ;;  %v4263_v6 = vpop.f32.mrf.mxu3  ;;  %4879 = vmatpush.bf16.msra.mxu0 %v6563_v23  ;;  %v6567_v23 = vld [vmem:[%s9283_s7 + $0x40] sm:$0xff] }
 0x7bb   :  { %v4264_v62 = vadd.f32 %v4263_v6, %v4219_v26  ;;  %v6561_v26 = vld [vmem:[%s9283_s7 + $0x10] sm:$0xff] }
 0x7bc   :  { %v6569_v6 = vld [vmem:[%s9283_s7 + $0x50] sm:$0xff] }
 0x7bd   :  { %v4297_v0 = vmax.f32 %v4063_v15, %v4264_v62  ;;  %v6589_v62 = vld [vmem:[%s9283_s7 + $0xf0] sm:$0xff] }
 0x7be   :  { %4880 = vmatpush.bf16.msra.mxu0 %v6562_v36  ;;  %4919 = vmatpush.bf16.msra.mxu3 %v6589_v62 }
 0x7bf   :  { %v4311_v5 = vpack.c.bf16 %v4297_v0, %v4297_v0  ;;  %v6580_v0 = vld [vmem:[%s9283_s7 + $0xa8] sm:$0xff] }
 0x7c1   :  { %4313 = vst.msk [vmem:[#allocation5 + $0x1c] sm:$0xf] %vm2487_vm6, %v4311_v5  ;;  %vm4403_vm6 = vcmask 392192  }
 0x7c2   :  { %v4222_v41 = vpop.f32.mrf.mxu2  ;;  %v4266_v32 = vpop.f32.mrf.mxu3  ;;  %4881 = vmatpush.bf16.msra.mxu0 %v6561_v26  ;;  %v6595_v26 = vld [vmem:[%s9283_s7 + $0x120] sm:$0xff] }
 0x7c3   :  { %v4267_v28 = vadd.f32 %v4266_v32, %v4222_v41 }
 0x7c5   :  { %v4298_v8 = vmax.f32 %v8986_v24, %v4267_v28 }
 0x7c7   :  { %v4314_v25 = vpack.c.bf16 %v4298_v8, %v4298_v8 }
 0x7c9   :  { %4318 = vrot.lane.b32.xlu0 %v4314_v25, %s6743_s28 }
 0x7ca   :  { %v4224_v48 = vpop.f32.mrf.mxu2  ;;  %v4268_v13 = vpop.f32.mrf.mxu3 }
 0x7cb   :  { %v4269_v57 = vadd.f32 %v4268_v13, %v4224_v48 }
 0x7cd   :  { %v4299_v60 = vmax.f32 %v4068_v27, %v4269_v57 }
 0x7cf   :  { %v4315_v55 = vpack.c.bf16 %v4299_v60, %v4299_v60 }
 0x7d1   :  { %4320 = vrot.lane.b32.xlu0 %v4315_v55, %s6743_s28 }
 0x7d2   :  { %v4227_v53 = vpop.f32.mrf.mxu2  ;;  %v4271_v20 = vpop.f32.mrf.mxu3 }
 0x7d3   :  { %v4272_v4 = vadd.f32 %v4271_v20, %v4227_v53 }
 0x7d5   :  { %v4300_v7 = vmax.f32 %v9009_v49, %v4272_v4  ;;  %v6579_v4 = vld [vmem:[%s9283_s7 + $0xa0] sm:$0xff] }
 0x7d7   :  { %v4333_v24 = vpack.c.bf16 %v4300_v7, %v4300_v7  ;;  %v6587_v7 = vld [vmem:[%s9283_s7 + $0xe0] sm:$0xff] }
 0x7d9   :  { %4337 = vrot.lane.b32.xlu1 %v4333_v24, %s6744_s29  ;;  %v6578_v24 = vld [vmem:[%s9283_s7 + $0x98] sm:$0xff] }
 0x7da   :  { %v4229_v46 = vpop.f32.mrf.mxu2  ;;  %v4273_v34 = vpop.f32.mrf.mxu3 }
 0x7db   :  { %v4274_v38 = vadd.f32 %v4273_v34, %v4229_v46  ;;  %v6577_v46 = vld [vmem:[%s9283_s7 + $0x90] sm:$0xff]  ;;  %v6568_v34 = vld [vmem:[%s9283_s7 + $0x48] sm:$0xff] }
 0x7dd   :  { %v4301_v10 = vmax.f32 %v4073_v19, %v4274_v38  ;;  %v6576_v19 = vld [vmem:[%s9283_s7 + $0x88] sm:$0xff]  ;;  %v6586_v38 = vld [vmem:[%s9283_s7 + $0xd8] sm:$0xff] }
 0x7df   :  { %v4334_v49 = vpack.c.bf16 %v4301_v10, %v4301_v10 }
 0x7e1   :  { %4339 = vrot.lane.b32.xlu1 %v4334_v49, %s6744_s29  ;;  %v6575_v49 = vld [vmem:[%s9283_s7 + $0x80] sm:$0xff] }
 0x7e2   :  { %v4232_v58 = vpop.f32.mrf.mxu2  ;;  %v4276_v52 = vpop.f32.mrf.mxu3 }
 0x7e3   :  { %v4277_v1 = vadd.f32 %v4276_v52, %v4232_v58 }
 0x7e5   :  { %v4302_v29 = vmax.f32 %v9021_v31, %v4277_v1  ;;  %v6582_v31 = vld [vmem:[%s9283_s7 + $0xb8] sm:$0xff] }
 0x7e6   :  { %4904 = vmatpush.bf16.msra.mxu2 %v6582_v31  ;;  %v6598_v31 = vld [vmem:[%s9283_s7 + $0x138] sm:$0xff] }
 0x7e7   :  { %v4353_v50 = vpack.c.bf16 %v4302_v29, %v4302_v29 }
 0x7e9   :  { %4357 = vrot.lane.b32.xlu2 %v4353_v50, %s6745_s13 }
 0x7ea   :  { %v4234_v63 = vpop.f32.mrf.mxu2  ;;  %v4278_v40 = vpop.f32.mrf.mxu3 }
 0x7eb   :  { %v4279_v17 = vadd.f32 %v4278_v40, %v4234_v63  ;;  %v6585_v63 = vld [vmem:[%s9283_s7 + $0xd0] sm:$0xff] }
 0x7ed   :  { %v4303_v11 = vmax.f32 %v4078_v22, %v4279_v17 }
 0x7ef   :  { %v4354_v51 = vpack.c.bf16 %v4303_v11, %v4303_v11 }
 0x7f1   :  { %4359 = vrot.lane.b32.xlu2 %v4354_v51, %s6745_s13 }
 0x7f2   :  { %v4237_v33 = vpop.f32.mrf.mxu2  ;;  %v4281_v45 = vpop.f32.mrf.mxu3 }
 0x7f3   :  { %v4282_v18 = vadd.f32 %v4281_v45, %v4237_v33 }
 0x7f5   :  { %v4304_v9 = vmax.f32 %v9033_v47, %v4282_v18  ;;  %v6570_v47 = vld [vmem:[%s9283_s7 + $0x58] sm:$0xff] }
 0x7f6   :  { %4894 = vmatpush.bf16.msra.mxu1 %v6570_v47 }
 0x7f7   :  { %v4373_v39 = vpack.c.bf16 %v4304_v9, %v4304_v9 }
 0x7f9   :  { %4377 = vrot.lane.b32.xlu0 %v4373_v39, %s6739_s16 }
 0x7fa   :  { %v4239_v61 = vpop.f32.mrf.mxu2  ;;  %v4283_v37 = vpop.f32.mrf.mxu3  ;;  %4895 = vmatpush.bf16.msra.mxu1 %v6569_v6  ;;  %v6605_v6 = vld [vmem:[%s9283_s7 + $0x170] sm:$0xff] }
 0x7fb   :  { %v4284_v35 = vadd.f32 %v4283_v37, %v4239_v61 }
 0x7fd   :  { %v4305_v54 = vmax.f32 %v9035_v14, %v4284_v35  ;;  %v6581_v14 = vld [vmem:[%s9283_s7 + $0xb0] sm:$0xff] }
 0x7fe   :  { %4905 = vmatpush.bf16.msra.mxu2 %v6581_v14  ;;  %4896 = vmatpush.bf16.msra.mxu1 %v6568_v34  ;;  %v6596_v14 = vld [vmem:[%s9283_s7 + $0x128] sm:$0xff] }
 0x7ff   :  { %v4374_v2 = vpack.c.bf16 %v4305_v54, %v4305_v54 }
 0x801   :  { %4379 = vrot.lane.b32.xlu1 %v4374_v2, %s6739_s16  ;;  %v6597_v2 = vld [vmem:[%s9283_s7 + $0x130] sm:$0xff] }
 0x802   :  { %v4242_v56 = vpop.f32.mrf.mxu2  ;;  %v4286_v43 = vpop.f32.mrf.mxu3  ;;  %4906 = vmatpush.bf16.msra.mxu2 %v6580_v0  ;;  %4897 = vmatpush.bf16.msra.mxu1 %v6567_v23 }
 0x803   :  { %v4287_v15 = vadd.f32 %v4286_v43, %v4242_v56  ;;  %v6606_v56 = vld [vmem:[%s9283_s7 + $0x178] sm:$0xff]  ;;  %v6583_v43 = vld [vmem:[%s9283_s7 + $0xc0] sm:$0xff] }
 0x805   :  { %v4306_v5 = vmax.f32 %v9043_v30, %v4287_v15 }
 0x806   :  { %4907 = vmatpush.bf16.msra.mxu2 %v6579_v4  ;;  %4946 = vmatpush.bf16.msrb.mxu1 %v6606_v56 }
 0x807   :  { %v4393_v41 = vpack.c.bf16 %v4306_v5, %v4306_v5 }
 0x809   :  { %4397 = vrot.lane.b32.xlu2 %v4393_v41, %s6746_s26 }
 0x80a   :  { %v4244_v32 = vpop.f32.mrf.mxu2  ;;  %v4288_v28 = vpop.f32.mrf.mxu3  ;;  %4908 = vmatpush.bf16.msra.mxu2 %v6578_v24  ;;  %4947 = vmatpush.bf16.msrb.mxu1 %v6605_v6  ;;  %v6630_v6 = vld [vmem:[%s9284_s8] ss:$0 sm:$0xff] }
 0x80b   :  { %v4289_v16 = vadd.f32 %v4288_v28, %v4244_v32  ;;  %v6594_v28 = vld [vmem:[%s9283_s7 + $0x118] sm:$0xff] }
 0x80d   :  { %v4307_v42 = vmax.f32 %v9045_v21, %v4289_v16  ;;  %v6588_v21 = vld [vmem:[%s9283_s7 + $0xe8] sm:$0xff] }
 0x80e   :  { %4920 = vmatpush.bf16.msra.mxu3 %v6588_v21  ;;  %4909 = vmatpush.bf16.msra.mxu2 %v6577_v46  ;;  %v6604_v16 = vld [vmem:[%s9283_s7 + $0x168] sm:$0xff]  ;;  %v6601_v21 = vld [vmem:[%s9283_s7 + $0x150] sm:$0xff]  ;;  %v6599_v46 = vld [vmem:[%s9283_s7 + $0x140] sm:$0xff] }
 0x80f   :  { %v4394_v8 = vpack.c.bf16 %v4307_v42, %v4307_v42  ;;  %4948 = vmatpush.bf16.msrb.mxu1 %v6604_v16  ;;  %v6593_v42 = vld [vmem:[%s9283_s7 + $0x110] sm:$0xff] }
 0x811   :  { %4399 = vrot.lane.b32.xlu0 %v4394_v8, %s6746_s26  ;;  %v6603_v8 = vld [vmem:[%s9283_s7 + $0x160] sm:$0xff] }
 0x812   :  { %v4247_v25 = vpop.f32.mrf.mxu2  ;;  %v4291_v48 = vpop.f32.mrf.mxu3  ;;  %4921 = vmatpush.bf16.msra.mxu3 %v6587_v7  ;;  %4910 = vmatpush.bf16.msra.mxu2 %v6576_v19 }
 0x813   :  { %v4292_v13 = vadd.f32 %v4291_v48, %v4247_v25  ;;  %4949 = vmatpush.bf16.msrb.mxu1 %v6603_v8  ;;  %v6607_v48 = vld [vmem:[%s9283_s7 + $0x180] sm:$0xff] }
 0x815   :  { %v4308_v27 = vmax.f32 %v9054_v3, %v4292_v13  ;;  %v6560_v3 = vld [vmem:[%s9283_s7 + $0x8] sm:$0xff] }
 0x816   :  { %4882 = vmatpush.bf16.msra.mxu0 %v6560_v3  ;;  %4922 = vmatpush.bf16.msra.mxu3 %v6586_v38  ;;  %v6592_v13 = vld [vmem:[%s9283_s7 + $0x108] sm:$0xff] }
 0x817   :  { %v4413_v30 = vpack.c.bf16 %v4308_v27, %v4308_v27  ;;  %4911 = vmatpush.bf16.msra.mxu2 %v6575_v49  ;;  %v6602_v27 = vld [vmem:[%s9283_s7 + $0x158] sm:$0xff] }
 0x818   :  { %4950 = vmatpush.bf16.msrb.mxu1 %v6602_v27 }
 0x819   :  { %4417 = vrot.lane.b32.xlu1 %v4413_v30, %s6747_s27 }
 0x81a   :  { %v4249_v57 = vpop.f32.mrf.mxu2  ;;  %v4293_v60 = vpop.f32.mrf.mxu3  ;;  %4923 = vmatpush.bf16.msra.mxu3 %v6585_v63 }
 0x81b   :  { %v4294_v55 = vadd.f32 %v4293_v60, %v4249_v57  ;;  %4967 = vmatpush.bf16.msrb.mxu2 %v6607_v48 }
 0x81c   :  { %4951 = vmatpush.bf16.msrb.mxu1 %v6601_v21 }
 0x81d   :  { %v4309_v53 = vmax.f32 %v9062_v44, %v4294_v55  ;;  %v6559_v44 = vld [vmem:[%s9283_s7] sm:$0xff] }
 0x81e   :  { %4883 = vmatpush.bf16.msra.mxu0 %v6559_v44  ;;  %4924 = vmatpush.bf16.msra.mxu3 %v6584_v59  ;;  %v6600_v44 = vld [vmem:[%s9283_s7 + $0x148] sm:$0xff]  ;;  %v6608_v59 = vld [vmem:[#allocation11] sm:$0xff] }
 0x81f   :  { %v4414_v20 = vpack.c.bf16 %v4309_v53, %v4309_v53 }
 0x820   :  { %4952 = vmatpush.bf16.msrb.mxu1 %v6600_v44 }
 0x821   :  { %4419 = vrot.lane.b32.xlu2 %v4414_v20, %s6747_s27  ;;  %v6591_v20 = vld [vmem:[%s9283_s7 + $0x100] sm:$0xff] }
 0x822   :  { %4932 = vmatpush.bf16.msrb.mxu0 %v6598_v31  ;;  %4925 = vmatpush.bf16.msra.mxu3 %v6583_v43  ;;  %v6614_v31 = vld [vmem:[#allocation11 + $0x30] sm:$0xff] }
 0x824   :  { %4953 = vmatpush.bf16.msrb.mxu1 %v6599_v46 }
 0x826   :  { %4933 = vmatpush.bf16.msrb.mxu0 %v6597_v2 }
 0x82a   :  { %4934 = vmatpush.bf16.msrb.mxu0 %v6596_v14 }
 0x82e   :  { %4935 = vmatpush.bf16.msrb.mxu0 %v6595_v26 }
 0x832   :  { %4936 = vmatpush.bf16.msrb.mxu0 %v6594_v28 }
 0x836   :  { %4937 = vmatpush.bf16.msrb.mxu0 %v6593_v42 }
 0x83a   :  { %4938 = vmatpush.bf16.msrb.mxu0 %v6592_v13 }
 0x83b   :  { %v4319_v12 = vpop.permute.xlu0 %4318 }
 0x83c   :  { %v4322_v10 = vrot.slane %v4319_v12, 4 }
 0x83e   :  { %v4325_v58 = vsel %vm2747_vm7, %v4322_v10, %v4319_v12  ;;  %4939 = vmatpush.bf16.msrb.mxu0 %v6591_v20 }
 0x83f   :  { %4331 = vst.msk [vmem:[#allocation5] sm:$0xff] %vm4330_vm9, %v4325_v58 }
 0x843   :  { %v4321_v52 = vpop.permute.xlu0 %4320  ;;  %v4358_v29 = vpop.permute.xlu2 %4357 }
 0x844   :  { %v4323_v1 = vrot.slane %v4321_v52, 4  ;;  %v4361_v40 = vrot.slane %v4358_v29, 4 }
 0x846   :  { %v4326_v50 = vsel %vm2747_vm7, %v4323_v1, %v4321_v52  ;;  %v6116_v45 = vld [vmem:[#allocation5] sm:$0xf]  ;;  %v4364_v9 = vsel %vm4363_vm14, %v4361_v40, %v4358_v29  ;;  %vm9232_vm7 = vmor %vm4389_vm2, %vm4388_vm1 }
 0x847   :  { %4332 = vst.msk [vmem:[#allocation5 + $0x1c] sm:$0xff] %vm4330_vm9, %v4326_v50  ;;  %vm4428_vm9 = vcmask 1043712  }
 0x848   :  { %vm4430_vm12 = vmor %vm4429_vm10, %vm4428_vm9 }
 0x84b   :  { %v4338_v22 = vpop.permute.xlu1 %4337  ;;  %v4360_v61 = vpop.permute.xlu2 %4359 }
 0x84c   :  { %v4341_v11 = vrot.slane %v4338_v22, 4  ;;  %v4362_v37 = vrot.slane %v4360_v61, 4 }
 0x84e   :  { %v4344_v33 = vsel %vm1987_vm5, %v4341_v11, %v4338_v22  ;;  %v6555_v18 = vld [vmem:[#allocation5 + $0x18] sm:$0xf0]  ;;  %v4365_v47 = vsel %vm4363_vm14, %v4362_v37, %v4360_v61  ;;  %v6613_v61 = vld [vmem:[#allocation11 + $0x28] sm:$0xff]  ;;  %v6612_v37 = vld [vmem:[#allocation11 + $0x20] sm:$0xff] }
 0x84f   :  { %4351 = vst.msk [vmem:[#allocation5 + $0x4] sm:$0xff] %vm9167_vm15, %v4344_v33  ;;  %v6117_v39 = vor.u32 %v6555_v18, %v6116_v45 }
 0x850   :  { %4371 = vst.msk [vmem:[#allocation5 + $0x8] sm:$0xff] %vm9171_vm0, %v4364_v9 }
 0x851   :  { %4884 = vmatmul.bf16.vlgmr.msra.gmra.mxu0 %v6117_v39  ;;  %v6615_v39 = vld [vmem:[#allocation11 + $0x38] sm:$0xff] }
 0x852   :  { %5045 = vmatpush.bf16.msrb.mxu3 %v6615_v39 }
 0x853   :  { %v4340_v35 = vpop.permute.xlu1 %4339 }
 0x854   :  { %v4342_v54 = vrot.slane %v4340_v35, 4 }
 0x856   :  { %v4345_v36 = vsel %vm1987_vm5, %v4342_v54, %v4340_v35  ;;  %v6552_v15 = vld [vmem:[#allocation5 + $0x4] sm:$0xf]  ;;  %vm4383_vm5 = vcmask 523264   ;;  %5046 = vmatpush.bf16.msrb.mxu3 %v6614_v31  ;;  %v6610_v54 = vld [vmem:[#allocation11 + $0x10] sm:$0xff] }
 0x857   :  { %4352 = vst.msk [vmem:[#allocation5 + $0x20] sm:$0xff] %vm9167_vm15, %v4345_v36  ;;  %v6124_v5 = vld [vmem:[#allocation5 + $0x8] sm:$0xf]  ;;  %v6611_v35 = vld [vmem:[#allocation11 + $0x18] sm:$0xff]  ;;  %v6609_v36 = vld [vmem:[#allocation11 + $0x8] sm:$0xff] }
 0x858   :  { %4372 = vst.msk [vmem:[#allocation5 + $0x24] sm:$0xff] %vm9171_vm0, %v4365_v47 }
 0x85a   :  { %5047 = vmatpush.bf16.msrb.mxu3 %v6613_v61 }
 0x85e   :  { %v6118_v62 = vld [vmem:[#allocation5 + $0x1c] sm:$0xf0]  ;;  %5048 = vmatpush.bf16.msrb.mxu3 %v6612_v37 }
 0x85f   :  { %v6121_v0 = vor.u32 %v6552_v15, %v6118_v62  ;;  %v6556_v41 = vld [vmem:[#allocation5 + $0x20] sm:$0xf0] }
 0x860   :  { %v6125_v32 = vor.u32 %v6556_v41, %v6124_v5 }
 0x861   :  { %4898 = vmatmul.bf16.vlgmr.msra.gmra.mxu1 %v6121_v0 }
 0x862   :  { %4912 = vmatmul.bf16.vlgmr.msra.gmra.mxu2 %v6125_v32  ;;  %5049 = vmatpush.bf16.msrb.mxu3 %v6611_v35 }
 0x863   :  { %v4398_v25 = vpop.permute.xlu2 %4397 }
 0x864   :  { %v4401_v30 = vrot.slane %v4398_v25, 4 }
 0x866   :  { %v4404_v3 = vsel %vm4403_vm6, %v4401_v30, %v4398_v25  ;;  %5050 = vmatpush.bf16.msrb.mxu3 %v6610_v54 }
 0x86a   :  { %5051 = vmatpush.bf16.msrb.mxu3 %v6609_v36 }
 0x86b   :  { %v4378_v57 = vpop.permute.xlu0 %4377 }
 0x86c   :  { %v4381_v55 = vrot.slane %v4378_v57, 4 }
 0x86e   :  { %v4384_v4 = vsel %vm4383_vm5, %v4381_v55, %v4378_v57  ;;  %5052 = vmatpush.bf16.msrb.mxu3 %v6608_v59 }
 0x86f   :  { %4391 = vst.msk [vmem:[#allocation5 + $0xc] sm:$0xff] %vm9232_vm7, %v4384_v4 }
 0x870   :  { %4411 = vst.msk [vmem:[#allocation5 + $0x10] sm:$0xff] %vm9236_vm8, %v4404_v3 }
 0x873   :  { %v4380_v7 = vpop.permute.xlu1 %4379 }
 0x874   :  { %v4382_v24 = vrot.slane %v4380_v7, 4 }
 0x876   :  { %v4385_v34 = vsel %vm4383_vm5, %v4382_v24, %v4380_v7  ;;  %v6553_v19 = vld [vmem:[#allocation5 + $0xc] sm:$0xf]  ;;  %v6631_v24 = vld [vmem:[%s9286_s10] ss:$0 sm:$0xff] }
 0x877   :  { %4392 = vst.msk [vmem:[#allocation5 + $0x28] sm:$0xff] %vm9232_vm7, %v4385_v34  ;;  %v6132_v40 = vld [vmem:[#allocation5 + $0x10] sm:$0xf] }
 0x87b   :  { %v4420_v12 = vpop.permute.xlu2 %4419 }
 0x87c   :  { %v4422_v10 = vrot.slane %v4420_v12, 4 }
 0x87e   :  { %v6126_v38 = vld [vmem:[#allocation5 + $0x24] sm:$0xf0]  ;;  %v4425_v1 = vsel %vm4423_vm11, %v4422_v10, %v4420_v12 }
 0x87f   :  { %v6129_v23 = vor.u32 %v6553_v19, %v6126_v38 }
 0x881   :  { %4926 = vmatmul.bf16.vlgmr.msra.gmra.mxu3 %v6129_v23 }
 0x883   :  { %v4400_v49 = vpop.permute.xlu0 %4399 }
 0x884   :  { %v4402_v58 = vrot.slane %v4400_v49, 4 }
 0x886   :  { %v4405_v52 = vsel %vm4403_vm6, %v4402_v58, %v4400_v49 }
 0x887   :  { %4412 = vst.msk [vmem:[#allocation5 + $0x2c] sm:$0xff] %vm9236_vm8, %v4405_v52 }
 0x888   :  { %4432 = vst.msk [vmem:[#allocation5 + $0x30] sm:$0xff] %vm4430_vm12, %v4425_v1 }
 0x88b   :  { %v4418_v29 = vpop.permute.xlu1 %4417 }
 0x88c   :  { %v4421_v50 = vrot.slane %v4418_v29, 4 }
 0x88e   :  { %v4424_v63 = vsel %vm4423_vm11, %v4421_v50, %v4418_v29  ;;  %v6557_v22 = vld [vmem:[#allocation5 + $0x28] sm:$0xf0] }
 0x88f   :  { %4431 = vst.msk [vmem:[#allocation5 + $0x14] sm:$0xff] %vm4430_vm12, %v4424_v63  ;;  %v6133_v17 = vor.u32 %v6557_v22, %v6132_v40  ;;  %v6134_v11 = vld [vmem:[#allocation5 + $0x2c] sm:$0xf0]  ;;  %v6558_v45 = vld [vmem:[#allocation5 + $0x30] sm:$0xf0] }
 0x891   :  { %4940 = vmatmul.bf16.vlgmr.msrb.gmra.mxu0 %v6133_v17 }
 0x896   :  { %v6554_v51 = vld [vmem:[#allocation5 + $0x14] sm:$0xf]  ;;  %v6140_v33 = vld [vmem:[#allocation5 + $0x18] sm:$0xf] }
 0x897   :  { %v6137_v18 = vor.u32 %v6554_v51, %v6134_v11  ;;  %v6141_v9 = vor.u32 %v6558_v45, %v6140_v33 }
 0x899   :  { %4954 = vmatmul.bf16.vlgmr.msrb.gmra.mxu1 %v6137_v18  ;;  %6338 = vmatmul.msk.bf16.vlgmr.msrb.gmra.mxu2 %vm4872_vm13, %v6141_v9 }
 0x8ce   :  { %v4885_v2 = vpop.f32.mrf.mxu0 }
 0x8cf   :  { %v4886_v5 = vadd.f32 %v6630_v6, %v4885_v2 }
 0x8d6   :  { %v4887_v56 = vpop.f32.mrf.mxu0 }
 0x8d7   :  { %v4888_v41 = vadd.f32 %v6630_v6, %v4887_v56 }
 0x8de   :  { %v4899_v47 = vpop.f32.mrf.mxu1 }
 0x8df   :  { %v4900_v32 = vadd.f32 %v4899_v47, %v4886_v5 }
 0x8e5   :  { %v4913_v14 = vpop.f32.mrf.mxu2 }
 0x8e6   :  { %v4901_v43 = vpop.f32.mrf.mxu1  ;;  %v4914_v28 = vadd.f32 %v4913_v14, %v4900_v32 }
 0x8e7   :  { %v4902_v16 = vadd.f32 %v4901_v43, %v4888_v41 }
 0x8ed   :  { %v4915_v15 = vpop.f32.mrf.mxu2 }
 0x8ee   :  { %v4916_v25 = vadd.f32 %v4915_v15, %v4902_v16 }
 0x904   :  { %v4927_v26 = vpop.f32.mrf.mxu3 }
 0x905   :  { %v4928_v48 = vadd.f32 %v4927_v26, %v4914_v28 }
 0x90c   :  { %v4929_v42 = vpop.f32.mrf.mxu3 }
 0x90d   :  { %v4930_v27 = vadd.f32 %v4929_v42, %v4916_v25 }
 0x90e   :  { %v4941_v62 = vpop.f32.mrf.mxu0 }
 0x90f   :  { %v4942_v30 = vadd.f32 %v4941_v62, %v4928_v48 }
 0x916   :  { %v4955_v0 = vpop.f32.mrf.mxu1  ;;  %v4943_v13 = vpop.f32.mrf.mxu0 }
 0x917   :  { %v4944_v60 = vadd.f32 %v4943_v13, %v4930_v27  ;;  %v4956_v55 = vadd.f32 %v4955_v0, %v4942_v30 }
 0x91c   :  { %v4969_v8 = vpop.f32.mrf.mxu2 }
 0x91d   :  { %v4970_v53 = vadd.f32 %v4969_v8, %v4956_v55 }
 0x91e   :  { %v4957_v57 = vpop.f32.mrf.mxu1 }
 0x91f   :  { %v4958_v20 = vadd.f32 %v4957_v57, %v4944_v60  ;;  %v4974_v3 = vmax.f32 %v4970_v53, 0.0 }
 0x924   :  { %v4971_v21 = vpop.f32.mrf.mxu2 }
 0x925   :  { %v4972_v4 = vadd.f32 %v4971_v21, %v4958_v20 }
 0x927   :  { %v4975_v44 = vmax.f32 %v4972_v4, 0.0 }
 0x929   :  { %v4976_v7 = vpack.c.bf16 %v4975_v44, %v4974_v3 }
 0x92b   :  { %5053 = vmatmul.bf16.vlgmr.msrb.gmra.mxu3 %v4976_v7 }
 0x9ae   :  { %v5054_v46 = vpop.f32.mrf.mxu3 }
 0x9af   :  { %v5055_v34 = vadd.f32 %v6631_v24, %v5054_v46 }
 0x9b1   :  { %5059 = vst [vmem:[%s9287_s11] sm:$0xff] %v5055_v34 }
 0x9b6   :  { %v5056_v19 = vpop.f32.mrf.mxu3 }
 0x9b7   :  { %v5057_v38 = vadd.f32 %v6631_v24, %v5056_v19 }
 0x9b9   :  { %5060 = vst [vmem:[%s9287_s11 + $0x8] sm:$0xff] %v5057_v38 }
 0x9ba   :  { %5065 = vsyncpa [#allocation7], 1 }
 0x9bb   :  { %5066 = vsyncpa [#allocation9], 1 }
 0x9bc   :  { %5067 = vsyncpa [#allocation12], 1 }

</bundles_post_ra>
